<compile_context>
chip_gen: v7x
topology: tpu7x:2x2x1
jax: 0.10.0
libtpu: 0.0.40
codegen_flags: <defaults>
</compile_context>

<pallas_src>
import functools

import jax
import jax.numpy as jnp
from jax import lax
from jax.experimental import pallas as pl
from jax.experimental.pallas import tpu as pltpu


def _round_up(a, b):
    return ((a + b - 1) // b) * b


def _att_kernel(x_ref, w1_ref, b1_ref, w2t_ref, b2t_ref, at_ref, *,
                n_branches, use_mxu_second):
    """One N-tile: at[K, tile_n] = (tanh(x @ W1 + b1) @ W2 + b2)^T."""
    # First layer: MXU matmul (f32 or bf16 inputs), f32 accumulate, f32 tanh
    # (tanh runs on the EUP, a separate bundle slot).
    h = jnp.tanh(
        jnp.dot(x_ref[...], w1_ref[...], preferred_element_type=jnp.float32)
        + b1_ref[...].astype(jnp.float32)
    )                                                            # (tile_n, H) f32
    # Dropout(p=0.0) is the identity -> no-op.
    w2t = w2t_ref[...].astype(jnp.float32)                       # (K, H)
    if use_mxu_second:
        # Wide K: one MXU pass, contracting H with rhs transposed so the result
        # is already lane-dense (K, tile_n) -- no in-kernel transpose needed.
        at = lax.dot_general(
            w2t, h,
            dimension_numbers=(((1,), (1,)), ((), ())),
            preferred_element_type=jnp.float32,
        )                                                        # (K, tile_n)
    else:
        # Degenerate K (ABMIL default K=1): VPU multiply + XLU lane reduction,
        # emitted as lane-dense rows (1, tile_n). VPU+XLU slots, no MXU drain.
        rows = [
            jnp.sum(h * w2t[j:j + 1, :], axis=-1)[None, :]       # (1, tile_n)
            for j in range(n_branches)
        ]
        at = rows[0] if n_branches == 1 else jnp.concatenate(rows, axis=0)
    at = at + b2t_ref[...].astype(jnp.float32)                   # + b2 (K, 1)
    at_ref[...] = at.astype(at_ref.dtype)


def att_net_forward(x, w1, b1, w2, b2, *, tile_n=512, compute_dtype=None):
    """ABMIL attention-net forward.

    x : (N, E) instance embeddings
    w1: (E, H), b1: (H,)   first Linear  (weights stored (in, out))
    w2: (H, K), b2: (K,)   second Linear
    Returns (A, x) with A: (N, K), matching the PyTorch module.
    compute_dtype: optional dtype (e.g. jnp.bfloat16) for the streamed x / W1.
    """
    n, e = x.shape
    e1, hdim = w1.shape
    h2, k = w2.shape
    assert e1 == e and h2 == hdim

    out_dtype = x.dtype
    compute_dtype = jnp.dtype(x.dtype if compute_dtype is None else compute_dtype)
    row_align = 16 if compute_dtype.itemsize <= 2 else 8

    # Tile the instance dim N (the only large dim for MIL bags).
    if n <= tile_n:
        tn = _round_up(max(n, row_align), row_align)
        n_pad = tn
    else:
        tn = tile_n
        assert tn % 128 == 0 and tn % row_align == 0, \
            "tile_n must be a multiple of 128 for multi-tile grids"
        n_pad = _round_up(n, tn)
    grid = (n_pad // tn,)

    x_k = x.astype(compute_dtype)
    if n_pad != n:
        x_k = jnp.pad(x_k, ((0, n_pad - n), (0, 0)))
    w1_k = w1.astype(compute_dtype)
    b1_2d = jnp.reshape(b1, (1, hdim)).astype(jnp.float32)
    w2t = jnp.transpose(jnp.reshape(w2, (hdim, k))).astype(jnp.float32)  # (K, H)
    b2t = jnp.reshape(b2, (k, 1)).astype(jnp.float32)                    # (K, 1)

    use_mxu_second = k >= 8
    kernel = functools.partial(
        _att_kernel, n_branches=k, use_mxu_second=use_mxu_second)

    # Explicit VMEM budget: double-buffered x / out tiles, resident weights,
    # f32 intermediates; clamped to v7x's 64 MiB per-TensorCore VMEM.
    est = (
        2 * (tn * e * compute_dtype.itemsize)                    # x tiles
        + 2 * (e * hdim * compute_dtype.itemsize
               + (hdim + k * hdim + k) * 4)                      # weights/biases
        + 2 * (k * tn * jnp.dtype(out_dtype).itemsize)           # out tiles
        + 2 * (tn * (hdim + k + 8) * 4)                          # h / scratch
    )
    vmem_limit = int(min(64 * 2 ** 20, max(16 * 2 ** 20, 4 * est)))

    # Scheduler hint for XLA around the custom call.
    flops = 2 * n_pad * e * hdim + 2 * n_pad * hdim * k
    bytes_accessed = (
        n_pad * e * compute_dtype.itemsize
        + e * hdim * compute_dtype.itemsize
        + (hdim + hdim * k + k) * 4
        + k * n_pad * jnp.dtype(out_dtype).itemsize
    )
    cost = pl.CostEstimate(flops=flops, transcendentals=n_pad * hdim,
                           bytes_accessed=bytes_accessed)

    at = pl.pallas_call(
        kernel,
        out_shape=jax.ShapeDtypeStruct((k, n_pad), out_dtype),
        grid=grid,
        in_specs=[
            pl.BlockSpec((tn, e), lambda i: (i, 0)),      # x tile (streamed)
            pl.BlockSpec((e, hdim), lambda i: (0, 0)),    # W1  (resident)
            pl.BlockSpec((1, hdim), lambda i: (0, 0)),    # b1  (resident)
            pl.BlockSpec((k, hdim), lambda i: (0, 0)),    # W2^T (resident)
            pl.BlockSpec((k, 1), lambda i: (0, 0)),       # b2  (resident)
        ],
        out_specs=pl.BlockSpec((k, tn), lambda i: (0, i)),  # lane-dense (K, N)
        compiler_params=pltpu.CompilerParams(
            dimension_semantics=("parallel",),
            vmem_limit_bytes=vmem_limit,
        ),
        cost_estimate=cost,
    )(x_k, w1_k, b1_2d, w2t, b2t)

    a = jnp.transpose(at[:, :n])                          # back to (N, K)
    return a, x


def init_params(key, embed_size, hidden_size, branches, dtype=jnp.float32):
    """Deterministic init matching nn.Linear's U(-1/sqrt(fan_in), 1/sqrt(fan_in))."""
    k1, k2, k3, k4 = jax.random.split(key, 4)
    lim1 = 1.0 / (embed_size ** 0.5)
    lim2 = 1.0 / (hidden_size ** 0.5)
    w1 = jax.random.uniform(k1, (embed_size, hidden_size), dtype, -lim1, lim1)
    b1 = jax.random.uniform(k2, (hidden_size,), dtype, -lim1, lim1)
    w2 = jax.random.uniform(k3, (hidden_size, branches), dtype, -lim2, lim2)
    b2 = jax.random.uniform(k4, (branches,), dtype, -lim2, lim2)
    return w1, b1, w2, b2


if __name__ == "__main__":
    # Small shapes consistent with the module: a bag of N instance embeddings.
    N, EMBED, HIDDEN, BRANCHES = 1024, 64, 32, 1

    key = jax.random.PRNGKey(0)
    kx, kx2, kp, kp2 = jax.random.split(key, 4)
    x = jax.random.normal(kx, (N, EMBED), jnp.float32)
    w1, b1, w2, b2 = init_params(kp, EMBED, HIDDEN, BRANCHES)

    def ref(xv, w1v, b1v, w2v, b2v):
        return jnp.tanh(xv @ w1v + b1v) @ w2v + b2v

    # 1) f32 path, multi-tile grid (N=1024 -> 2 tiles of 512 rows).
    A, x_out = att_net_forward(x, w1, b1, w2, b2)
    A = jax.block_until_ready(A)
    x_out = jax.block_until_ready(x_out)
    A_ref = ref(x, w1, b1, w2, b2)
    assert A.shape == (N, BRANCHES)
    assert x_out.shape == x.shape
    assert jnp.allclose(A, A_ref, atol=1e-4, rtol=1e-4)
    assert jnp.array_equal(x_out, x)

    # 2) bf16 compute path for the streamed x / W1 (f32 accumulation).
    A_bf, _ = att_net_forward(x, w1, b1, w2, b2, compute_dtype=jnp.bfloat16)
    A_bf = jax.block_until_ready(A_bf)
    assert jnp.allclose(A_bf, A_ref, atol=2e-2, rtol=2e-2)

    # 3) Ragged N (exercises zero-padding of the final tile).
    N2 = 37
    x2 = jax.random.normal(kx2, (N2, EMBED), jnp.float32)
    A2, _ = att_net_forward(x2, w1, b1, w2, b2)
    A2 = jax.block_until_ready(A2)
    assert A2.shape == (N2, BRANCHES)
    assert jnp.allclose(A2, ref(x2, w1, b1, w2, b2), atol=1e-4, rtol=1e-4)

    # 4) Wide-branch fallback (K >= 8 uses the MXU for the second layer).
    K4 = 32
    w1b, b1b, w2b, b2b = init_params(kp2, EMBED, HIDDEN, K4)
    A4, _ = att_net_forward(x2, w1b, b1b, w2b, b2b)
    A4 = jax.block_until_ready(A4)
    assert A4.shape == (N2, K4)
    assert jnp.allclose(A4, ref(x2, w1b, b1b, w2b, b2b), atol=1e-4, rtol=1e-4)

    print("KERNEL_OK")
</pallas_src>

<mosaic_0001>
module attributes {stable_mosaic.version = 11 : i64} {
  func.func @_att_kernel(%arg0: i32, %arg1: memref<512x64xf32, #tpu.memory_space<vmem>>, %arg2: memref<64x32xf32, #tpu.memory_space<vmem>>, %arg3: memref<1x32xf32, #tpu.memory_space<vmem>>, %arg4: memref<1x32xf32, #tpu.memory_space<vmem>>, %arg5: memref<1x1xf32, #tpu.memory_space<vmem>>, %arg6: memref<1x512xf32, #tpu.memory_space<vmem>>) attributes {dimension_semantics = [#tpu.dimension_semantics<parallel>], iteration_bounds = array<i64: 2>, scalar_prefetch = 0 : i64, scratch_operands = 0 : i64, tpu.core_type = #tpu.core_type<tc>, window_params = [{transform_indices = @transform_0, window_bounds = array<i64: 512, 64>}, {pipeline_mode = #tpu.pipeline_mode<synchronous>, transform_indices = @transform_1, window_bounds = array<i64: 64, 32>}, {pipeline_mode = #tpu.pipeline_mode<synchronous>, transform_indices = @transform_2, window_bounds = array<i64: 1, 32>}, {pipeline_mode = #tpu.pipeline_mode<synchronous>, transform_indices = @transform_3, window_bounds = array<i64: 1, 32>}, {pipeline_mode = #tpu.pipeline_mode<synchronous>, transform_indices = @transform_4, window_bounds = array<i64: 1, 1>}, {transform_indices = @transform_5, window_bounds = array<i64: 1, 512>}]} {
    %c0 = arith.constant 0 : index
    %c0_0 = arith.constant 0 : index
    %0 = vector.load %arg1[%c0, %c0_0] : memref<512x64xf32, #tpu.memory_space<vmem>>, vector<512x64xf32>
    %c0_1 = arith.constant 0 : index
    %c0_2 = arith.constant 0 : index
    %1 = vector.load %arg2[%c0_1, %c0_2] : memref<64x32xf32, #tpu.memory_space<vmem>>, vector<64x32xf32>
    %cst = arith.constant dense<0.000000e+00> : vector<512x32xf32>
    %2 = tpu.matmul %0, %1, %cst {dimension_numbers = #tpu.dot_dimension_numbers<[1], [0], [0], [1], [0, 0, 1, 1], [], []>} : vector<512x64xf32>, vector<64x32xf32>, vector<512x32xf32> -> vector<512x32xf32>
    %c0_3 = arith.constant 0 : index
    %c0_4 = arith.constant 0 : index
    %3 = vector.load %arg3[%c0_3, %c0_4] : memref<1x32xf32, #tpu.memory_space<vmem>>, vector<1x32xf32>
    %4 = vector.broadcast %3 : vector<1x32xf32> to vector<512x32xf32>
    %5 = arith.addf %2, %4 : vector<512x32xf32>
    %6 = math.tanh %5 : vector<512x32xf32>
    %c0_5 = arith.constant 0 : index
    %c0_6 = arith.constant 0 : index
    %7 = vector.load %arg4[%c0_5, %c0_6] : memref<1x32xf32, #tpu.memory_space<vmem>>, vector<1x32xf32>
    %8 = vector.broadcast %7 : vector<1x32xf32> to vector<512x32xf32>
    %9 = arith.mulf %6, %8 : vector<512x32xf32>
    %cst_7 = arith.constant dense<0.000000e+00> : vector<512xf32>
    %10 = vector.multi_reduction <add>, %9, %cst_7 [1] : vector<512x32xf32> to vector<512xf32>
    %11 = vector.shape_cast %10 : vector<512xf32> to vector<1x512xf32>
    %c0_8 = arith.constant 0 : index
    %c0_9 = arith.constant 0 : index
    %12 = vector.load %arg5[%c0_8, %c0_9] : memref<1x1xf32, #tpu.memory_space<vmem>>, vector<1x1xf32>
    %13 = vector.broadcast %12 : vector<1x1xf32> to vector<1x512xf32>
    %14 = arith.addf %11, %13 : vector<1x512xf32>
    %c0_10 = arith.constant 0 : index
    %c0_11 = arith.constant 0 : index
    %15 = vector.load %arg6[%c0_10, %c0_11] : memref<1x512xf32, #tpu.memory_space<vmem>>, vector<1x512xf32>
    tpu.vector_store %arg6[%c0_10, %c0_11], %14 {strides = array<i32>} : memref<1x512xf32, #tpu.memory_space<vmem>>, vector<1x512xf32>,
    return
  }
  func.func @transform_0(%arg0: i32) -> (i32, i32) {
    %c0_i32 = arith.constant 0 : i32
    %c0_i32_0 = arith.constant 0 : i32
    return %arg0, %c0_i32 : i32, i32
  }
  func.func @transform_1(%arg0: i32) -> (i32, i32) {
    %c0_i32 = arith.constant 0 : i32
    %c0_i32_0 = arith.constant 0 : i32
    %c0_i32_1 = arith.constant 0 : i32
    return %c0_i32, %c0_i32_0 : i32, i32
  }
  func.func @transform_2(%arg0: i32) -> (i32, i32) {
    %c0_i32 = arith.constant 0 : i32
    %c0_i32_0 = arith.constant 0 : i32
    %c0_i32_1 = arith.constant 0 : i32
    return %c0_i32, %c0_i32_0 : i32, i32
  }
  func.func @transform_3(%arg0: i32) -> (i32, i32) {
    %c0_i32 = arith.constant 0 : i32
    %c0_i32_0 = arith.constant 0 : i32
    %c0_i32_1 = arith.constant 0 : i32
    return %c0_i32, %c0_i32_0 : i32, i32
  }
  func.func @transform_4(%arg0: i32) -> (i32, i32) {
    %c0_i32 = arith.constant 0 : i32
    %c0_i32_0 = arith.constant 0 : i32
    %c0_i32_1 = arith.constant 0 : i32
    return %c0_i32, %c0_i32_0 : i32, i32
  }
  func.func @transform_5(%arg0: i32) -> (i32, i32) {
    %c0_i32 = arith.constant 0 : i32
    %c0_i32_0 = arith.constant 0 : i32
    return %c0_i32, %arg0 : i32, i32
  }
}

</mosaic_0001>

<bundles_post_ra>
// kernel: tpu_custom_call.1
= control target key start
LH: loop header
LB: loop body
LE: loop exit
PB: predicated region body
PF: predicated region fallthrough
CT: control target
= control target key end

     0   :  { %s10191_s0 = inlined_call_operand.vmem [shape: f32[1024,64], index: 0, kind: input, shape index: {}]   ;;  %s10192_s1 = inlined_call_operand.vmem [shape: f32[64,32], index: 1, kind: input, shape index: {}]   ;;  %s10193_s2 = inlined_call_operand.vmem [shape: f32[1,32], index: 2, kind: input, shape index: {}]   ;;  %s10194_s3 = inlined_call_operand.vmem [shape: f32[1,32], index: 3, kind: input, shape index: {}]   ;;  %s10195_s4 = inlined_call_operand.<no memory space> [shape: f32[1,1], index: 4, kind: input, shape index: {}]   ;;  %s10196_s5 = inlined_call_operand.hbm [shape: f32[1,1024], index: 5, kind: output, shape index: {}]  }
   0x1   :  { %v10_v0 = vstv %s10195_s4 }
   0x2   :  { %11 = vst [vmem:[#allocation2] sm:$0x1] %v10_v0 }
   0x3   :  { %12 = vsyncpa [#allocation4], 0 }
   0x4   :  { %14 = vsyncpa [#allocation4 + $0x1], 0  ;;  %s7737_s20 = smov 0   ;;  %s7739_s21 = smov 0  }
   0x5   :  { %s7741_s22 = smov 0   ;;  %s7743_s23 = smov 0  }
   0x6 LB: > { %s7178_s4 = sadd.s32 4294967295, %s7699_s23   ;;  %s7179_s24 = sadd.s32 4294967294, %s7699_s23   ;;  %s7699_s23 = sphi %s7743_s23, %s10216_s23   ;;  %s7695_s22 = sphi %s7741_s22, %s10215_s22   ;;  %s7691_s21 = sphi %s7739_s21, %s10214_s21   ;;  %s7687_s20 = sphi %s7737_s20, %s10213_s20  }
   0x7   : > { %s7760_s25 = sadd.s32 1, %s7699_s23   ;;  %s137_s26 = sadd.s32 1, %s7695_s22 }
   0x8   : > { %s134_s27 = ssub.s32 %s7699_s23, %s7760_s25  ;;  %p147_p0 = scmp.ne.s32.totalorder %s7695_s22, %s7691_s21 }
   0x9   : > { %p135_p1 = scmp.eq.s32.totalorder %s134_s27, 0  ;;  %p148_p2 = scmp.eq.s32.totalorder %s7178_s4, 1 }
   0xa   : > { %p153_p3 = scmp.ne.s32.totalorder %s7691_s21, %s7687_s20  ;;  %p154_p4 = scmp.eq.s32.totalorder %s7179_s24, 1 }
   0xb   : > { %s7770_s28 = scalar_select %p135_p1, %s7695_s22, %s137_s26  }
   0xc   : > { %p7772_p5 = por %p148_p2, %p147_p0  ;;  %p7776_p6 = por %p154_p4, %p153_p3 }
   0xd   : > { %p7182_p7 = scmp.ge.s32.totalorder %s7699_s23, 1  ;;  %p193_p8 = scmp.lt.s32.totalorder %s7699_s23, 3 }
   0xf   : > { %p194_p9 = pnand %p7182_p7, %p193_p8 }
  0x11   : > { %197 = sbr.rel (%p194_p9) target bundleno = 927 (0x39f), region = 40 }
  0x18   : > { %v292_v1 = vld [vmem:[%s10192_s1] sm:$0xff]  ;;  %v293_v2 = vld [vmem:[%s10192_s1 + $0x8] sm:$0xff]  ;;  %v294_v3 = vld [vmem:[%s10192_s1 + $0x10] sm:$0xff]  ;;  %s7791_s12 = sshll.u32 %s7178_s4, 6  ;;  %v7701_v6 = vmov 0   ;;  %vm307_vm0 = vcmask 523264  }
  0x19   : > { %v7442_v4 = vpack.c.bf16 %v293_v2, %v292_v1  ;;  %v295_v5 = vld [vmem:[%s10192_s1 + $0x18] sm:$0xff]  ;;  %p222_p10 = scmp.lt.s32.totalorder %s7791_s12, 127  ;;  %7507 = vset.pattern.permute.xlu0 %v7701_v6  ;;  %7508 = vset.pattern.permute.xlu1 %v7701_v6  ;;  %v296_v8 = vld [vmem:[%s10192_s1 + $0x20] sm:$0xff]  ;;  %v297_v9 = vld [vmem:[%s10192_s1 + $0x28] sm:$0xff]  ;;  %vm1020_vm1 = vcmask 261120   ;;  %vm6738_vm2 = vcmask 130112   ;;  %s10149_s24 = scalar_lea.hbm %s10196_s5, %s7791_s12 }
  0x1a   : > { %v7446_v7 = vpack.c.bf16 %v295_v5, %v294_v3  ;;  %v1213_v10 = vld [vmem:[#allocation2] sm:$0x1]  ;;  %v7450_v11 = vpack.c.bf16 %v297_v9, %v296_v8  ;;  %v298_v12 = vld [vmem:[%s10192_s1 + $0x30] sm:$0xff]  ;;  %v299_v13 = vld [vmem:[%s10192_s1 + $0x38] sm:$0xff]  ;;  %vm6745_vm3 = vcmask 195712   ;;  %vm6752_vm4 = vcmask 261312  }
  0x1b   : > { %7443 = vmatprep.subr.bf16.mxu0 %v7442_v4  ;;  %7458 = vmatprep.subr.bf16.mxu1 %v7442_v4  ;;  %s223_s19 = scalar_select %p222_p10, %s7791_s12, 127  ;;  %v7454_v16 = vpack.c.bf16 %v299_v13, %v298_v12  ;;  %vm6759_vm5 = vcmask 326912   ;;  %vm6766_vm6 = vcmask 392512   ;;  %vm6773_vm7 = vcmask 458112  }
  0x1c   : > { %7445 = vmatpush3.bf16.msra.mxu0 %v7442_v4  ;;  %7462 = vmatpush3.bf16.msra.mxu1 %v7442_v4  ;;  %vm6780_vm8 = vcmask 523712   ;;  %vm6787_vm9 = vcmask 589312   ;;  %vm6794_vm10 = vcmask 654912   ;;  %vm6801_vm11 = vcmask 720512   ;;  %s218_s15 = sand.u32 1, %s7691_s21   ;;  %s7703_s6 = smov [#allocation3]  }
  0x1d   : > { %7447 = vmatprep.subr.bf16.mxu0 %v7446_v7  ;;  %7459 = vmatprep.subr.bf16.mxu1 %v7446_v7  ;;  %s7185_s4 = sshll.u32 %s223_s19, 3  ;;  %vm6808_vm12 = vcmask 786112   ;;  %vm6815_vm13 = vcmask 851712   ;;  %vm6822_vm14 = vcmask 917312   ;;  %vm6829_vm15 = vcmask 982912   ;;  %s7183_s16 = sshll.u32 %s218_s15, 2 }
  0x1e   : > { %s7813_s9 = scalar_lea.vmem %s10191_s0, %s7185_s4  ;;  %1216 = vperm.xlu0 %7507, %v1213_v10   ;;  %s220_s17 = scalar_lea.vmem [#allocation3], %s7183_s16 }
  0x1f   : > { %v228_v14 = vld [vmem:[%s7813_s9] sm:$0xff]  ;;  %v229_v17 = vld [vmem:[%s7813_s9 + $0x8] sm:$0xff]  ;;  %v230_v19 = vld [vmem:[%s7813_s9 + $0x10] sm:$0xff]  ;;  %s7120_s18 = sshll.u32 %s220_s17, 4  ;;  %s7106_s26 = scalar_lea.sflag [#allocation4], %s218_s15  ;;  %s10151_s18 = int_to_ptr.vmem [resolvable:$true] %s7120_s18 }
  0x20   : > { %v260_v15 = vld [vmem:[%s7813_s9 + $0x100] sm:$0xff]  ;;  %7449 = vmatpush3.bf16.msra.mxu0 %v7446_v7  ;;  %7463 = vmatpush3.bf16.msra.mxu1 %v7446_v7  ;;  %v261_v18 = vld [vmem:[%s7813_s9 + $0x108] sm:$0xff]  ;;  %v262_v20 = vld [vmem:[%s7813_s9 + $0x110] sm:$0xff]  ;;  %s7637_s27 = scalar_lea.vmem %s10151_s18, 64  ;;  %s7641_s7 = sshll.u32 %s7703_s6, 4  ;;  %s7642_s7 = int_to_ptr.vmem [resolvable:$false] %s7641_s7 }
  0x21   : > { %7451 = vmatprep.subr.bf16.mxu0 %v7450_v11  ;;  %7460 = vmatprep.subr.bf16.mxu1 %v7450_v11  ;;  %v231_v21 = vld [vmem:[%s7813_s9 + $0x18] sm:$0xff]  ;;  %v232_v23 = vld [vmem:[%s7813_s9 + $0x20] sm:$0xff]  ;;  %v233_v25 = vld [vmem:[%s7813_s9 + $0x28] sm:$0xff]  ;;  %p7638_p11 = scmp.ne.s32.totalorder %s10151_s18, %s7637_s27  ;;  %s7643_s8 = scalar_lea.vmem %s7642_s7, 128 }
  0x22   : > { %7346 = vmatprep.mubr.msk.f32.mxu0 %vm307_vm0, %v228_v14  ;;  %7394 = vmatprep.mubr.msk.f32.mxu1 %vm307_vm0, %v260_v15  ;;  %v263_v22 = vld [vmem:[%s7813_s9 + $0x118] sm:$0xff]  ;;  %v264_v24 = vld [vmem:[%s7813_s9 + $0x120] sm:$0xff]  ;;  %v265_v26 = vld [vmem:[%s7813_s9 + $0x128] sm:$0xff]  ;;  %p7644_p0 = scmp.lt.s32.totalorder %s10151_s18, %s7642_s7  ;;  %p7645_p1 = scmp.lt.s32.totalorder %s7643_s8, %s7637_s27 }
  0x23   : > { %v234_v27 = vld [vmem:[%s7813_s9 + $0x30] sm:$0xff]  ;;  %v235_v29 = vld [vmem:[%s7813_s9 + $0x38] sm:$0xff]  ;;  %v236_v31 = vld [vmem:[%s7813_s9 + $0x40] sm:$0xff]  ;;  %p7639_p12 = pnand %p7638_p11, %p7772_p5 }
  0x24   : > { %7453 = vmatpush3.bf16.msra.mxu0 %v7450_v11  ;;  %7464 = vmatpush3.bf16.msra.mxu1 %v7450_v11  ;;  %v266_v28 = vld [vmem:[%s7813_s9 + $0x130] sm:$0xff]  ;;  %v267_v30 = vld [vmem:[%s7813_s9 + $0x138] sm:$0xff]  ;;  %v268_v32 = vld [vmem:[%s7813_s9 + $0x140] sm:$0xff]  ;;  %p7646_p2 = por %p7645_p1, %p7644_p0 }
  0x25   : > { %7455 = vmatprep.subr.bf16.mxu0 %v7454_v16  ;;  %7461 = vmatprep.subr.bf16.mxu1 %v7454_v16  ;;  %v237_v33 = vld [vmem:[%s7813_s9 + $0x48] sm:$0xff]  ;;  %v238_v35 = vld [vmem:[%s7813_s9 + $0x50] sm:$0xff]  ;;  %v239_v37 = vld [vmem:[%s7813_s9 + $0x58] sm:$0xff]  ;;  %p7640_p13 = pneg %p7639_p12 }
  0x26   : > { %v269_v34 = vld [vmem:[%s7813_s9 + $0x148] sm:$0xff]  ;;  %v270_v36 = vld [vmem:[%s7813_s9 + $0x150] sm:$0xff]  ;;  %v271_v38 = vld [vmem:[%s7813_s9 + $0x158] sm:$0xff] }
  0x27   : > { %v240_v39 = vld [vmem:[%s7813_s9 + $0x60] sm:$0xff]  ;;  %v241_v41 = vld [vmem:[%s7813_s9 + $0x68] sm:$0xff]  ;;  %v242_v43 = vld [vmem:[%s7813_s9 + $0x70] sm:$0xff]  ;;  %p7647_p3 = pnand %p7646_p2, %p7640_p13 }
  0x28   : > { %7457 = vmatpush3.bf16.msra.mxu0 %v7454_v16  ;;  %7465 = vmatpush3.bf16.msra.mxu1 %v7454_v16  ;;  %v272_v40 = vld [vmem:[%s7813_s9 + $0x160] sm:$0xff]  ;;  %v273_v42 = vld [vmem:[%s7813_s9 + $0x168] sm:$0xff]  ;;  %v274_v44 = vld [vmem:[%s7813_s9 + $0x170] sm:$0xff] }
  0x29   : > { %v243_v45 = vld [vmem:[%s7813_s9 + $0x78] sm:$0xff]  ;;  %v244_v47 = vld [vmem:[%s7813_s9 + $0x80] sm:$0xff]  ;;  %v245_v49 = vld [vmem:[%s7813_s9 + $0x88] sm:$0xff] }
  0x2a   : > { %v275_v46 = vld [vmem:[%s7813_s9 + $0x178] sm:$0xff]  ;;  %v276_v48 = vld [vmem:[%s7813_s9 + $0x180] sm:$0xff]  ;;  %v277_v50 = vld [vmem:[%s7813_s9 + $0x188] sm:$0xff] }
  0x2b   : > { %7347 = vmatmul.mubr.msk.f32.vlgmr.msra.gmra.mrb[0].mxu0 %vm307_vm0, %v229_v17  ;;  %7395 = vmatmul.mubr.msk.f32.vlgmr.msra.gmra.mrb[0].mxu1 %vm307_vm0, %v261_v18  ;;  %v246_v51 = vld [vmem:[%s7813_s9 + $0x90] sm:$0xff]  ;;  %v247_v53 = vld [vmem:[%s7813_s9 + $0x98] sm:$0xff]  ;;  %v248_v55 = vld [vmem:[%s7813_s9 + $0xa0] sm:$0xff] }
  0x2c   : > { %7349 = vmatprep.mubr.msk.f32.mxu0 %vm307_vm0, %v230_v19  ;;  %7397 = vmatprep.mubr.msk.f32.mxu1 %vm307_vm0, %v262_v20  ;;  %v278_v52 = vld [vmem:[%s7813_s9 + $0x190] sm:$0xff]  ;;  %v279_v54 = vld [vmem:[%s7813_s9 + $0x198] sm:$0xff]  ;;  %v280_v56 = vld [vmem:[%s7813_s9 + $0x1a0] sm:$0xff] }
  0x2d   : > { %v249_v57 = vld [vmem:[%s7813_s9 + $0xa8] sm:$0xff]  ;;  %v250_v59 = vld [vmem:[%s7813_s9 + $0xb0] sm:$0xff]  ;;  %v251_v61 = vld [vmem:[%s7813_s9 + $0xb8] sm:$0xff] }
  0x2e   : > { %v281_v58 = vld [vmem:[%s7813_s9 + $0x1a8] sm:$0xff]  ;;  %v282_v60 = vld [vmem:[%s7813_s9 + $0x1b0] sm:$0xff]  ;;  %v283_v62 = vld [vmem:[%s7813_s9 + $0x1b8] sm:$0xff] }
  0x2f   : > { %7350 = vmatmul.mubr.msk.f32.gmra.mrb[2].mxu0 %vm307_vm0, %v231_v21  ;;  %7398 = vmatmul.mubr.msk.f32.gmra.mrb[2].mxu1 %vm307_vm0, %v263_v22  ;;  %v252_v63 = vld [vmem:[%s7813_s9 + $0xc0] sm:$0xff]  ;;  %v253_v1 = vld [vmem:[%s7813_s9 + $0xc8] sm:$0xff]  ;;  %v254_v3 = vld [vmem:[%s7813_s9 + $0xd0] sm:$0xff] }
  0x30   : > { %7352 = vmatprep.mubr.msk.f32.mxu0 %vm307_vm0, %v232_v23  ;;  %7400 = vmatprep.mubr.msk.f32.mxu1 %vm307_vm0, %v264_v24  ;;  %v284_v0 = vld [vmem:[%s7813_s9 + $0x1c0] sm:$0xff]  ;;  %v285_v2 = vld [vmem:[%s7813_s9 + $0x1c8] sm:$0xff]  ;;  %v286_v4 = vld [vmem:[%s7813_s9 + $0x1d0] sm:$0xff] }
  0x31   : > { %v255_v5 = vld [vmem:[%s7813_s9 + $0xd8] sm:$0xff]  ;;  %v256_v7 = vld [vmem:[%s7813_s9 + $0xe0] sm:$0xff]  ;;  %v257_v9 = vld [vmem:[%s7813_s9 + $0xe8] sm:$0xff] }
  0x32   : > { %v287_v6 = vld [vmem:[%s7813_s9 + $0x1d8] sm:$0xff]  ;;  %v288_v8 = vld [vmem:[%s7813_s9 + $0x1e0] sm:$0xff]  ;;  %v289_v10 = vld [vmem:[%s7813_s9 + $0x1e8] sm:$0xff] }
  0x33   : > { %7353 = vmatmul.mubr.msk.f32.gmra.mrb[4].mxu0 %vm307_vm0, %v233_v25  ;;  %7401 = vmatmul.mubr.msk.f32.gmra.mrb[4].mxu1 %vm307_vm0, %v265_v26  ;;  %v258_v11 = vld [vmem:[%s7813_s9 + $0xf0] sm:$0xff]  ;;  %v259_v13 = vld [vmem:[%s7813_s9 + $0xf8] sm:$0xff]  ;;  %v7946_v15 = vld [vmem:[%s10193_s2] ss:$0 sm:$0xff] }
  0x34   : > { %7355 = vmatprep.mubr.msk.f32.mxu0 %vm307_vm0, %v234_v27  ;;  %7403 = vmatprep.mubr.msk.f32.mxu1 %vm307_vm0, %v266_v28  ;;  %v290_v12 = vld [vmem:[%s7813_s9 + $0x1f0] sm:$0xff]  ;;  %v291_v14 = vld [vmem:[%s7813_s9 + $0x1f8] sm:$0xff] }
  0x37   : > { %7356 = vmatmul.mubr.msk.f32.gmra.mrb[6].mxu0 %vm307_vm0, %v235_v29  ;;  %7404 = vmatmul.mubr.msk.f32.gmra.mrb[6].mxu1 %vm307_vm0, %v267_v30 }
  0x38   : > { %7358 = vmatprep.mubr.msk.f32.mxu0 %vm307_vm0, %v236_v31  ;;  %7406 = vmatprep.mubr.msk.f32.mxu1 %vm307_vm0, %v268_v32 }
  0x3b   : > { %7359 = vmatmul.mubr.msk.f32.gmra.mrb[8].mxu0 %vm307_vm0, %v237_v33  ;;  %7407 = vmatmul.mubr.msk.f32.gmra.mrb[8].mxu1 %vm307_vm0, %v269_v34 }
  0x3c   : > { %7361 = vmatprep.mubr.msk.f32.mxu0 %vm307_vm0, %v238_v35  ;;  %7409 = vmatprep.mubr.msk.f32.mxu1 %vm307_vm0, %v270_v36 }
  0x3f   : > { %7362 = vmatmul.mubr.msk.f32.gmra.mrb[10].mxu0 %vm307_vm0, %v239_v37  ;;  %7410 = vmatmul.mubr.msk.f32.gmra.mrb[10].mxu1 %vm307_vm0, %v271_v38 }
  0x40   : > { %7364 = vmatprep.mubr.msk.f32.mxu0 %vm307_vm0, %v240_v39  ;;  %7412 = vmatprep.mubr.msk.f32.mxu1 %vm307_vm0, %v272_v40  ;;  %v7963_v40 = vld [vmem:[%s10194_s3] ss:$0 sm:$0xff] }
  0x43   : > { %7365 = vmatmul.mubr.msk.f32.gmra.mrb[12].mxu0 %vm307_vm0, %v241_v41  ;;  %7413 = vmatmul.mubr.msk.f32.gmra.mrb[12].mxu1 %vm307_vm0, %v273_v42 }
  0x44   : > { %7367 = vmatprep.mubr.msk.f32.mxu0 %vm307_vm0, %v242_v43  ;;  %7415 = vmatprep.mubr.msk.f32.mxu1 %vm307_vm0, %v274_v44 }
  0x47   : > { %7368 = vmatmul.mubr.msk.f32.gmra.mrb[14].mxu0 %vm307_vm0, %v243_v45  ;;  %7416 = vmatmul.mubr.msk.f32.gmra.mrb[14].mxu1 %vm307_vm0, %v275_v46 }
  0x48   : > { %7370 = vmatprep.mubr.msk.f32.mxu0 %vm307_vm0, %v244_v47  ;;  %7418 = vmatprep.mubr.msk.f32.mxu1 %vm307_vm0, %v276_v48 }
  0x4b   : > { %7371 = vmatmul.mubr.msk.f32.gmra.mrb[16].mxu0 %vm307_vm0, %v245_v49  ;;  %7419 = vmatmul.mubr.msk.f32.gmra.mrb[16].mxu1 %vm307_vm0, %v277_v50 }
  0x4c   : > { %7373 = vmatprep.mubr.msk.f32.mxu0 %vm307_vm0, %v246_v51  ;;  %7421 = vmatprep.mubr.msk.f32.mxu1 %vm307_vm0, %v278_v52 }
  0x4f   : > { %7374 = vmatmul.mubr.msk.f32.gmra.mrb[18].mxu0 %vm307_vm0, %v247_v53  ;;  %7422 = vmatmul.mubr.msk.f32.gmra.mrb[18].mxu1 %vm307_vm0, %v279_v54 }
  0x50   : > { %7376 = vmatprep.mubr.msk.f32.mxu0 %vm307_vm0, %v248_v55  ;;  %7424 = vmatprep.mubr.msk.f32.mxu1 %vm307_vm0, %v280_v56 }
  0x53   : > { %7377 = vmatmul.mubr.msk.f32.gmra.mrb[20].mxu0 %vm307_vm0, %v249_v57  ;;  %7425 = vmatmul.mubr.msk.f32.gmra.mrb[20].mxu1 %vm307_vm0, %v281_v58 }
  0x54   : > { %7379 = vmatprep.mubr.msk.f32.mxu0 %vm307_vm0, %v250_v59  ;;  %7427 = vmatprep.mubr.msk.f32.mxu1 %vm307_vm0, %v282_v60 }
  0x57   : > { %7380 = vmatmul.mubr.msk.f32.gmra.mrb[22].mxu0 %vm307_vm0, %v251_v61  ;;  %7428 = vmatmul.mubr.msk.f32.gmra.mrb[22].mxu1 %vm307_vm0, %v283_v62 }
  0x58   : > { %7382 = vmatprep.mubr.msk.f32.mxu0 %vm307_vm0, %v252_v63  ;;  %7430 = vmatprep.mubr.msk.f32.mxu1 %vm307_vm0, %v284_v0 }
  0x5b   : > { %7383 = vmatmul.mubr.msk.f32.gmra.mrb[24].mxu0 %vm307_vm0, %v253_v1  ;;  %7431 = vmatmul.mubr.msk.f32.gmra.mrb[24].mxu1 %vm307_vm0, %v285_v2 }
  0x5c   : > { %7385 = vmatprep.mubr.msk.f32.mxu0 %vm307_vm0, %v254_v3  ;;  %7433 = vmatprep.mubr.msk.f32.mxu1 %vm307_vm0, %v286_v4 }
  0x5f   : > { %7386 = vmatmul.mubr.msk.f32.gmra.mrb[26].mxu0 %vm307_vm0, %v255_v5  ;;  %7434 = vmatmul.mubr.msk.f32.gmra.mrb[26].mxu1 %vm307_vm0, %v287_v6 }
  0x60   : > { %7388 = vmatprep.mubr.msk.f32.mxu0 %vm307_vm0, %v256_v7  ;;  %7436 = vmatprep.mubr.msk.f32.mxu1 %vm307_vm0, %v288_v8 }
  0x63   : > { %7389 = vmatmul.mubr.msk.f32.gmra.mrb[28].mxu0 %vm307_vm0, %v257_v9  ;;  %7437 = vmatmul.mubr.msk.f32.gmra.mrb[28].mxu1 %vm307_vm0, %v289_v10 }
  0x64   : > { %7391 = vmatprep.mubr.msk.f32.mxu0 %vm307_vm0, %v258_v11  ;;  %7439 = vmatprep.mubr.msk.f32.mxu1 %vm307_vm0, %v290_v12 }
  0x67   : > { %7392 = vmatmul.mubr.msk.f32.gmra.mrb[30].mxu0 %vm307_vm0, %v259_v13  ;;  %7440 = vmatmul.mubr.msk.f32.gmra.mrb[30].mxu1 %vm307_vm0, %v291_v14  ;;  %vm6836_vm0 = vcmask 1048512  }
  0xfe   : > { %v7348_v16 = vpop.f32.mrb[0].mxu0  ;;  %v7396_v17 = vpop.f32.mrb[0].mxu1 }
  0xff   : > { %v572_v18 = vadd.f32 %v7348_v16, %v7946_v15  ;;  %v732_v19 = vadd.f32 %v7396_v17, %v7946_v15  ;;  %v566_v20 = vpop.f32.mrb[1].mxu0  ;;  %v726_v21 = vpop.f32.mrb[1].mxu1 }
 0x100   : > { %v567_v22 = vadd.f32 %v7946_v15, %v566_v20  ;;  %v727_v23 = vadd.f32 %v7946_v15, %v726_v21 }
 0x101   : > { %7509 = vtanh.f32 %v572_v18 }
 0x102   : > { %7511 = vtanh.f32 %v732_v19  ;;  %v7351_v24 = vpop.f32.mrb[2].mxu0  ;;  %v7399_v25 = vpop.f32.mrb[2].mxu1 }
 0x103   : > { %7513 = vtanh.f32 %v567_v22  ;;  %v582_v26 = vadd.f32 %v7351_v24, %v7946_v15  ;;  %v576_v27 = vpop.f32.mrb[3].mxu0  ;;  %v742_v28 = vadd.f32 %v7399_v25, %v7946_v15  ;;  %v736_v29 = vpop.f32.mrb[3].mxu1 }
 0x104   : > { %7515 = vtanh.f32 %v727_v23  ;;  %v577_v30 = vadd.f32 %v7946_v15, %v576_v27  ;;  %v737_v31 = vadd.f32 %v7946_v15, %v736_v29 }
 0x105   : > { %7517 = vtanh.f32 %v582_v26 }
 0x106   : > { %7519 = vtanh.f32 %v577_v30  ;;  %v7354_v32 = vpop.f32.mrb[4].mxu0  ;;  %v7402_v33 = vpop.f32.mrb[4].mxu1 }
 0x107   : > { %7521 = vtanh.f32 %v742_v28  ;;  %v592_v34 = vadd.f32 %v7354_v32, %v7946_v15  ;;  %v586_v35 = vpop.f32.mrb[5].mxu0  ;;  %v752_v36 = vadd.f32 %v7402_v33, %v7946_v15  ;;  %v746_v37 = vpop.f32.mrb[5].mxu1 }
 0x108   : > { %7523 = vtanh.f32 %v737_v31  ;;  %v587_v38 = vadd.f32 %v7946_v15, %v586_v35  ;;  %v747_v39 = vadd.f32 %v7946_v15, %v746_v37 }
 0x109   : > { %7525 = vtanh.f32 %v592_v34 }
 0x10a   : > { %7527 = vtanh.f32 %v587_v38  ;;  %v7357_v41 = vpop.f32.mrb[6].mxu0  ;;  %v7405_v42 = vpop.f32.mrb[6].mxu1 }
 0x10b   : > { %v7510_v43 = vpop.eup %7509  ;;  %7529 = vtanh.f32 %v752_v36  ;;  %v602_v44 = vadd.f32 %v7357_v41, %v7946_v15  ;;  %v596_v45 = vpop.f32.mrb[7].mxu0  ;;  %v762_v46 = vadd.f32 %v7405_v42, %v7946_v15 }
 0x10c   : > { %v756_v47 = vpop.f32.mrb[7].mxu1  ;;  %v7512_v48 = vpop.eup %7511  ;;  %v957_v49 = vmul.f32 %v7510_v43, %v7963_v40  ;;  %7531 = vtanh.f32 %v747_v39  ;;  %v597_v50 = vadd.f32 %v7946_v15, %v596_v45 }
 0x10d   : > { %v757_v51 = vadd.f32 %v7946_v15, %v756_v47  ;;  %v7514_v52 = vpop.eup %7513  ;;  %v989_v53 = vmul.f32 %v7512_v48, %v7963_v40  ;;  %7533 = vtanh.f32 %v602_v44 }
 0x10e   : > { %v7516_v54 = vpop.eup %7515  ;;  %v1024_v55 = vsel %vm1020_vm1, %v957_v49, 0.0  ;;  %v956_v56 = vmul.f32 %v7514_v52, %v7963_v40  ;;  %7535 = vtanh.f32 %v597_v50  ;;  %v7360_v57 = vpop.f32.mrb[8].mxu0 }
 0x10f   : > { %v7408_v58 = vpop.f32.mrb[8].mxu1  ;;  %v7518_v59 = vpop.eup %7517  ;;  %v1120_v60 = vsel %vm1020_vm1, %v989_v53, 0.0  ;;  %1025 = vadd.xlane.f32.xlu0 %v1024_v55  ;;  %7537 = vtanh.f32 %v762_v46  ;;  %v612_v61 = vadd.f32 %v7360_v57, %v7946_v15  ;;  %v988_v5 = vmul.f32 %v7516_v54, %v7963_v40 }
 0x110   : > { %v606_v62 = vpop.f32.mrb[9].mxu0  ;;  %v766_v63 = vpop.f32.mrb[9].mxu1  ;;  %1121 = vadd.xlane.f32.xlu1 %v1120_v60  ;;  %v959_v1 = vmul.f32 %v7518_v59, %v7963_v40  ;;  %7539 = vtanh.f32 %v757_v51  ;;  %v1021_v4 = vsel %vm1020_vm1, %v956_v56, 0.0  ;;  %v772_v6 = vadd.f32 %v7408_v58, %v7946_v15 }
 0x111   : > { %v7520_v0 = vpop.eup %7519  ;;  %v607_v2 = vadd.f32 %v7946_v15, %v606_v62  ;;  %7541 = vtanh.f32 %v612_v61  ;;  %v767_v10 = vadd.f32 %v7946_v15, %v766_v63  ;;  %v1117_v25 = vsel %vm1020_vm1, %v988_v5, 0.0 }
 0x112   : > { %v7522_v3 = vpop.eup %7521  ;;  %v1030_v8 = vsel %vm1020_vm1, %v959_v1, 0.0  ;;  %v7363_v11 = vpop.f32.mrb[10].mxu0  ;;  %v958_v26 = vmul.f32 %v7520_v0, %v7963_v40 }
 0x113   : > { %v7524_v7 = vpop.eup %7523  ;;  %v991_v9 = vmul.f32 %v7522_v3, %v7963_v40  ;;  %7543 = vtanh.f32 %v607_v2  ;;  %v7411_v12 = vpop.f32.mrb[10].mxu1  ;;  %1022 = vadd.xlane.f32.xlu0 %v1021_v4  ;;  %v622_v14 = vadd.f32 %v7363_v11, %v7946_v15 }
 0x114   : > { %v7526_v13 = vpop.eup %7525  ;;  %7545 = vtanh.f32 %v772_v6  ;;  %v616_v16 = vpop.f32.mrb[11].mxu0  ;;  %1031 = vadd.xlane.f32.xlu1 %v1030_v8  ;;  %v990_v19 = vmul.f32 %v7524_v7, %v7963_v40  ;;  %v782_v23 = vadd.f32 %v7411_v12, %v7946_v15  ;;  %v1027_v43 = vsel %vm1020_vm1, %v958_v26, 0.0 }
 0x115   : > { %v776_v17 = vpop.f32.mrb[11].mxu1  ;;  %v7528_v18 = vpop.eup %7527  ;;  %7547 = vtanh.f32 %v767_v10  ;;  %v617_v20 = vadd.f32 %v7946_v15, %v616_v16  ;;  %v1126_v22 = vsel %vm1020_vm1, %v991_v9, 0.0  ;;  %v961_v31 = vmul.f32 %v7526_v13, %v7963_v40 }
 0x116   : > { %v7530_v21 = vpop.eup %7529  ;;  %7549 = vtanh.f32 %v622_v14  ;;  %v777_v27 = vadd.f32 %v7946_v15, %v776_v17  ;;  %v7366_v28 = vpop.f32.mrb[12].mxu0  ;;  %v1123_v36 = vsel %vm1020_vm1, %v990_v19, 0.0  ;;  %v960_v37 = vmul.f32 %v7528_v18, %v7963_v40 }
 0x117   : > { %v7532_v24 = vpop.eup %7531  ;;  %7551 = vtanh.f32 %v617_v20  ;;  %v7414_v29 = vpop.f32.mrb[12].mxu1  ;;  %1118 = vadd.xlane.f32.xlu0 %v1117_v25  ;;  %v632_v32 = vadd.f32 %v7366_v28, %v7946_v15  ;;  %v1036_v48 = vsel %vm1020_vm1, %v961_v31, 0.0  ;;  %v993_v49 = vmul.f32 %v7530_v21, %v7963_v40 }
 0x118   : > { %v7534_v30 = vpop.eup %7533  ;;  %7553 = vtanh.f32 %v782_v23  ;;  %v626_v33 = vpop.f32.mrb[13].mxu0  ;;  %1127 = vadd.xlane.f32.xlu1 %v1126_v22  ;;  %v792_v41 = vadd.f32 %v7414_v29, %v7946_v15  ;;  %v1033_v54 = vsel %vm1020_vm1, %v960_v37, 0.0  ;;  %v992_v55 = vmul.f32 %v7532_v24, %v7963_v40 }
 0x119   : > { %v786_v34 = vpop.f32.mrb[13].mxu1  ;;  %v7536_v35 = vpop.eup %7535  ;;  %7555 = vtanh.f32 %v777_v27  ;;  %v627_v38 = vadd.f32 %v7946_v15, %v626_v33  ;;  %v963_v58 = vmul.f32 %v7534_v30, %v7963_v40  ;;  %v1132_v4 = vsel %vm1020_vm1, %v993_v49, 0.0 }
 0x11a   : > { %v7538_v39 = vpop.eup %7537  ;;  %7557 = vtanh.f32 %v632_v32  ;;  %v787_v44 = vadd.f32 %v7946_v15, %v786_v34  ;;  %v7369_v45 = vpop.f32.mrb[14].mxu0  ;;  %v962_v59 = vmul.f32 %v7536_v35, %v7963_v40  ;;  %v1129_v10 = vsel %vm1020_vm1, %v992_v55, 0.0 }
 0x11b   : > { %v7540_v42 = vpop.eup %7539  ;;  %7559 = vtanh.f32 %v627_v38  ;;  %v7417_v46 = vpop.f32.mrb[14].mxu1  ;;  %1124 = vadd.xlane.f32.xlu0 %v1123_v36  ;;  %v642_v50 = vadd.f32 %v7369_v45, %v7946_v15  ;;  %v995_v62 = vmul.f32 %v7538_v39, %v7963_v40  ;;  %v1042_v14 = vsel %vm1020_vm1, %v963_v58, 0.0 }
 0x11c   : > { %v7542_v47 = vpop.eup %7541  ;;  %7561 = vtanh.f32 %v792_v41  ;;  %v636_v51 = vpop.f32.mrb[15].mxu0  ;;  %1028 = vadd.xlane.f32.xlu1 %v1027_v43  ;;  %v802_v60 = vadd.f32 %v7417_v46, %v7946_v15  ;;  %v994_v63 = vmul.f32 %v7540_v42, %v7963_v40  ;;  %v1039_v16 = vsel %vm1020_vm1, %v962_v59, 0.0 }
 0x11d   : > { %v796_v52 = vpop.f32.mrb[15].mxu1  ;;  %v7544_v53 = vpop.eup %7543  ;;  %7563 = vtanh.f32 %v787_v44  ;;  %v637_v56 = vadd.f32 %v7946_v15, %v636_v51  ;;  %v965_v5 = vmul.f32 %v7542_v47, %v7963_v40  ;;  %v8021_v19 = vsel %vm1020_vm1, %v995_v62, 0.0 }
 0x11e   : > { %v7546_v57 = vpop.eup %7545  ;;  %7565 = vtanh.f32 %v642_v50  ;;  %v797_v0 = vadd.f32 %v7946_v15, %v796_v52  ;;  %v7372_v1 = vpop.f32.mrb[16].mxu0  ;;  %v964_v11 = vmul.f32 %v7544_v53, %v7963_v40  ;;  %v1135_v20 = vsel %vm1020_vm1, %v994_v63, 0.0 }
 0x11f   : > { %v7548_v61 = vpop.eup %7547  ;;  %7567 = vtanh.f32 %v637_v56  ;;  %v7420_v2 = vpop.f32.mrb[16].mxu1  ;;  %1034 = vadd.xlane.f32.xlu0 %v1033_v54  ;;  %v652_v6 = vadd.f32 %v7372_v1, %v7946_v15  ;;  %v8026_v25 = vsel %vm1020_vm1, %v965_v5, 0.0  ;;  %v997_v26 = vmul.f32 %v7546_v57, %v7963_v40 }
 0x120   : > { %v7550_v3 = vpop.eup %7549  ;;  %7569 = vtanh.f32 %v802_v60  ;;  %v646_v7 = vpop.f32.mrb[17].mxu0  ;;  %1037 = vadd.xlane.f32.xlu1 %v1036_v48  ;;  %v812_v17 = vadd.f32 %v7420_v2, %v7946_v15  ;;  %v8031_v31 = vsel %vm1020_vm1, %v964_v11, 0.0  ;;  %v996_v32 = vmul.f32 %v7548_v61, %v7963_v40 }
 0x121   : > { %v806_v8 = vpop.f32.mrb[17].mxu1  ;;  %v7552_v9 = vpop.eup %7551  ;;  %7571 = vtanh.f32 %v797_v0  ;;  %v647_v12 = vadd.f32 %v7946_v15, %v646_v7  ;;  %v967_v35 = vmul.f32 %v7550_v3, %v7963_v40  ;;  %v8044_v46 = vsel %vm1020_vm1, %v997_v26, 0.0 }
 0x122   : > { %v7554_v13 = vpop.eup %7553  ;;  %7573 = vtanh.f32 %v652_v6  ;;  %v807_v21 = vadd.f32 %v7946_v15, %v806_v8  ;;  %v7375_v22 = vpop.f32.mrb[18].mxu0  ;;  %v966_v36 = vmul.f32 %v7552_v9, %v7963_v40  ;;  %v8051_v52 = vsel %vm1020_vm1, %v996_v32, 0.0 }
 0x123   : > { %v7556_v18 = vpop.eup %7555  ;;  %7575 = vtanh.f32 %v647_v12  ;;  %v7423_v23 = vpop.f32.mrb[18].mxu1  ;;  %1130 = vadd.xlane.f32.xlu0 %v1129_v10  ;;  %v662_v27 = vadd.f32 %v7375_v22, %v7946_v15  ;;  %v999_v39 = vmul.f32 %v7554_v13, %v7963_v40  ;;  %v8058_v56 = vsel %vm1020_vm1, %v967_v35, 0.0 }
 0x124   : > { %v7558_v24 = vpop.eup %7557  ;;  %7577 = vtanh.f32 %v812_v17  ;;  %v656_v28 = vpop.f32.mrb[19].mxu0  ;;  %1133 = vadd.xlane.f32.xlu1 %v1132_v4  ;;  %v822_v37 = vadd.f32 %v7423_v23, %v7946_v15  ;;  %v998_v41 = vmul.f32 %v7556_v18, %v7963_v40  ;;  %v8061_v57 = vsel %vm1020_vm1, %v966_v36, 0.0 }
 0x125   : > { %v816_v29 = vpop.f32.mrb[19].mxu1  ;;  %v7560_v30 = vpop.eup %7559  ;;  %7579 = vtanh.f32 %v807_v21  ;;  %v657_v33 = vadd.f32 %v7946_v15, %v656_v28  ;;  %v969_v47 = vmul.f32 %v7558_v24, %v7963_v40  ;;  %v8067_v60 = vsel %vm1020_vm1, %v999_v39, 0.0 }
 0x126   : > { %v7562_v34 = vpop.eup %7561  ;;  %7581 = vtanh.f32 %v662_v27  ;;  %v817_v42 = vadd.f32 %v7946_v15, %v816_v29  ;;  %v7378_v43 = vpop.f32.mrb[20].mxu0  ;;  %v968_v53 = vmul.f32 %v7560_v30, %v7963_v40  ;;  %v8070_v61 = vsel %vm1020_vm1, %v998_v41, 0.0 }
 0x127   : > { %v7564_v38 = vpop.eup %7563  ;;  %7583 = vtanh.f32 %v657_v33  ;;  %v7426_v44 = vpop.f32.mrb[20].mxu1  ;;  %1040 = vadd.xlane.f32.xlu0 %v1039_v16  ;;  %v672_v48 = vadd.f32 %v7378_v43, %v7946_v15  ;;  %v8074_v2 = vsel %vm1020_vm1, %v969_v47, 0.0  ;;  %v8077_v3 = vmul.f32 %v7562_v34, %v7963_v40 }
 0x128   : > { %v8041_v45 = vpop.eup %7565  ;;  %7585 = vtanh.f32 %v822_v37  ;;  %v666_v49 = vpop.f32.mrb[21].mxu0  ;;  %1043 = vadd.xlane.f32.xlu1 %v1042_v14  ;;  %v832_v58 = vadd.f32 %v7426_v44, %v7946_v15  ;;  %v8082_v8 = vsel %vm1020_vm1, %v968_v53, 0.0  ;;  %v8087_v12 = vmul.f32 %v7564_v38, %v7963_v40 }
 0x129   : > { %v826_v50 = vpop.f32.mrb[21].mxu1  ;;  %v8048_v51 = vpop.eup %7567  ;;  %7587 = vtanh.f32 %v817_v42  ;;  %v667_v54 = vadd.f32 %v7946_v15, %v666_v49 }
 0x12a   : > { %v8055_v55 = vpop.eup %7569  ;;  %7589 = vtanh.f32 %v672_v48  ;;  %v827_v62 = vadd.f32 %v7946_v15, %v826_v50  ;;  %v7381_v63 = vpop.f32.mrb[22].mxu0 }
 0x12b   : > { %v8064_v59 = vpop.eup %7571  ;;  %7591 = vtanh.f32 %v667_v54  ;;  %v7429_v0 = vpop.f32.mrb[22].mxu1  ;;  %1136 = vadd.xlane.f32.xlu0 %v1135_v20  ;;  %v682_v4 = vadd.f32 %v7381_v63, %v7946_v15 }
 0x12c   : > { %v7574_v1 = vpop.eup %7573  ;;  %7593 = vtanh.f32 %v832_v58  ;;  %v676_v5 = vpop.f32.mrb[23].mxu0  ;;  %1139 = vadd.xlane.f32.xlu1 %v8021_v19  ;;  %v842_v14 = vadd.f32 %v7429_v0, %v7946_v15 }
 0x12d   : > { %v836_v6 = vpop.f32.mrb[23].mxu1  ;;  %v7576_v7 = vpop.eup %7575  ;;  %v973_v9 = vmul.f32 %v7574_v1, %v7963_v40  ;;  %7595 = vtanh.f32 %v827_v62  ;;  %v677_v10 = vadd.f32 %v7946_v15, %v676_v5 }
 0x12e   : > { %v7578_v11 = vpop.eup %7577  ;;  %v972_v13 = vmul.f32 %v7576_v7, %v7963_v40  ;;  %7597 = vtanh.f32 %v682_v4  ;;  %v837_v19 = vadd.f32 %v7946_v15, %v836_v6  ;;  %v7384_v20 = vpop.f32.mrb[24].mxu0 }
 0x12f   : > { %v7580_v16 = vpop.eup %7579  ;;  %v8092_v17 = vsel %vm1020_vm1, %v973_v9, 0.0  ;;  %v1005_v18 = vmul.f32 %v7578_v11, %v7963_v40  ;;  %7599 = vtanh.f32 %v677_v10  ;;  %v7432_v21 = vpop.f32.mrb[24].mxu1  ;;  %1046 = vadd.xlane.f32.xlu0 %v8031_v31  ;;  %v692_v26 = vadd.f32 %v7384_v20, %v7946_v15 }
 0x130   : > { %v7582_v22 = vpop.eup %7581  ;;  %v8098_v23 = vsel %vm1020_vm1, %v972_v13, 0.0  ;;  %v1004_v24 = vmul.f32 %v7580_v16, %v7963_v40  ;;  %7601 = vtanh.f32 %v842_v14  ;;  %v686_v27 = vpop.f32.mrb[25].mxu0  ;;  %1049 = vadd.xlane.f32.xlu1 %v8026_v25  ;;  %v852_v36 = vadd.f32 %v7432_v21, %v7946_v15 }
 0x131   : > { %v846_v28 = vpop.f32.mrb[25].mxu1  ;;  %v7584_v29 = vpop.eup %7583  ;;  %v8104_v30 = vsel %vm1020_vm1, %v1005_v18, 0.0  ;;  %v975_v32 = vmul.f32 %v7582_v22, %v7963_v40  ;;  %7603 = vtanh.f32 %v837_v19  ;;  %v687_v31 = vadd.f32 %v7946_v15, %v686_v27 }
 0x132   : > { %v7586_v33 = vpop.eup %7585  ;;  %v8109_v34 = vsel %vm1020_vm1, %v1004_v24, 0.0  ;;  %v974_v35 = vmul.f32 %v7584_v29, %v7963_v40  ;;  %7605 = vtanh.f32 %v692_v26  ;;  %v847_v39 = vadd.f32 %v7946_v15, %v846_v28  ;;  %v7387_v41 = vpop.f32.mrb[26].mxu0 }
 0x133   : > { %v7588_v37 = vpop.eup %7587  ;;  %v8114_v25 = vsel %vm1020_vm1, %v975_v32, 0.0  ;;  %v1007_v38 = vmul.f32 %v7586_v33, %v7963_v40  ;;  %7607 = vtanh.f32 %v687_v31  ;;  %v7435_v42 = vpop.f32.mrb[26].mxu1  ;;  %1142 = vadd.xlane.f32.xlu0 %v8051_v52  ;;  %v702_v48 = vadd.f32 %v7387_v41, %v7946_v15 }
 0x134   : > { %v7590_v43 = vpop.eup %7589  ;;  %v8120_v44 = vsel %vm1020_vm1, %v974_v35, 0.0  ;;  %v1006_v47 = vmul.f32 %v7588_v37, %v7963_v40  ;;  %7609 = vtanh.f32 %v852_v36  ;;  %v696_v49 = vpop.f32.mrb[27].mxu0  ;;  %1145 = vadd.xlane.f32.xlu1 %v8044_v46  ;;  %v862_v1 = vadd.f32 %v7435_v42, %v7946_v15 }
 0x135   : > { %v856_v50 = vpop.f32.mrb[27].mxu1  ;;  %v7592_v53 = vpop.eup %7591  ;;  %v8126_v54 = vsel %vm1020_vm1, %v1007_v38, 0.0  ;;  %v977_v58 = vmul.f32 %v7590_v43, %v7963_v40  ;;  %7611 = vtanh.f32 %v847_v39  ;;  %v697_v52 = vadd.f32 %v7946_v15, %v696_v49 }
 0x136   : > { %v7594_v62 = vpop.eup %7593  ;;  %v8131_v63 = vsel %vm1020_vm1, %v1006_v47, 0.0  ;;  %v976_v0 = vmul.f32 %v7592_v53, %v7963_v40  ;;  %7613 = vtanh.f32 %v702_v48  ;;  %v857_v6 = vadd.f32 %v7946_v15, %v856_v50  ;;  %v7390_v7 = vpop.f32.mrb[28].mxu0 }
 0x137   : > { %v7596_v4 = vpop.eup %7595  ;;  %v8136_v46 = vsel %vm1020_vm1, %v977_v58, 0.0  ;;  %v1009_v5 = vmul.f32 %v7594_v62, %v7963_v40  ;;  %7615 = vtanh.f32 %v697_v52  ;;  %v7438_v9 = vpop.f32.mrb[28].mxu1  ;;  %1052 = vadd.xlane.f32.xlu0 %v8061_v57  ;;  %v712_v14 = vadd.f32 %v7390_v7, %v7946_v15 }
 0x138   : > { %v7598_v10 = vpop.eup %7597  ;;  %v8142_v11 = vsel %vm1020_vm1, %v976_v0, 0.0  ;;  %v1008_v13 = vmul.f32 %v7596_v4, %v7963_v40  ;;  %7617 = vtanh.f32 %v862_v1  ;;  %v706_v16 = vpop.f32.mrb[29].mxu0  ;;  %1055 = vadd.xlane.f32.xlu1 %v8058_v56  ;;  %v872_v27 = vadd.f32 %v7438_v9, %v7946_v15 }
 0x139   : > { %v866_v18 = vpop.f32.mrb[29].mxu1  ;;  %v7600_v19 = vpop.eup %7599  ;;  %v8148_v20 = vsel %vm1020_vm1, %v1009_v5, 0.0  ;;  %v979_v21 = vmul.f32 %v7598_v10, %v7963_v40  ;;  %7619 = vtanh.f32 %v857_v6  ;;  %v707_v57 = vadd.f32 %v7946_v15, %v706_v16 }
 0x13a   : > { %v7602_v22 = vpop.eup %7601  ;;  %v8153_v24 = vsel %vm1020_vm1, %v1008_v13, 0.0  ;;  %v978_v26 = vmul.f32 %v7600_v19, %v7963_v40  ;;  %7621 = vtanh.f32 %v712_v14  ;;  %v867_v32 = vadd.f32 %v7946_v15, %v866_v18  ;;  %v7393_v31 = vpop.f32.mrb[30].mxu0 }
 0x13b   : > { %v7604_v28 = vpop.eup %7603  ;;  %v8158_v56 = vsel %vm1020_vm1, %v979_v21, 0.0  ;;  %v1011_v29 = vmul.f32 %v7602_v22, %v7963_v40  ;;  %7623 = vtanh.f32 %v707_v57  ;;  %v7441_v33 = vpop.f32.mrb[30].mxu1  ;;  %1148 = vadd.xlane.f32.xlu0 %v8070_v61  ;;  %v722_v38 = vadd.f32 %v7393_v31, %v7946_v15 }
 0x13c   : > { %v7606_v35 = vpop.eup %7605  ;;  %v8164_v36 = vsel %vm1020_vm1, %v978_v26, 0.0  ;;  %v1010_v37 = vmul.f32 %v7604_v28, %v7963_v40  ;;  %7625 = vtanh.f32 %v872_v27  ;;  %v716_v39 = vpop.f32.mrb[31].mxu0  ;;  %1151 = vadd.xlane.f32.xlu1 %v8067_v60  ;;  %v882_v53 = vadd.f32 %v7441_v33, %v7946_v15 }
 0x13d   : > { %v876_v41 = vpop.f32.mrb[31].mxu1  ;;  %v7608_v42 = vpop.eup %7607  ;;  %v8170_v43 = vsel %vm1020_vm1, %v1011_v29, 0.0  ;;  %v981_v47 = vmul.f32 %v7606_v35, %v7963_v40  ;;  %7627 = vtanh.f32 %v867_v32  ;;  %v717_v61 = vadd.f32 %v7946_v15, %v716_v39 }
 0x13e   : > { %v7610_v48 = vpop.eup %7609  ;;  %v8175_v49 = vsel %vm1020_vm1, %v1010_v37, 0.0  ;;  %v980_v50 = vmul.f32 %v7608_v42, %v7963_v40  ;;  %7629 = vtanh.f32 %v722_v38  ;;  %v877_v62 = vadd.f32 %v7946_v15, %v876_v41 }
 0x13f   : > { %v7612_v58 = vpop.eup %7611  ;;  %v8180_v60 = vsel %vm1020_vm1, %v981_v47, 0.0  ;;  %v1013_v52 = vmul.f32 %v7610_v48, %v7963_v40  ;;  %7631 = vtanh.f32 %v717_v61  ;;  %1058 = vadd.xlane.f32.xlu0 %v8082_v8  ;;  %v1153_v1 = vsel %vm1020_vm1, %v8087_v12, 0.0 }
 0x140   : > { %v7614_v0 = vpop.eup %7613  ;;  %v8188_v4 = vsel %vm1020_vm1, %v980_v50, 0.0  ;;  %v1012_v5 = vmul.f32 %v7612_v58, %v7963_v40  ;;  %7633 = vtanh.f32 %v882_v53  ;;  %1061 = vadd.xlane.f32.xlu1 %v8074_v2  ;;  %v970_v7 = vmul.f32 %v8048_v51, %v7963_v40 }
 0x141   : > { %v7616_v6 = vpop.eup %7615  ;;  %v8195_v15 = vsel %vm1020_vm1, %v1013_v52, 0.0  ;;  %v983_v8 = vmul.f32 %v7614_v0, %v7963_v40  ;;  %7635 = vtanh.f32 %v877_v62  ;;  %v1156_v12 = vsel %vm1020_vm1, %v8077_v3, 0.0 }
 0x142   : > { %v7618_v9 = vpop.eup %7617  ;;  %v971_v10 = vmul.f32 %v8041_v45, %v7963_v40  ;;  %v1189_v13 = vsel %vm1020_vm1, %v1012_v5, 0.0  ;;  %v982_v2 = vmul.f32 %v7616_v6, %v7963_v40  ;;  %v1063_v3 = vsel %vm1020_vm1, %v970_v7, 0.0 }
 0x143   : > { %v7620_v14 = vpop.eup %7619  ;;  %v1102_v51 = vsel %vm1020_vm1, %v983_v8, 0.0  ;;  %v1015_v16 = vmul.f32 %v7618_v9, %v7963_v40  ;;  %1154 = vadd.xlane.f32.xlu0 %v1153_v1  ;;  %v1002_v45 = vmul.f32 %v8064_v59, %v7963_v40  ;;  %v1003_v29 = vmul.f32 %v8055_v55, %v7963_v40 }
 0x144   : > { %v7622_v18 = vpop.eup %7621  ;;  %v1099_v19 = vsel %vm1020_vm1, %v982_v2, 0.0  ;;  %v1014_v21 = vmul.f32 %v7620_v14, %v7963_v40  ;;  %1157 = vadd.xlane.f32.xlu1 %v1156_v12  ;;  %v1066_v28 = vsel %vm1020_vm1, %v971_v10, 0.0 }
 0x145   : > { %v7624_v57 = vpop.eup %7623  ;;  %v1198_v22 = vsel %vm1020_vm1, %v1015_v16, 0.0  ;;  %v985_v26 = vmul.f32 %v7622_v18, %v7963_v40  ;;  %v1159_v42 = vsel %vm1020_vm1, %v1002_v45, 0.0  ;;  %v1162_v48 = vsel %vm1020_vm1, %v1003_v29, 0.0 }
 0x146   : > { %v7626_v27 = vpop.eup %7625  ;;  %v1195_v32 = vsel %vm1020_vm1, %v1014_v21, 0.0  ;;  %v984_v31 = vmul.f32 %v7624_v57, %v7963_v40 }
 0x147   : > { %v7628_v33 = vpop.eup %7627  ;;  %v1108_v35 = vsel %vm1020_vm1, %v985_v26, 0.0  ;;  %v1017_v37 = vmul.f32 %v7626_v27, %v7963_v40  ;;  %1064 = vadd.xlane.f32.xlu0 %v1063_v3 }
 0x148   : > { %v7630_v59 = vpop.eup %7629  ;;  %v1105_v38 = vsel %vm1020_vm1, %v984_v31, 0.0  ;;  %v1016_v39 = vmul.f32 %v7628_v33, %v7963_v40  ;;  %1067 = vadd.xlane.f32.xlu1 %v1066_v28 }
 0x149   : > { %v7632_v41 = vpop.eup %7631  ;;  %v1204_v55 = vsel %vm1020_vm1, %v1017_v37, 0.0  ;;  %v987_v47 = vmul.f32 %v7630_v59, %v7963_v40 }
 0x14a   : > { %v7634_v61 = vpop.eup %7633  ;;  %v1201_v50 = vsel %vm1020_vm1, %v1016_v39, 0.0  ;;  %v986_v53 = vmul.f32 %v7632_v41, %v7963_v40 }
 0x14b   : > { %v7636_v58 = vpop.eup %7635  ;;  %v1114_v52 = vsel %vm1020_vm1, %v987_v47, 0.0  ;;  %v1019_v62 = vmul.f32 %v7634_v61, %v7963_v40  ;;  %1160 = vadd.xlane.f32.xlu0 %v1159_v42 }
 0x14c   : > { %v1111_v0 = vsel %vm1020_vm1, %v986_v53, 0.0  ;;  %v1018_v1 = vmul.f32 %v7636_v58, %v7963_v40  ;;  %1163 = vadd.xlane.f32.xlu1 %v1162_v48  ;;  %v10197_v40 = vlaneseq }
 0x14d   : > { %v1210_v5 = vsel %vm1020_vm1, %v1019_v62, 0.0 }
 0x14e   : > { %v1207_v6 = vsel %vm1020_vm1, %v1018_v1, 0.0 }
 0x14f   : > { %1070 = vadd.xlane.f32.xlu0 %v8098_v23  ;;  %v7702_v23 = vmov 1966171168  }
 0x150   : > { %1073 = vadd.xlane.f32.xlu1 %v8092_v17  ;;  %v8254_v17 = vshrl.u32 %v10197_v40, 7 }
 0x153   : > { %1166 = vadd.xlane.f32.xlu0 %v8109_v34  ;;  %v8257_v34 = vsub.s32 0, %v8254_v17 }
 0x154   : > { %1169 = vadd.xlane.f32.xlu1 %v8104_v30  ;;  %v3404_v30 = vunpack.c.l.s4 %v7702_v23 }
 0x157   : > { %1076 = vadd.xlane.f32.xlu0 %v8120_v44  ;;  %v3405_v44 = vunpack.c.0.s8 %v3404_v30 }
 0x158   : > { %1079 = vadd.xlane.f32.xlu1 %v8114_v25  ;;  %v1217_v25 = vpop.permute.xlu0 %1216 }
 0x159   : > { %v8286_v7 = vsub.s32 %v3405_v44, %v8254_v17 }
 0x15b   : > { %1172 = vadd.xlane.f32.xlu0 %v8131_v63  ;;  %v8263_v63 = vsub.s32 1, %v8254_v17  ;;  %10202 = vst [vmem:[#allocation6_spill] sm:$0xff] %v8286_v7 }
 0x15c   : > { %1175 = vadd.xlane.f32.xlu1 %v8126_v54  ;;  %v8260_v54 = vrot.slane %v1217_v25, %v8257_v34 }
 0x15f   : > { %1082 = vadd.xlane.f32.xlu0 %v8142_v11  ;;  %v8269_v11 = vsub.s32 3, %v8254_v17 }
 0x160   : > { %1085 = vadd.xlane.f32.xlu1 %v8136_v46  ;;  %v8266_v46 = vsub.s32 2, %v8254_v17 }
 0x163   : > { %1178 = vadd.xlane.f32.xlu0 %v8153_v24  ;;  %v8272_v24 = vsub.s32 4, %v8254_v17 }
 0x164   : > { %1181 = vadd.xlane.f32.xlu1 %v8148_v20 }
 0x167   : > { %1088 = vadd.xlane.f32.xlu0 %v8164_v36  ;;  %v8278_v36 = vsub.s32 6, %v8254_v17 }
 0x168   : > { %1091 = vadd.xlane.f32.xlu1 %v8158_v56  ;;  %v8275_v56 = vsub.s32 5, %v8254_v17 }
 0x16b   : > { %1184 = vadd.xlane.f32.xlu0 %v8175_v49 }
 0x16c   : > { %1187 = vadd.xlane.f32.xlu1 %v8170_v43  ;;  %v8281_v43 = vsub.s32 7, %v8254_v17 }
 0x16f   : > { %1094 = vadd.xlane.f32.xlu0 %v8188_v4 }
 0x170   : > { %1097 = vadd.xlane.f32.xlu1 %v8180_v60 }
 0x173   : > { %1190 = vadd.xlane.f32.xlu0 %v1189_v13 }
 0x174   : > { %1193 = vadd.xlane.f32.xlu1 %v8195_v15 }
 0x177   : > { %1100 = vadd.xlane.f32.xlu0 %v1099_v19 }
 0x178   : > { %1103 = vadd.xlane.f32.xlu1 %v1102_v51 }
 0x17b   : > { %1196 = vadd.xlane.f32.xlu0 %v1195_v32 }
 0x17c   : > { %1199 = vadd.xlane.f32.xlu1 %v1198_v22 }
 0x17f   : > { %1106 = vadd.xlane.f32.xlu0 %v1105_v38 }
 0x180   : > { %1109 = vadd.xlane.f32.xlu1 %v1108_v35 }
 0x183   : > { %1202 = vadd.xlane.f32.xlu0 %v1201_v50 }
 0x184   : > { %1205 = vadd.xlane.f32.xlu1 %v1204_v55 }
 0x187   : > { %1112 = vadd.xlane.f32.xlu0 %v1111_v0 }
 0x188   : > { %1115 = vadd.xlane.f32.xlu1 %v1114_v52 }
 0x18b   : > { %1208 = vadd.xlane.f32.xlu0 %v1207_v6 }
 0x18c   : > { %1211 = vadd.xlane.f32.xlu1 %v1210_v5 }
 0x19c   : > { %v1026_v20 = vpop.xlane.xlu0 %1025 }
 0x19d   : > { %v1122_v49 = vpop.xlane.xlu1 %1121  ;;  %v1224_v60 = vadd.f32 %v8260_v54, %v1026_v20 }
 0x19e   : > { %v1256_v4 = vadd.f32 %v8260_v54, %v1122_v49 }
 0x19f   : > { %v1386_v15 = vrot.slane %v1224_v60, %v8257_v34  ;;  %v1390_v8 = vrot.slane %v1224_v60, %v8263_v63  ;;  %v1394_v9 = vrot.slane %v1224_v60, %v8266_v46  ;;  %v1398_v12 = vrot.slane %v1224_v60, %v8269_v11 }
 0x1a0   : > { %v1023_v10 = vpop.xlane.xlu0 %1022  ;;  %v1402_v13 = vrot.slane %v1224_v60, %v8272_v24  ;;  %v1406_v2 = vrot.slane %v1224_v60, %v8275_v56  ;;  %v1410_v14 = vrot.slane %v1224_v60, %v8278_v36  ;;  %v1414_v51 = vrot.slane %v1224_v60, %v8281_v43 }
 0x1a1   : > { %v1032_v16 = vpop.xlane.xlu1 %1031  ;;  %v1223_v18 = vadd.f32 %v8260_v54, %v1023_v10  ;;  %v3448_v19 = vcombine.low %v1386_v15, %v1390_v8  ;;  %v3449_v21 = vcombine.low %v1394_v9, %v1398_v12  ;;  %v2410_v45 = vrot.slane %v1256_v4, %v8257_v34 }
 0x1a2   : > { %v3450_v57 = vcombine.low %v1402_v13, %v1406_v2  ;;  %v3451_v3 = vcombine.low %v1410_v14, %v1414_v51  ;;  %v2414_v22 = vrot.slane %v1256_v4, %v8263_v63  ;;  %v2418_v28 = vrot.slane %v1256_v4, %v8266_v46 }
 0x1a3   : > { %v3458_v26 = vrot.slane %v3448_v19, %v8286_v7  ;;  %v3465_v27 = vrot.slane %v3449_v21, %v8286_v7  ;;  %v2422_v29 = vrot.slane %v1256_v4, %v8269_v11  ;;  %v2426_v33 = vrot.slane %v1256_v4, %v8272_v24 }
 0x1a4   : > { %v3472_v32 = vrot.slane %v3450_v57, %v8286_v7  ;;  %v3479_v31 = vrot.slane %v3451_v3, %v8286_v7  ;;  %v2430_v35 = vrot.slane %v1256_v4, %v8275_v56  ;;  %v2434_v59 = vrot.slane %v1256_v4, %v8278_v36  ;;  %v1119_v39 = vpop.xlane.xlu0 %1118 }
 0x1a5   : > { %v3480_v37 = vcombine.low %v3458_v26, %v3465_v27  ;;  %v2438_v38 = vrot.slane %v1256_v4, %v8281_v43  ;;  %v5016_v42 = vcombine.low %v2410_v45, %v2414_v22  ;;  %v5017_v55 = vcombine.low %v2418_v28, %v2422_v29  ;;  %v1128_v47 = vpop.xlane.xlu1 %1127 }
 0x1a6   : > { %v3481_v41 = vcombine.low %v3472_v32, %v3479_v31  ;;  %v5018_v48 = vcombine.low %v2426_v33, %v2430_v35  ;;  %v1354_v53 = vrot.slane %v1223_v18, %v8257_v34  ;;  %v1358_v0 = vrot.slane %v1223_v18, %v8263_v63 }
 0x1a7   : > { %v3488_v61 = vrot.slane %v3480_v37, %v8286_v7  ;;  %v5019_v50 = vcombine.low %v2434_v59, %v2438_v38  ;;  %v5026_v52 = vrot.slane %v5016_v42, %v8286_v7  ;;  %v5033_v62 = vrot.slane %v5017_v55, %v8286_v7 }
 0x1a8   : > { %v3495_v58 = vrot.slane %v3481_v41, %v8286_v7  ;;  %v5040_v1 = vrot.slane %v5018_v48, %v8286_v7  ;;  %v1362_v6 = vrot.slane %v1223_v18, %v8266_v46  ;;  %v1255_v23 = vadd.f32 %v8260_v54, %v1119_v39  ;;  %v1125_v15 = vpop.xlane.xlu0 %1124 }
 0x1a9   : > { %v5047_v5 = vrot.slane %v5019_v50, %v8286_v7  ;;  %v5048_v25 = vcombine.low %v5026_v52, %v5033_v62  ;;  %v1366_v44 = vrot.slane %v1223_v18, %v8269_v11  ;;  %v1370_v49 = vrot.slane %v1223_v18, %v8272_v24  ;;  %v1029_v14 = vpop.xlane.xlu1 %1028 }
 0x1aa   : > { %v3496_v30 = vcombine.low %v3488_v61, %v3495_v58  ;;  %v1374_v60 = vrot.slane %v1223_v18, %v8275_v56  ;;  %v1378_v4 = vrot.slane %v1223_v18, %v8278_v36  ;;  %v1382_v9 = vrot.slane %v1223_v18, %v8281_v43 }
 0x1ab   : > { %v5049_v20 = vcombine.low %v5040_v1, %v5047_v5  ;;  %v5056_v8 = vrot.slane %v5048_v25, %v8286_v7  ;;  %v3399_v12 = vcombine.low %v1354_v53, %v1358_v0  ;;  %v3400_v10 = vcombine.low %v1362_v6, %v1366_v44 }
 0x1ac   : > { %6539 = vperm.xlu1 %7508, %v3496_v30   ;;  %v1226_v13 = vadd.f32 %v8260_v54, %v1032_v16  ;;  %v8327_v2 = vadd.f32 %v8260_v54, %v1128_v47  ;;  %v3401_v19 = vcombine.low %v1370_v49, %v1374_v60  ;;  %v3402_v21 = vcombine.low %v1378_v4, %v1382_v9  ;;  %v1035_v38 = vpop.xlane.xlu0 %1034 }
 0x1ad   : > { %v5063_v51 = vrot.slane %v5049_v20, %v8286_v7  ;;  %v3409_v57 = vrot.slane %v3399_v12, %v8286_v7  ;;  %v3416_v3 = vrot.slane %v3400_v10, %v8286_v7  ;;  %v2378_v45 = vrot.slane %v1255_v23, %v8257_v34  ;;  %v1038_v55 = vpop.xlane.xlu1 %1037 }
 0x1ae   : > { %v3423_v18 = vrot.slane %v3401_v19, %v8286_v7  ;;  %v2382_v26 = vrot.slane %v1255_v23, %v8263_v63  ;;  %v2386_v16 = vrot.slane %v1255_v23, %v8266_v46  ;;  %v3430_v27 = vrot.slane %v3402_v21, %v8286_v7 }
 0x1af   : > { %v5064_v22 = vcombine.low %v5056_v8, %v5063_v51  ;;  %v3431_v28 = vcombine.low %v3409_v57, %v3416_v3  ;;  %v2390_v29 = vrot.slane %v1255_v23, %v8269_v11  ;;  %v2394_v32 = vrot.slane %v1255_v23, %v8272_v24 }
 0x1b0   : > { %v8340_v31 = vadd.f32 %v8260_v54, %v1125_v15  ;;  %v2398_v33 = vrot.slane %v1255_v23, %v8275_v56  ;;  %v2402_v35 = vrot.slane %v1255_v23, %v8278_v36  ;;  %v2406_v37 = vrot.slane %v1255_v23, %v8281_v43  ;;  %v1131_v21 = vpop.xlane.xlu0 %1130 }
 0x1b1   : > { %6635 = vperm.xlu1 %7508, %v5064_v22   ;;  %v8346_v59 = vadd.f32 %v8260_v54, %v1029_v14  ;;  %v3432_v39 = vcombine.low %v3423_v18, %v3430_v27  ;;  %v3439_v41 = vrot.slane %v3431_v28, %v8286_v7  ;;  %v4967_v42 = vcombine.low %v2378_v45, %v2382_v26  ;;  %v1134_v22 = vpop.xlane.xlu1 %1133 }
 0x1b2   : > { %v4968_v47 = vcombine.low %v2386_v16, %v2390_v29  ;;  %v4969_v61 = vcombine.low %v2394_v32, %v2398_v33  ;;  %v4970_v48 = vcombine.low %v2402_v35, %v2406_v37  ;;  %v1450_v50 = vrot.slane %v1226_v13, %v8257_v34 }
 0x1b3   : > { %v3446_v53 = vrot.slane %v3432_v39, %v8286_v7  ;;  %v4977_v58 = vrot.slane %v4967_v42, %v8286_v7  ;;  %v1454_v52 = vrot.slane %v1226_v13, %v8263_v63  ;;  %v1458_v62 = vrot.slane %v1226_v13, %v8266_v46 }
 0x1b4   : > { %v8355_v0 = vadd.f32 %v8260_v54, %v1035_v38  ;;  %v4984_v1 = vrot.slane %v4968_v47, %v8286_v7  ;;  %v4991_v5 = vrot.slane %v4969_v61, %v8286_v7  ;;  %v4998_v6 = vrot.slane %v4970_v48, %v8286_v7 }
 0x1b5   : > { %v8361_v23 = vadd.f32 %v8260_v54, %v1038_v55  ;;  %v3447_v30 = vcombine.low %v3439_v41, %v3446_v53  ;;  %v1462_v25 = vrot.slane %v1226_v13, %v8269_v11  ;;  %v1466_v44 = vrot.slane %v1226_v13, %v8272_v24 }
 0x1b6   : > { %v4999_v20 = vcombine.low %v4977_v58, %v4984_v1  ;;  %v5000_v49 = vcombine.low %v4991_v5, %v4998_v6  ;;  %v1470_v60 = vrot.slane %v1226_v13, %v8275_v56  ;;  %v1474_v4 = vrot.slane %v1226_v13, %v8278_v36  ;;  %v1044_v1 = vpop.xlane.xlu1 %1043  ;;  %v1041_v5 = vpop.xlane.xlu0 %1040 }
 0x1b7   : > { %6536 = vperm.xlu1 %7508, %v3447_v30   ;;  %v1478_v15 = vrot.slane %v1226_v13, %v8281_v43  ;;  %v3546_v8 = vcombine.low %v1450_v50, %v1454_v52  ;;  %v3547_v9 = vcombine.low %v1458_v62, %v1462_v25  ;;  %v2442_v12 = vrot.slane %v8340_v31, %v8257_v34 }
 0x1b8   : > { %v5007_v10 = vrot.slane %v4999_v20, %v8286_v7  ;;  %v5014_v14 = vrot.slane %v5000_v49, %v8286_v7  ;;  %v3548_v51 = vcombine.low %v1466_v44, %v1470_v60  ;;  %v2446_v19 = vrot.slane %v8340_v31, %v8263_v63 }
 0x1b9   : > { %v3549_v57 = vcombine.low %v1474_v4, %v1478_v15  ;;  %v3556_v3 = vrot.slane %v3546_v8, %v8286_v7  ;;  %v3563_v45 = vrot.slane %v3547_v9, %v8286_v7  ;;  %v2450_v13 = vrot.slane %v8340_v31, %v8266_v46 }
 0x1ba   : > { %v5015_v18 = vcombine.low %v5007_v10, %v5014_v14  ;;  %v3570_v26 = vrot.slane %v3548_v51, %v8286_v7  ;;  %v2454_v16 = vrot.slane %v8340_v31, %v8269_v11  ;;  %v2458_v27 = vrot.slane %v8340_v31, %v8272_v24 }
 0x1bb   : > { %v3577_v28 = vrot.slane %v3549_v57, %v8286_v7  ;;  %v3578_v29 = vcombine.low %v3556_v3, %v3563_v45  ;;  %v2462_v32 = vrot.slane %v8340_v31, %v8275_v56  ;;  %v2466_v33 = vrot.slane %v8340_v31, %v8278_v36 }
 0x1bc   : > { %v8389_v35 = vadd.f32 %v8260_v54, %v1131_v21  ;;  %6632 = vperm.xlu0 %7507, %v5015_v18   ;;  %v2470_v37 = vrot.slane %v8340_v31, %v8281_v43  ;;  %v5065_v38 = vcombine.low %v2442_v12, %v2446_v19  ;;  %v5066_v39 = vcombine.low %v2450_v13, %v2454_v16 }
 0x1bd   : > { %v8394_v41 = vadd.f32 %v8260_v54, %v1134_v22  ;;  %v3579_v42 = vcombine.low %v3570_v26, %v3577_v28  ;;  %v3586_v55 = vrot.slane %v3578_v29, %v8286_v7  ;;  %v5067_v47 = vcombine.low %v2458_v27, %v2462_v32 }
 0x1be   : > { %v5068_v61 = vcombine.low %v2466_v33, %v2470_v37  ;;  %v5075_v48 = vrot.slane %v5065_v38, %v8286_v7  ;;  %v5082_v50 = vrot.slane %v5066_v39, %v8286_v7  ;;  %v2474_v53 = vrot.slane %v8327_v2, %v8257_v34 }
 0x1bf   : > { %v3593_v58 = vrot.slane %v3579_v42, %v8286_v7  ;;  %v5089_v31 = vrot.slane %v5067_v47, %v8286_v7  ;;  %v2478_v52 = vrot.slane %v8327_v2, %v8263_v63  ;;  %v2482_v62 = vrot.slane %v8327_v2, %v8266_v46 }
 0x1c0   : > { %v5096_v6 = vrot.slane %v5068_v61, %v8286_v7  ;;  %v5097_v30 = vcombine.low %v5075_v48, %v5082_v50  ;;  %v2486_v25 = vrot.slane %v8327_v2, %v8269_v11  ;;  %v2490_v44 = vrot.slane %v8327_v2, %v8272_v24 }
 0x1c1   : > { %v3594_v20 = vcombine.low %v3586_v55, %v3593_v58  ;;  %v2494_v49 = vrot.slane %v8327_v2, %v8275_v56  ;;  %v2498_v60 = vrot.slane %v8327_v2, %v8278_v36  ;;  %v2502_v4 = vrot.slane %v8327_v2, %v8281_v43 }
 0x1c2   : > { %v5098_v15 = vcombine.low %v5089_v31, %v5096_v6  ;;  %v5105_v8 = vrot.slane %v5097_v30, %v8286_v7  ;;  %v5114_v9 = vcombine.low %v2474_v53, %v2478_v52  ;;  %v5115_v12 = vcombine.low %v2482_v62, %v2486_v25  ;;  %v1140_v53 = vpop.xlane.xlu1 %1139  ;;  %v1137_v62 = vpop.xlane.xlu0 %1136 }
 0x1c3   : > { %v8420_v10 = vadd.f32 %v8260_v54, %v1044_v1  ;;  %v8423_v14 = vadd.f32 %v8260_v54, %v1041_v5  ;;  %6545 = vperm.xlu1 %7508, %v3594_v20   ;;  %v5116_v51 = vcombine.low %v2490_v44, %v2494_v49  ;;  %v5117_v19 = vcombine.low %v2498_v60, %v2502_v4 }
 0x1c4   : > { %v5112_v21 = vrot.slane %v5098_v15, %v8286_v7  ;;  %v5124_v57 = vrot.slane %v5114_v9, %v8286_v7  ;;  %v5131_v2 = vrot.slane %v5115_v12, %v8286_v7  ;;  %v1418_v3 = vrot.slane %v8346_v59, %v8257_v34 }
 0x1c5   : > { %v5138_v45 = vrot.slane %v5116_v51, %v8286_v7  ;;  %v5145_v13 = vrot.slane %v5117_v19, %v8286_v7  ;;  %v1422_v22 = vrot.slane %v8346_v59, %v8263_v63  ;;  %v1426_v18 = vrot.slane %v8346_v59, %v8266_v46 }
 0x1c6   : > { %v5113_v26 = vcombine.low %v5105_v8, %v5112_v21  ;;  %v5146_v16 = vcombine.low %v5124_v57, %v5131_v2  ;;  %v1430_v27 = vrot.slane %v8346_v59, %v8269_v11  ;;  %v1434_v28 = vrot.slane %v8346_v59, %v8272_v24 }
 0x1c7   : > { %v5147_v29 = vcombine.low %v5138_v45, %v5145_v13  ;;  %v1438_v32 = vrot.slane %v8346_v59, %v8275_v56  ;;  %v1442_v33 = vrot.slane %v8346_v59, %v8278_v36  ;;  %v1446_v37 = vrot.slane %v8346_v59, %v8281_v43 }
 0x1c8   : > { %6638 = vperm.xlu0 %7507, %v5113_v26   ;;  %v5154_v38 = vrot.slane %v5146_v16, %v8286_v7  ;;  %v3497_v39 = vcombine.low %v1418_v3, %v1422_v22  ;;  %v3498_v42 = vcombine.low %v1426_v18, %v1430_v27  ;;  %v2506_v55 = vrot.slane %v8389_v35, %v8257_v34  ;;  %v1050_v3 = vpop.xlane.xlu1 %1049  ;;  %v1047_v26 = vpop.xlane.xlu0 %1046 }
 0x1c9   : > { %v5161_v47 = vrot.slane %v5147_v29, %v8286_v7  ;;  %v3499_v61 = vcombine.low %v1434_v28, %v1438_v32  ;;  %v3500_v48 = vcombine.low %v1442_v33, %v1446_v37  ;;  %v2510_v50 = vrot.slane %v8389_v35, %v8263_v63 }
 0x1ca   : > { %v3507_v58 = vrot.slane %v3497_v39, %v8286_v7  ;;  %v3514_v59 = vrot.slane %v3498_v42, %v8286_v7  ;;  %v2514_v31 = vrot.slane %v8389_v35, %v8266_v46  ;;  %v2518_v52 = vrot.slane %v8389_v35, %v8269_v11 }
 0x1cb   : > { %v5162_v1 = vcombine.low %v5154_v38, %v5161_v47  ;;  %v3521_v5 = vrot.slane %v3499_v61, %v8286_v7  ;;  %v3528_v6 = vrot.slane %v3500_v48, %v8286_v7  ;;  %v2522_v30 = vrot.slane %v8389_v35, %v8272_v24 }
 0x1cc   : > { %v3529_v25 = vcombine.low %v3507_v58, %v3514_v59  ;;  %v2526_v44 = vrot.slane %v8389_v35, %v8275_v56  ;;  %v2530_v20 = vrot.slane %v8389_v35, %v8278_v36  ;;  %v2534_v49 = vrot.slane %v8389_v35, %v8281_v43 }
 0x1cd   : > { %v8469_v60 = vadd.f32 %v8260_v54, %v1140_v53  ;;  %6641 = vperm.xlu1 %7508, %v5162_v1   ;;  %v3530_v4 = vcombine.low %v3521_v5, %v3528_v6  ;;  %v5163_v15 = vcombine.low %v2506_v55, %v2510_v50  ;;  %v5164_v8 = vcombine.low %v2514_v31, %v2518_v52 }
 0x1ce   : > { %v8472_v9 = vadd.f32 %v8260_v54, %v1137_v62  ;;  %v3537_v12 = vrot.slane %v3529_v25, %v8286_v7  ;;  %v5165_v51 = vcombine.low %v2522_v30, %v2526_v44  ;;  %v5166_v19 = vcombine.low %v2530_v20, %v2534_v49 }
 0x1cf   : > { %v3544_v21 = vrot.slane %v3530_v4, %v8286_v7  ;;  %v5173_v57 = vrot.slane %v5163_v15, %v8286_v7  ;;  %v5180_v35 = vrot.slane %v5164_v8, %v8286_v7  ;;  %v1514_v2 = vrot.slane %v8361_v23, %v8257_v34 }
 0x1d0   : > { %v5187_v45 = vrot.slane %v5165_v51, %v8286_v7  ;;  %v5194_v13 = vrot.slane %v5166_v19, %v8286_v7  ;;  %v1518_v22 = vrot.slane %v8361_v23, %v8263_v63  ;;  %v1522_v18 = vrot.slane %v8361_v23, %v8266_v46 }
 0x1d1   : > { %v3545_v16 = vcombine.low %v3537_v12, %v3544_v21  ;;  %v5195_v27 = vcombine.low %v5173_v57, %v5180_v35  ;;  %v1526_v28 = vrot.slane %v8361_v23, %v8269_v11  ;;  %v1530_v29 = vrot.slane %v8361_v23, %v8272_v24 }
 0x1d2   : > { %v5196_v32 = vcombine.low %v5187_v45, %v5194_v13  ;;  %v1534_v33 = vrot.slane %v8361_v23, %v8275_v56  ;;  %v1538_v37 = vrot.slane %v8361_v23, %v8278_v36  ;;  %v1542_v38 = vrot.slane %v8361_v23, %v8281_v43 }
 0x1d3   : > { %v8497_v39 = vadd.f32 %v8260_v54, %v1050_v3  ;;  %6542 = vperm.xlu1 %7508, %v3545_v16   ;;  %v5203_v42 = vrot.slane %v5195_v27, %v8286_v7  ;;  %v3644_v55 = vcombine.low %v1514_v2, %v1518_v22  ;;  %v3645_v47 = vcombine.low %v1522_v18, %v1526_v28  ;;  %v1146_v3 = vpop.xlane.xlu1 %1145  ;;  %v1143_v18 = vpop.xlane.xlu0 %1142 }
 0x1d4   : > { %v8501_v61 = vadd.f32 %v8260_v54, %v1047_v26  ;;  %v5210_v48 = vrot.slane %v5196_v32, %v8286_v7  ;;  %v3646_v50 = vcombine.low %v1530_v29, %v1534_v33  ;;  %v3647_v53 = vcombine.low %v1538_v37, %v1542_v38 }
 0x1d5   : > { %v3654_v58 = vrot.slane %v3644_v55, %v8286_v7  ;;  %v3661_v59 = vrot.slane %v3645_v47, %v8286_v7  ;;  %v2538_v23 = vrot.slane %v8394_v41, %v8257_v34  ;;  %v2542_v31 = vrot.slane %v8394_v41, %v8263_v63 }
 0x1d6   : > { %v5211_v52 = vcombine.low %v5203_v42, %v5210_v48  ;;  %v3668_v62 = vrot.slane %v3646_v50, %v8286_v7  ;;  %v3675_v1 = vrot.slane %v3647_v53, %v8286_v7  ;;  %v2546_v5 = vrot.slane %v8394_v41, %v8266_v46 }
 0x1d7   : > { %v3676_v6 = vcombine.low %v3654_v58, %v3661_v59  ;;  %v2550_v30 = vrot.slane %v8394_v41, %v8269_v11  ;;  %v2554_v25 = vrot.slane %v8394_v41, %v8272_v24  ;;  %v2558_v44 = vrot.slane %v8394_v41, %v8275_v56 }
 0x1d8   : > { %6644 = vperm.xlu0 %7507, %v5211_v52   ;;  %v3677_v20 = vcombine.low %v3668_v62, %v3675_v1  ;;  %v2562_v49 = vrot.slane %v8394_v41, %v8278_v36  ;;  %v2566_v4 = vrot.slane %v8394_v41, %v8281_v43  ;;  %v5212_v15 = vcombine.low %v2538_v23, %v2542_v31 }
 0x1d9   : > { %v3684_v8 = vrot.slane %v3676_v6, %v8286_v7  ;;  %v5213_v12 = vcombine.low %v2546_v5, %v2550_v30  ;;  %v5214_v51 = vcombine.low %v2554_v25, %v2558_v44  ;;  %v2570_v19 = vrot.slane %v8472_v9, %v8257_v34 }
 0x1da   : > { %v3691_v21 = vrot.slane %v3677_v20, %v8286_v7  ;;  %v5215_v57 = vcombine.low %v2562_v49, %v2566_v4  ;;  %v5222_v35 = vrot.slane %v5212_v15, %v8286_v7  ;;  %v2574_v2 = vrot.slane %v8472_v9, %v8263_v63 }
 0x1db   : > { %v5229_v45 = vrot.slane %v5213_v12, %v8286_v7  ;;  %v5236_v41 = vrot.slane %v5214_v51, %v8286_v7  ;;  %v2578_v13 = vrot.slane %v8472_v9, %v8266_v46  ;;  %v2582_v22 = vrot.slane %v8472_v9, %v8269_v11 }
 0x1dc   : > { %v3692_v26 = vcombine.low %v3684_v8, %v3691_v21  ;;  %v5243_v16 = vrot.slane %v5215_v57, %v8286_v7  ;;  %v2586_v27 = vrot.slane %v8472_v9, %v8272_v24  ;;  %v2590_v28 = vrot.slane %v8472_v9, %v8275_v56 }
 0x1dd   : > { %v5244_v29 = vcombine.low %v5222_v35, %v5229_v45  ;;  %v2594_v32 = vrot.slane %v8472_v9, %v8278_v36  ;;  %v2598_v33 = vrot.slane %v8472_v9, %v8281_v43  ;;  %v5261_v37 = vcombine.low %v2570_v19, %v2574_v2 }
 0x1de   : > { %v8547_v38 = vadd.f32 %v8260_v54, %v1146_v3  ;;  %6551 = vperm.xlu1 %7508, %v3692_v26   ;;  %v5245_v42 = vcombine.low %v5236_v41, %v5243_v16  ;;  %v5262_v55 = vcombine.low %v2578_v13, %v2582_v22  ;;  %v5263_v47 = vcombine.low %v2586_v27, %v2590_v28  ;;  %v1056_v3 = vpop.xlane.xlu1 %1055  ;;  %v1053_v22 = vpop.xlane.xlu0 %1052 }
 0x1df   : > { %v8550_v48 = vadd.f32 %v8260_v54, %v1143_v18  ;;  %v5252_v50 = vrot.slane %v5244_v29, %v8286_v7  ;;  %v5264_v53 = vcombine.low %v2594_v32, %v2598_v33  ;;  %v5271_v58 = vrot.slane %v5261_v37, %v8286_v7 }
 0x1e0   : > { %v5259_v59 = vrot.slane %v5245_v42, %v8286_v7  ;;  %v5278_v9 = vrot.slane %v5262_v55, %v8286_v7  ;;  %v5285_v23 = vrot.slane %v5263_v47, %v8286_v7  ;;  %v1482_v31 = vrot.slane %v8355_v0, %v8257_v34 }
 0x1e1   : > { %v5292_v52 = vrot.slane %v5264_v53, %v8286_v7  ;;  %v1486_v62 = vrot.slane %v8355_v0, %v8263_v63  ;;  %v1490_v1 = vrot.slane %v8355_v0, %v8266_v46  ;;  %v1494_v5 = vrot.slane %v8355_v0, %v8269_v11 }
 0x1e2   : > { %v5260_v6 = vcombine.low %v5252_v50, %v5259_v59  ;;  %v5293_v30 = vcombine.low %v5271_v58, %v5278_v9  ;;  %v1498_v25 = vrot.slane %v8355_v0, %v8272_v24  ;;  %v1502_v44 = vrot.slane %v8355_v0, %v8275_v56 }
 0x1e3   : > { %v5294_v20 = vcombine.low %v5285_v23, %v5292_v52  ;;  %v1506_v49 = vrot.slane %v8355_v0, %v8278_v36  ;;  %v1510_v4 = vrot.slane %v8355_v0, %v8281_v43  ;;  %v3595_v15 = vcombine.low %v1482_v31, %v1486_v62 }
 0x1e4   : > { %6647 = vperm.xlu1 %7508, %v5260_v6   ;;  %v5301_v8 = vrot.slane %v5293_v30, %v8286_v7  ;;  %v3596_v12 = vcombine.low %v1490_v1, %v1494_v5  ;;  %v3597_v51 = vcombine.low %v1498_v25, %v1502_v44  ;;  %v1610_v19 = vrot.slane %v8501_v61, %v8257_v34 }
 0x1e5   : > { %v5308_v21 = vrot.slane %v5294_v20, %v8286_v7  ;;  %v3598_v57 = vcombine.low %v1506_v49, %v1510_v4  ;;  %v3605_v35 = vrot.slane %v3595_v15, %v8286_v7  ;;  %v1614_v2 = vrot.slane %v8501_v61, %v8263_v63 }
 0x1e6   : > { %v3612_v0 = vrot.slane %v3596_v12, %v8286_v7  ;;  %v3619_v45 = vrot.slane %v3597_v51, %v8286_v7  ;;  %v1618_v41 = vrot.slane %v8501_v61, %v8266_v46  ;;  %v1622_v13 = vrot.slane %v8501_v61, %v8269_v11 }
 0x1e7   : > { %v5309_v18 = vcombine.low %v5301_v8, %v5308_v21  ;;  %v3626_v26 = vrot.slane %v3598_v57, %v8286_v7  ;;  %v1626_v16 = vrot.slane %v8501_v61, %v8272_v24  ;;  %v1630_v27 = vrot.slane %v8501_v61, %v8275_v56 }
 0x1e8   : > { %v3627_v28 = vcombine.low %v3605_v35, %v3612_v0  ;;  %v1634_v29 = vrot.slane %v8501_v61, %v8278_v36  ;;  %v1638_v32 = vrot.slane %v8501_v61, %v8281_v43  ;;  %v3791_v33 = vcombine.low %v1610_v19, %v1614_v2 }
 0x1e9   : > { %v8597_v37 = vadd.f32 %v8260_v54, %v1056_v3  ;;  %6650 = vperm.xlu0 %7507, %v5309_v18   ;;  %v3628_v42 = vcombine.low %v3619_v45, %v3626_v26  ;;  %v3792_v55 = vcombine.low %v1618_v41, %v1622_v13  ;;  %v3793_v47 = vcombine.low %v1626_v16, %v1630_v27  ;;  %v1152_v3 = vpop.xlane.xlu1 %1151  ;;  %v1149_v13 = vpop.xlane.xlu0 %1148 }
 0x1ea   : > { %v8600_v50 = vadd.f32 %v8260_v54, %v1053_v22  ;;  %v3635_v53 = vrot.slane %v3627_v28, %v8286_v7  ;;  %v3794_v58 = vcombine.low %v1634_v29, %v1638_v32  ;;  %v3801_v59 = vrot.slane %v3791_v33, %v8286_v7 }
 0x1eb   : > { %v3642_v9 = vrot.slane %v3628_v42, %v8286_v7  ;;  %v3808_v61 = vrot.slane %v3792_v55, %v8286_v7  ;;  %v3815_v23 = vrot.slane %v3793_v47, %v8286_v7  ;;  %v1578_v31 = vrot.slane %v8420_v10, %v8257_v34 }
 0x1ec   : > { %v3822_v52 = vrot.slane %v3794_v58, %v8286_v7  ;;  %v1582_v62 = vrot.slane %v8420_v10, %v8263_v63  ;;  %v1586_v1 = vrot.slane %v8420_v10, %v8266_v46  ;;  %v1590_v5 = vrot.slane %v8420_v10, %v8269_v11 }
 0x1ed   : > { %v3643_v6 = vcombine.low %v3635_v53, %v3642_v9  ;;  %v3823_v30 = vcombine.low %v3801_v59, %v3808_v61  ;;  %v1594_v25 = vrot.slane %v8420_v10, %v8272_v24  ;;  %v1598_v44 = vrot.slane %v8420_v10, %v8275_v56 }
 0x1ee   : > { %v3824_v20 = vcombine.low %v3815_v23, %v3822_v52  ;;  %v1602_v49 = vrot.slane %v8420_v10, %v8278_v36  ;;  %v1606_v4 = vrot.slane %v8420_v10, %v8281_v43  ;;  %v3742_v15 = vcombine.low %v1578_v31, %v1582_v62  ;;  %v1062_v52 = vpop.xlane.xlu1 %1061 }
 0x1ef   : > { %6548 = vperm.xlu1 %7508, %v3643_v6   ;;  %v3831_v8 = vrot.slane %v3823_v30, %v8286_v7  ;;  %v3743_v12 = vcombine.low %v1586_v1, %v1590_v5  ;;  %v3744_v51 = vcombine.low %v1594_v25, %v1598_v44  ;;  %v2634_v19 = vrot.slane %v8550_v48, %v8257_v34  ;;  %v1059_v30 = vpop.xlane.xlu0 %1058 }
 0x1f0   : > { %v3838_v21 = vrot.slane %v3824_v20, %v8286_v7  ;;  %v3745_v57 = vcombine.low %v1602_v49, %v1606_v4  ;;  %v3752_v35 = vrot.slane %v3742_v15, %v8286_v7  ;;  %v2638_v2 = vrot.slane %v8550_v48, %v8263_v63 }
 0x1f1   : > { %v3759_v10 = vrot.slane %v3743_v12, %v8286_v7  ;;  %v3766_v0 = vrot.slane %v3744_v51, %v8286_v7  ;;  %v2642_v45 = vrot.slane %v8550_v48, %v8266_v46  ;;  %v2646_v41 = vrot.slane %v8550_v48, %v8269_v11 }
 0x1f2   : > { %v3839_v22 = vcombine.low %v3831_v8, %v3838_v21  ;;  %v3773_v18 = vrot.slane %v3745_v57, %v8286_v7  ;;  %v2650_v26 = vrot.slane %v8550_v48, %v8272_v24  ;;  %v2654_v16 = vrot.slane %v8550_v48, %v8275_v56 }
 0x1f3   : > { %v3774_v27 = vcombine.low %v3752_v35, %v3759_v10  ;;  %v2658_v28 = vrot.slane %v8550_v48, %v8278_v36  ;;  %v2662_v29 = vrot.slane %v8550_v48, %v8281_v43  ;;  %v5359_v32 = vcombine.low %v2634_v19, %v2638_v2 }
 0x1f4   : > { %v8647_v33 = vadd.f32 %v8260_v54, %v1152_v3  ;;  %6560 = vperm.xlu0 %7507, %v3839_v22   ;;  %v3775_v42 = vcombine.low %v3766_v0, %v3773_v18  ;;  %v5360_v55 = vcombine.low %v2642_v45, %v2646_v41  ;;  %v5361_v47 = vcombine.low %v2650_v26, %v2654_v16 }
 0x1f5   : > { %v8650_v53 = vadd.f32 %v8260_v54, %v1149_v13  ;;  %v3782_v58 = vrot.slane %v3774_v27, %v8286_v7  ;;  %v5362_v59 = vcombine.low %v2658_v28, %v2662_v29  ;;  %v5369_v9 = vrot.slane %v5359_v32, %v8286_v7 }
 0x1f6   : > { %v3789_v61 = vrot.slane %v3775_v42, %v8286_v7  ;;  %v5376_v48 = vrot.slane %v5360_v55, %v8286_v7  ;;  %v5383_v23 = vrot.slane %v5361_v47, %v8286_v7  ;;  %v2602_v31 = vrot.slane %v8469_v60, %v8257_v34 }
 0x1f7   : > { %v5390_v62 = vrot.slane %v5362_v59, %v8286_v7  ;;  %v2606_v1 = vrot.slane %v8469_v60, %v8263_v63  ;;  %v2610_v5 = vrot.slane %v8469_v60, %v8266_v46  ;;  %v2614_v6 = vrot.slane %v8469_v60, %v8269_v11 }
 0x1f8   : > { %v3790_v25 = vcombine.low %v3782_v58, %v3789_v61  ;;  %v5391_v44 = vcombine.low %v5369_v9, %v5376_v48  ;;  %v2618_v20 = vrot.slane %v8469_v60, %v8272_v24  ;;  %v2622_v49 = vrot.slane %v8469_v60, %v8275_v56 }
 0x1f9   : > { %v5392_v4 = vcombine.low %v5383_v23, %v5390_v62  ;;  %v2626_v15 = vrot.slane %v8469_v60, %v8278_v36  ;;  %v2630_v8 = vrot.slane %v8469_v60, %v8281_v43  ;;  %v5310_v12 = vcombine.low %v2602_v31, %v2606_v1  ;;  %v1158_v62 = vpop.xlane.xlu1 %1157 }
 0x1fa   : > { %v8675_v51 = vadd.f32 %v8260_v54, %v1062_v52  ;;  %6557 = vperm.xlu1 %7508, %v3790_v25   ;;  %v5399_v19 = vrot.slane %v5391_v44, %v8286_v7  ;;  %v5311_v21 = vcombine.low %v2610_v5, %v2614_v6  ;;  %v5312_v57 = vcombine.low %v2618_v20, %v2622_v49 }
 0x1fb   : > { %v8679_v35 = vadd.f32 %v8260_v54, %v1059_v30  ;;  %v5406_v2 = vrot.slane %v5392_v4, %v8286_v7  ;;  %v5313_v3 = vcombine.low %v2626_v15, %v2630_v8  ;;  %v5320_v10 = vrot.slane %v5310_v12, %v8286_v7  ;;  %v1155_v30 = vpop.xlane.xlu0 %1154 }
 0x1fc   : > { %v5327_v0 = vrot.slane %v5311_v21, %v8286_v7  ;;  %v5334_v60 = vrot.slane %v5312_v57, %v8286_v7  ;;  %v1546_v45 = vrot.slane %v8423_v14, %v8257_v34  ;;  %v1550_v41 = vrot.slane %v8423_v14, %v8263_v63 }
 0x1fd   : > { %v5407_v13 = vcombine.low %v5399_v19, %v5406_v2  ;;  %v5341_v22 = vrot.slane %v5313_v3, %v8286_v7  ;;  %v1554_v18 = vrot.slane %v8423_v14, %v8266_v46  ;;  %v1558_v26 = vrot.slane %v8423_v14, %v8269_v11 }
 0x1fe   : > { %v5342_v16 = vcombine.low %v5320_v10, %v5327_v0  ;;  %v1562_v27 = vrot.slane %v8423_v14, %v8272_v24  ;;  %v1566_v28 = vrot.slane %v8423_v14, %v8275_v56  ;;  %v1570_v29 = vrot.slane %v8423_v14, %v8278_v36 }
 0x1ff   : > { %6656 = vperm.xlu0 %7507, %v5407_v13   ;;  %v5343_v32 = vcombine.low %v5334_v60, %v5341_v22  ;;  %v1574_v42 = vrot.slane %v8423_v14, %v8281_v43  ;;  %v3693_v55 = vcombine.low %v1546_v45, %v1550_v41  ;;  %v3694_v47 = vcombine.low %v1554_v18, %v1558_v26 }
 0x200   : > { %v5350_v58 = vrot.slane %v5342_v16, %v8286_v7  ;;  %v3695_v59 = vcombine.low %v1562_v27, %v1566_v28  ;;  %v2730_v9 = vrot.slane %v8647_v33, %v8257_v34  ;;  %v2734_v61 = vrot.slane %v8647_v33, %v8263_v63 }
 0x201   : > { %v5357_v48 = vrot.slane %v5343_v32, %v8286_v7  ;;  %v3696_v23 = vcombine.low %v1570_v29, %v1574_v42  ;;  %v3703_v31 = vrot.slane %v3693_v55, %v8286_v7  ;;  %v3710_v52 = vrot.slane %v3694_v47, %v8286_v7 }
 0x202   : > { %v3717_v14 = vrot.slane %v3695_v59, %v8286_v7  ;;  %v2738_v1 = vrot.slane %v8647_v33, %v8266_v46  ;;  %v2742_v5 = vrot.slane %v8647_v33, %v8269_v11  ;;  %v2746_v6 = vrot.slane %v8647_v33, %v8272_v24 }
 0x203   : > { %v5358_v25 = vcombine.low %v5350_v58, %v5357_v48  ;;  %v3724_v44 = vrot.slane %v3696_v23, %v8286_v7  ;;  %v3725_v20 = vcombine.low %v3703_v31, %v3710_v52  ;;  %v2750_v49 = vrot.slane %v8647_v33, %v8275_v56  ;;  %v1068_v23 = vpop.xlane.xlu1 %1067 }
 0x204   : > { %v2754_v4 = vrot.slane %v8647_v33, %v8278_v36  ;;  %v2758_v15 = vrot.slane %v8647_v33, %v8281_v43  ;;  %v5506_v8 = vcombine.low %v2730_v9, %v2734_v61  ;;  %v5507_v12 = vcombine.low %v2738_v1, %v2742_v5 }
 0x205   : > { %v8725_v19 = vadd.f32 %v8260_v54, %v1158_v62  ;;  %6653 = vperm.xlu1 %7508, %v5358_v25   ;;  %v3726_v21 = vcombine.low %v3717_v14, %v3724_v44  ;;  %v3733_v57 = vrot.slane %v3725_v20, %v8286_v7  ;;  %v5508_v2 = vcombine.low %v2746_v6, %v2750_v49 }
 0x206   : > { %v8729_v3 = vadd.f32 %v8260_v54, %v1155_v30  ;;  %v5509_v10 = vcombine.low %v2754_v4, %v2758_v15  ;;  %v5516_v0 = vrot.slane %v5506_v8, %v8286_v7  ;;  %v5523_v60 = vrot.slane %v5507_v12, %v8286_v7 }
 0x207   : > { %v3740_v33 = vrot.slane %v3726_v21, %v8286_v7  ;;  %v5530_v45 = vrot.slane %v5508_v2, %v8286_v7  ;;  %v1642_v41 = vrot.slane %v8497_v39, %v8257_v34  ;;  %v1646_v13 = vrot.slane %v8497_v39, %v8263_v63 }
 0x208   : > { %v5537_v22 = vrot.slane %v5509_v10, %v8286_v7  ;;  %v5538_v18 = vcombine.low %v5516_v0, %v5523_v60  ;;  %v1650_v26 = vrot.slane %v8497_v39, %v8266_v46  ;;  %v1654_v16 = vrot.slane %v8497_v39, %v8269_v11 }
 0x209   : > { %v3741_v27 = vcombine.low %v3733_v57, %v3740_v33  ;;  %v1658_v28 = vrot.slane %v8497_v39, %v8272_v24  ;;  %v1662_v29 = vrot.slane %v8497_v39, %v8275_v56  ;;  %v1666_v32 = vrot.slane %v8497_v39, %v8278_v36 }
 0x20a   : > { %v5539_v42 = vcombine.low %v5530_v45, %v5537_v22  ;;  %v5546_v55 = vrot.slane %v5538_v18, %v8286_v7  ;;  %v1670_v47 = vrot.slane %v8497_v39, %v8281_v43  ;;  %v3840_v58 = vcombine.low %v1642_v41, %v1646_v13  ;;  %v1065_v39 = vpop.xlane.xlu0 %1064  ;;  %v8783_v41 = vpop.xlane.xlu1 %1163 }
 0x20b   : > { %6554 = vperm.xlu1 %7508, %v3741_v27   ;;  %v3841_v59 = vcombine.low %v1650_v26, %v1654_v16  ;;  %v3842_v9 = vcombine.low %v1658_v28, %v1662_v29  ;;  %v1674_v61 = vrot.slane %v8600_v50, %v8257_v34  ;;  %v1678_v48 = vrot.slane %v8600_v50, %v8263_v63 }
 0x20c   : > { %v5553_v31 = vrot.slane %v5539_v42, %v8286_v7  ;;  %v3843_v52 = vcombine.low %v1666_v32, %v1670_v47  ;;  %v3850_v62 = vrot.slane %v3840_v58, %v8286_v7  ;;  %v1682_v14 = vrot.slane %v8600_v50, %v8266_v46 }
 0x20d   : > { %v3857_v1 = vrot.slane %v3841_v59, %v8286_v7  ;;  %v3864_v5 = vrot.slane %v3842_v9, %v8286_v7  ;;  %v1686_v6 = vrot.slane %v8600_v50, %v8269_v11  ;;  %v1690_v30 = vrot.slane %v8600_v50, %v8272_v24 }
 0x20e   : > { %v5554_v25 = vcombine.low %v5546_v55, %v5553_v31  ;;  %v3871_v44 = vrot.slane %v3843_v52, %v8286_v7  ;;  %v1694_v20 = vrot.slane %v8600_v50, %v8275_v56  ;;  %v1698_v49 = vrot.slane %v8600_v50, %v8278_v36 }
 0x20f   : > { %v3872_v4 = vcombine.low %v3850_v62, %v3857_v1  ;;  %v1702_v15 = vrot.slane %v8600_v50, %v8281_v43  ;;  %v3889_v8 = vcombine.low %v1674_v61, %v1678_v48  ;;  %v3890_v12 = vcombine.low %v1682_v14, %v1686_v6  ;;  %v1161_v1 = vpop.xlane.xlu0 %1160 }
 0x210   : > { %v8775_v21 = vadd.f32 %v8260_v54, %v1068_v23  ;;  %v8778_v57 = vadd.f32 %v8260_v54, %v1065_v39  ;;  %6665 = vperm.xlu0 %7507, %v5554_v25   ;;  %v3873_v2 = vcombine.low %v3864_v5, %v3871_v44  ;;  %v3891_v10 = vcombine.low %v1690_v30, %v1694_v20 }
 0x211   : > { %v3880_v0 = vrot.slane %v3872_v4, %v8286_v7  ;;  %v3892_v60 = vcombine.low %v1698_v49, %v1702_v15  ;;  %v3899_v33 = vrot.slane %v3889_v8, %v8286_v7  ;;  %v3906_v45 = vrot.slane %v3890_v12, %v8286_v7 }
 0x212   : > { %v3887_v50 = vrot.slane %v3873_v2, %v8286_v7  ;;  %v3913_v13 = vrot.slane %v3891_v10, %v8286_v7  ;;  %v2666_v22 = vrot.slane %v8547_v38, %v8257_v34  ;;  %v2670_v18 = vrot.slane %v8547_v38, %v8263_v63 }
 0x213   : > { %v3920_v26 = vrot.slane %v3892_v60, %v8286_v7  ;;  %v3921_v16 = vcombine.low %v3899_v33, %v3906_v45  ;;  %v2674_v27 = vrot.slane %v8547_v38, %v8266_v46  ;;  %v2678_v28 = vrot.slane %v8547_v38, %v8269_v11 }
 0x214   : > { %v3888_v29 = vcombine.low %v3880_v0, %v3887_v50  ;;  %v2682_v32 = vrot.slane %v8547_v38, %v8272_v24  ;;  %v2686_v42 = vrot.slane %v8547_v38, %v8275_v56  ;;  %v2690_v55 = vrot.slane %v8547_v38, %v8278_v36 }
 0x215   : > { %v3922_v47 = vcombine.low %v3913_v13, %v3920_v26  ;;  %v3929_v58 = vrot.slane %v3921_v16, %v8286_v7  ;;  %v2694_v59 = vrot.slane %v8547_v38, %v8281_v43  ;;  %v5408_v9 = vcombine.low %v2666_v22, %v2670_v18  ;;  %v1074_v38 = vpop.xlane.xlu1 %1073 }
 0x216   : > { %6563 = vperm.xlu1 %7508, %v3888_v29   ;;  %v5409_v61 = vcombine.low %v2674_v27, %v2678_v28  ;;  %v5410_v48 = vcombine.low %v2682_v32, %v2686_v42  ;;  %v2698_v23 = vrot.slane %v8650_v53, %v8257_v34  ;;  %v2702_v31 = vrot.slane %v8650_v53, %v8263_v63 }
 0x217   : > { %v3936_v52 = vrot.slane %v3922_v47, %v8286_v7  ;;  %v5411_v62 = vcombine.low %v2690_v55, %v2694_v59  ;;  %v5418_v14 = vrot.slane %v5408_v9, %v8286_v7  ;;  %v2706_v39 = vrot.slane %v8650_v53, %v8266_v46 }
 0x218   : > { %v5425_v5 = vrot.slane %v5409_v61, %v8286_v7  ;;  %v5432_v6 = vrot.slane %v5410_v48, %v8286_v7  ;;  %v2710_v30 = vrot.slane %v8650_v53, %v8269_v11  ;;  %v2714_v25 = vrot.slane %v8650_v53, %v8272_v24 }
 0x219   : > { %v3937_v44 = vcombine.low %v3929_v58, %v3936_v52  ;;  %v5439_v20 = vrot.slane %v5411_v62, %v8286_v7  ;;  %v2718_v49 = vrot.slane %v8650_v53, %v8275_v56  ;;  %v2722_v4 = vrot.slane %v8650_v53, %v8278_v36 }
 0x21a   : > { %v5440_v15 = vcombine.low %v5418_v14, %v5425_v5  ;;  %v2726_v8 = vrot.slane %v8650_v53, %v8281_v43  ;;  %v5457_v12 = vcombine.low %v2698_v23, %v2702_v31  ;;  %v5458_v2 = vcombine.low %v2706_v39, %v2710_v30  ;;  %v1071_v5 = vpop.xlane.xlu0 %1070 }
 0x21b   : > { %v8827_v10 = vadd.f32 %v8260_v54, %v1161_v1  ;;  %6566 = vperm.xlu0 %7507, %v3937_v44   ;;  %v8830_v0 = vadd.f32 %v8260_v54, %v1074_v38  ;;  %v5441_v60 = vcombine.low %v5432_v6, %v5439_v20  ;;  %v5459_v33 = vcombine.low %v2714_v25, %v2718_v49 }
 0x21c   : > { %v5448_v45 = vrot.slane %v5440_v15, %v8286_v7  ;;  %v5460_v50 = vcombine.low %v2722_v4, %v2726_v8  ;;  %v5467_v13 = vrot.slane %v5457_v12, %v8286_v7  ;;  %v5474_v22 = vrot.slane %v5458_v2, %v8286_v7 }
 0x21d   : > { %v5455_v53 = vrot.slane %v5441_v60, %v8286_v7  ;;  %v5481_v18 = vrot.slane %v5459_v33, %v8286_v7  ;;  %v1706_v26 = vrot.slane %v8597_v37, %v8257_v34  ;;  %v1710_v16 = vrot.slane %v8597_v37, %v8263_v63 }
 0x21e   : > { %v5488_v27 = vrot.slane %v5460_v50, %v8286_v7  ;;  %v5489_v28 = vcombine.low %v5467_v13, %v5474_v22  ;;  %v1714_v29 = vrot.slane %v8597_v37, %v8266_v46  ;;  %v1718_v32 = vrot.slane %v8597_v37, %v8269_v11 }
 0x21f   : > { %v5456_v42 = vcombine.low %v5448_v45, %v5455_v53  ;;  %v1722_v55 = vrot.slane %v8597_v37, %v8272_v24  ;;  %v1726_v47 = vrot.slane %v8597_v37, %v8275_v56  ;;  %v1730_v58 = vrot.slane %v8597_v37, %v8278_v36 }
 0x220   : > { %v5490_v59 = vcombine.low %v5481_v18, %v5488_v27  ;;  %v5497_v9 = vrot.slane %v5489_v28, %v8286_v7  ;;  %v1734_v61 = vrot.slane %v8597_v37, %v8281_v43  ;;  %v3938_v48 = vcombine.low %v1706_v26, %v1710_v16  ;;  %v1170_v37 = vpop.xlane.xlu1 %1169 }
 0x221   : > { %6659 = vperm.xlu1 %7508, %v5456_v42   ;;  %v3939_v23 = vcombine.low %v1714_v29, %v1718_v32  ;;  %v3940_v31 = vcombine.low %v1722_v55, %v1726_v47  ;;  %v2794_v52 = vrot.slane %v8725_v19, %v8257_v34  ;;  %v2798_v62 = vrot.slane %v8725_v19, %v8263_v63 }
 0x222   : > { %v5504_v14 = vrot.slane %v5490_v59, %v8286_v7  ;;  %v3941_v39 = vcombine.low %v1730_v58, %v1734_v61  ;;  %v3948_v1 = vrot.slane %v3938_v48, %v8286_v7  ;;  %v2802_v38 = vrot.slane %v8725_v19, %v8266_v46 }
 0x223   : > { %v3955_v6 = vrot.slane %v3939_v23, %v8286_v7  ;;  %v3962_v30 = vrot.slane %v3940_v31, %v8286_v7  ;;  %v2806_v25 = vrot.slane %v8725_v19, %v8269_v11  ;;  %v2810_v44 = vrot.slane %v8725_v19, %v8272_v24 }
 0x224   : > { %v5505_v20 = vcombine.low %v5497_v9, %v5504_v14  ;;  %v3969_v49 = vrot.slane %v3941_v39, %v8286_v7  ;;  %v2814_v4 = vrot.slane %v8725_v19, %v8275_v56  ;;  %v2818_v15 = vrot.slane %v8725_v19, %v8278_v36 }
 0x225   : > { %v3970_v8 = vcombine.low %v3948_v1, %v3955_v6  ;;  %v2822_v12 = vrot.slane %v8725_v19, %v8281_v43  ;;  %v5604_v2 = vcombine.low %v2794_v52, %v2798_v62  ;;  %v5605_v60 = vcombine.low %v2802_v38, %v2806_v25  ;;  %v1167_v6 = vpop.xlane.xlu0 %1166 }
 0x226   : > { %v8877_v33 = vadd.f32 %v8260_v54, %v1071_v5  ;;  %6662 = vperm.xlu0 %7507, %v5505_v20   ;;  %v8880_v45 = vadd.f32 %v8260_v54, %v1170_v37  ;;  %v3971_v50 = vcombine.low %v3962_v30, %v3969_v49  ;;  %v5606_v13 = vcombine.low %v2810_v44, %v2814_v4 }
 0x227   : > { %v3978_v22 = vrot.slane %v3970_v8, %v8286_v7  ;;  %v5607_v53 = vcombine.low %v2818_v15, %v2822_v12  ;;  %v5614_v18 = vrot.slane %v5604_v2, %v8286_v7  ;;  %v5621_v26 = vrot.slane %v5605_v60, %v8286_v7 }
 0x228   : > { %v3985_v19 = vrot.slane %v3971_v50, %v8286_v7  ;;  %v5628_v16 = vrot.slane %v5606_v13, %v8286_v7  ;;  %v1770_v27 = vrot.slane %v8675_v51, %v8257_v34  ;;  %v1774_v28 = vrot.slane %v8675_v51, %v8263_v63 }
 0x229   : > { %v5635_v29 = vrot.slane %v5607_v53, %v8286_v7  ;;  %v5636_v32 = vcombine.low %v5614_v18, %v5621_v26  ;;  %v1778_v42 = vrot.slane %v8675_v51, %v8266_v46  ;;  %v1782_v55 = vrot.slane %v8675_v51, %v8269_v11 }
 0x22a   : > { %v3986_v47 = vcombine.low %v3978_v22, %v3985_v19  ;;  %v1786_v58 = vrot.slane %v8675_v51, %v8272_v24  ;;  %v1790_v59 = vrot.slane %v8675_v51, %v8275_v56  ;;  %v1794_v9 = vrot.slane %v8675_v51, %v8278_v36 }
 0x22b   : > { %v5637_v61 = vcombine.low %v5628_v16, %v5635_v29  ;;  %v5644_v48 = vrot.slane %v5636_v32, %v8286_v7  ;;  %v1798_v23 = vrot.slane %v8675_v51, %v8281_v43  ;;  %v4036_v31 = vcombine.low %v1770_v27, %v1774_v28  ;;  %v1080_v51 = vpop.xlane.xlu1 %1079 }
 0x22c   : > { %6569 = vperm.xlu1 %7508, %v3986_v47   ;;  %v4037_v52 = vcombine.low %v1778_v42, %v1782_v55  ;;  %v4038_v62 = vcombine.low %v1786_v58, %v1790_v59  ;;  %v1738_v14 = vrot.slane %v8679_v35, %v8257_v34  ;;  %v1742_v39 = vrot.slane %v8679_v35, %v8263_v63 }
 0x22d   : > { %v5651_v1 = vrot.slane %v5637_v61, %v8286_v7  ;;  %v4039_v38 = vcombine.low %v1794_v9, %v1798_v23  ;;  %v4046_v5 = vrot.slane %v4036_v31, %v8286_v7  ;;  %v1746_v37 = vrot.slane %v8679_v35, %v8266_v46 }
 0x22e   : > { %v4053_v30 = vrot.slane %v4037_v52, %v8286_v7  ;;  %v4060_v25 = vrot.slane %v4038_v62, %v8286_v7  ;;  %v1750_v44 = vrot.slane %v8679_v35, %v8269_v11  ;;  %v1754_v20 = vrot.slane %v8679_v35, %v8272_v24 }
 0x22f   : > { %v5652_v49 = vcombine.low %v5644_v48, %v5651_v1  ;;  %v4067_v4 = vrot.slane %v4039_v38, %v8286_v7  ;;  %v1758_v15 = vrot.slane %v8679_v35, %v8275_v56  ;;  %v1762_v8 = vrot.slane %v8679_v35, %v8278_v36 }
 0x230   : > { %v4068_v12 = vcombine.low %v4046_v5, %v4053_v30  ;;  %v1766_v2 = vrot.slane %v8679_v35, %v8281_v43  ;;  %v3987_v60 = vcombine.low %v1738_v14, %v1742_v39  ;;  %v3988_v50 = vcombine.low %v1746_v37, %v1750_v44  ;;  %v1077_v30 = vpop.xlane.xlu0 %1076 }
 0x231   : > { %v8927_v13 = vadd.f32 %v8260_v54, %v1167_v6  ;;  %6671 = vperm.xlu0 %7507, %v5652_v49   ;;  %v8930_v22 = vadd.f32 %v8260_v54, %v1080_v51  ;;  %v4069_v53 = vcombine.low %v4060_v25, %v4067_v4  ;;  %v3989_v18 = vcombine.low %v1754_v20, %v1758_v15 }
 0x232   : > { %v4076_v26 = vrot.slane %v4068_v12, %v8286_v7  ;;  %v3990_v19 = vcombine.low %v1762_v8, %v1766_v2  ;;  %v3997_v16 = vrot.slane %v3987_v60, %v8286_v7  ;;  %v4004_v27 = vrot.slane %v3988_v50, %v8286_v7 }
 0x233   : > { %v4083_v35 = vrot.slane %v4069_v53, %v8286_v7  ;;  %v4011_v28 = vrot.slane %v3989_v18, %v8286_v7  ;;  %v1834_v29 = vrot.slane %v8775_v21, %v8257_v34  ;;  %v1838_v32 = vrot.slane %v8775_v21, %v8263_v63 }
 0x234   : > { %v4018_v42 = vrot.slane %v3990_v19, %v8286_v7  ;;  %v4019_v55 = vcombine.low %v3997_v16, %v4004_v27  ;;  %v1842_v47 = vrot.slane %v8775_v21, %v8266_v46  ;;  %v1846_v58 = vrot.slane %v8775_v21, %v8269_v11 }
 0x235   : > { %v4084_v59 = vcombine.low %v4076_v26, %v4083_v35  ;;  %v1850_v9 = vrot.slane %v8775_v21, %v8272_v24  ;;  %v1854_v61 = vrot.slane %v8775_v21, %v8275_v56  ;;  %v1858_v48 = vrot.slane %v8775_v21, %v8278_v36 }
 0x236   : > { %v4020_v23 = vcombine.low %v4011_v28, %v4018_v42  ;;  %v4027_v31 = vrot.slane %v4019_v55, %v8286_v7  ;;  %v1862_v52 = vrot.slane %v8775_v21, %v8281_v43  ;;  %v4134_v62 = vcombine.low %v1834_v29, %v1838_v32  ;;  %v1176_v21 = vpop.xlane.xlu1 %1175 }
 0x237   : > { %6575 = vperm.xlu1 %7508, %v4084_v59   ;;  %v4135_v14 = vcombine.low %v1842_v47, %v1846_v58  ;;  %v4136_v39 = vcombine.low %v1850_v9, %v1854_v61  ;;  %v2762_v1 = vrot.slane %v8729_v3, %v8257_v34  ;;  %v2766_v38 = vrot.slane %v8729_v3, %v8263_v63 }
 0x238   : > { %v4034_v5 = vrot.slane %v4020_v23, %v8286_v7  ;;  %v4137_v37 = vcombine.low %v1858_v48, %v1862_v52  ;;  %v4144_v6 = vrot.slane %v4134_v62, %v8286_v7  ;;  %v2770_v51 = vrot.slane %v8729_v3, %v8266_v46 }
 0x239   : > { %v4151_v25 = vrot.slane %v4135_v14, %v8286_v7  ;;  %v4158_v44 = vrot.slane %v4136_v39, %v8286_v7  ;;  %v2774_v20 = vrot.slane %v8729_v3, %v8269_v11  ;;  %v2778_v49 = vrot.slane %v8729_v3, %v8272_v24 }
 0x23a   : > { %v4035_v4 = vcombine.low %v4027_v31, %v4034_v5  ;;  %v4165_v15 = vrot.slane %v4137_v37, %v8286_v7  ;;  %v2782_v8 = vrot.slane %v8729_v3, %v8275_v56  ;;  %v2786_v12 = vrot.slane %v8729_v3, %v8278_v36 }
 0x23b   : > { %v4166_v2 = vcombine.low %v4144_v6, %v4151_v25  ;;  %v2790_v60 = vrot.slane %v8729_v3, %v8281_v43  ;;  %v5555_v50 = vcombine.low %v2762_v1, %v2766_v38  ;;  %v5556_v53 = vcombine.low %v2770_v51, %v2774_v20  ;;  %v1173_v25 = vpop.xlane.xlu0 %1172 }
 0x23c   : > { %v8977_v18 = vadd.f32 %v8260_v54, %v1077_v30  ;;  %6572 = vperm.xlu0 %7507, %v4035_v4   ;;  %v8980_v26 = vadd.f32 %v8260_v54, %v1176_v21  ;;  %v4167_v19 = vcombine.low %v4158_v44, %v4165_v15  ;;  %v5557_v16 = vcombine.low %v2778_v49, %v2782_v8 }
 0x23d   : > { %v4174_v27 = vrot.slane %v4166_v2, %v8286_v7  ;;  %v5558_v35 = vcombine.low %v2786_v12, %v2790_v60  ;;  %v5565_v28 = vrot.slane %v5555_v50, %v8286_v7  ;;  %v5572_v29 = vrot.slane %v5556_v53, %v8286_v7 }
 0x23e   : > { %v4181_v3 = vrot.slane %v4167_v19, %v8286_v7  ;;  %v5579_v32 = vrot.slane %v5557_v16, %v8286_v7  ;;  %v1898_v42 = vrot.slane %v8830_v0, %v8257_v34  ;;  %v1902_v55 = vrot.slane %v8830_v0, %v8263_v63 }
 0x23f   : > { %v5586_v47 = vrot.slane %v5558_v35, %v8286_v7  ;;  %v5587_v58 = vcombine.low %v5565_v28, %v5572_v29  ;;  %v1906_v59 = vrot.slane %v8830_v0, %v8266_v46  ;;  %v1910_v9 = vrot.slane %v8830_v0, %v8269_v11 }
 0x240   : > { %v4182_v61 = vcombine.low %v4174_v27, %v4181_v3  ;;  %v1914_v48 = vrot.slane %v8830_v0, %v8272_v24  ;;  %v1918_v23 = vrot.slane %v8830_v0, %v8275_v56  ;;  %v1922_v31 = vrot.slane %v8830_v0, %v8278_v36 }
 0x241   : > { %v5588_v52 = vcombine.low %v5579_v32, %v5586_v47  ;;  %v5595_v62 = vrot.slane %v5587_v58, %v8286_v7  ;;  %v1926_v14 = vrot.slane %v8830_v0, %v8281_v43  ;;  %v4232_v39 = vcombine.low %v1898_v42, %v1902_v55  ;;  %v1086_v0 = vpop.xlane.xlu1 %1085 }
 0x242   : > { %6581 = vperm.xlu1 %7508, %v4182_v61   ;;  %v4233_v1 = vcombine.low %v1906_v59, %v1910_v9  ;;  %v4234_v38 = vcombine.low %v1914_v48, %v1918_v23  ;;  %v1802_v5 = vrot.slane %v8778_v57, %v8257_v34  ;;  %v1806_v37 = vrot.slane %v8778_v57, %v8263_v63 }
 0x243   : > { %v5602_v6 = vrot.slane %v5588_v52, %v8286_v7  ;;  %v4235_v51 = vcombine.low %v1922_v31, %v1926_v14  ;;  %v4242_v30 = vrot.slane %v4232_v39, %v8286_v7  ;;  %v1810_v21 = vrot.slane %v8778_v57, %v8266_v46 }
 0x244   : > { %v4249_v44 = vrot.slane %v4233_v1, %v8286_v7  ;;  %v4256_v20 = vrot.slane %v4234_v38, %v8286_v7  ;;  %v1814_v49 = vrot.slane %v8778_v57, %v8269_v11  ;;  %v1818_v4 = vrot.slane %v8778_v57, %v8272_v24 }
 0x245   : > { %v5603_v15 = vcombine.low %v5595_v62, %v5602_v6  ;;  %v4263_v8 = vrot.slane %v4235_v51, %v8286_v7  ;;  %v1822_v12 = vrot.slane %v8778_v57, %v8275_v56  ;;  %v1826_v2 = vrot.slane %v8778_v57, %v8278_v36 }
 0x246   : > { %v4264_v60 = vcombine.low %v4242_v30, %v4249_v44  ;;  %v1830_v50 = vrot.slane %v8778_v57, %v8281_v43  ;;  %v4085_v53 = vcombine.low %v1802_v5, %v1806_v37  ;;  %v4086_v19 = vcombine.low %v1810_v21, %v1814_v49  ;;  %v1083_v44 = vpop.xlane.xlu0 %1082 }
 0x247   : > { %v9027_v16 = vadd.f32 %v8260_v54, %v1173_v25  ;;  %6668 = vperm.xlu0 %7507, %v5603_v15   ;;  %v9030_v27 = vadd.f32 %v8260_v54, %v1086_v0  ;;  %v4265_v35 = vcombine.low %v4256_v20, %v4263_v8  ;;  %v4087_v28 = vcombine.low %v1818_v4, %v1822_v12 }
 0x248   : > { %v4272_v29 = vrot.slane %v4264_v60, %v8286_v7  ;;  %v4088_v3 = vcombine.low %v1826_v2, %v1830_v50  ;;  %v4095_v32 = vrot.slane %v4085_v53, %v8286_v7  ;;  %v4102_v42 = vrot.slane %v4086_v19, %v8286_v7 }
 0x249   : > { %v4279_v57 = vrot.slane %v4265_v35, %v8286_v7  ;;  %v4109_v55 = vrot.slane %v4087_v28, %v8286_v7  ;;  %v2922_v47 = vrot.slane %v8880_v45, %v8257_v34  ;;  %v2926_v58 = vrot.slane %v8880_v45, %v8263_v63 }
 0x24a   : > { %v4116_v59 = vrot.slane %v4088_v3, %v8286_v7  ;;  %v4117_v9 = vcombine.low %v4095_v32, %v4102_v42  ;;  %v2930_v61 = vrot.slane %v8880_v45, %v8266_v46  ;;  %v2934_v48 = vrot.slane %v8880_v45, %v8269_v11 }
 0x24b   : > { %v4280_v23 = vcombine.low %v4272_v29, %v4279_v57  ;;  %v2938_v31 = vrot.slane %v8880_v45, %v8272_v24  ;;  %v2942_v52 = vrot.slane %v8880_v45, %v8275_v56  ;;  %v2946_v62 = vrot.slane %v8880_v45, %v8278_v36 }
 0x24c   : > { %v4118_v14 = vcombine.low %v4109_v55, %v4116_v59  ;;  %v4125_v39 = vrot.slane %v4117_v9, %v8286_v7  ;;  %v2950_v1 = vrot.slane %v8880_v45, %v8281_v43  ;;  %v5800_v38 = vcombine.low %v2922_v47, %v2926_v58  ;;  %v1182_v45 = vpop.xlane.xlu1 %1181 }
 0x24d   : > { %6587 = vperm.xlu1 %7508, %v4280_v23   ;;  %v5801_v5 = vcombine.low %v2930_v61, %v2934_v48  ;;  %v5802_v37 = vcombine.low %v2938_v31, %v2942_v52  ;;  %v2826_v6 = vrot.slane %v8827_v10, %v8257_v34  ;;  %v2830_v51 = vrot.slane %v8827_v10, %v8263_v63 }
 0x24e   : > { %v4132_v30 = vrot.slane %v4118_v14, %v8286_v7  ;;  %v5803_v21 = vcombine.low %v2946_v62, %v2950_v1  ;;  %v5810_v25 = vrot.slane %v5800_v38, %v8286_v7  ;;  %v2834_v0 = vrot.slane %v8827_v10, %v8266_v46 }
 0x24f   : > { %v5817_v20 = vrot.slane %v5801_v5, %v8286_v7  ;;  %v5824_v49 = vrot.slane %v5802_v37, %v8286_v7  ;;  %v2838_v4 = vrot.slane %v8827_v10, %v8269_v11  ;;  %v2842_v15 = vrot.slane %v8827_v10, %v8272_v24 }
 0x250   : > { %v4133_v8 = vcombine.low %v4125_v39, %v4132_v30  ;;  %v5831_v12 = vrot.slane %v5803_v21, %v8286_v7  ;;  %v2846_v2 = vrot.slane %v8827_v10, %v8275_v56  ;;  %v2850_v60 = vrot.slane %v8827_v10, %v8278_v36 }
 0x251   : > { %v5832_v50 = vcombine.low %v5810_v25, %v5817_v20  ;;  %v2854_v53 = vrot.slane %v8827_v10, %v8281_v43  ;;  %v5653_v19 = vcombine.low %v2826_v6, %v2830_v51  ;;  %v5654_v35 = vcombine.low %v2834_v0, %v2838_v4  ;;  %v1179_v20 = vpop.xlane.xlu0 %1178 }
 0x252   : > { %v9077_v28 = vadd.f32 %v8260_v54, %v1083_v44  ;;  %6578 = vperm.xlu0 %7507, %v4133_v8   ;;  %v9080_v29 = vadd.f32 %v8260_v54, %v1182_v45  ;;  %v5833_v3 = vcombine.low %v5824_v49, %v5831_v12  ;;  %v5655_v32 = vcombine.low %v2842_v15, %v2846_v2 }
 0x253   : > { %v5840_v42 = vrot.slane %v5832_v50, %v8286_v7  ;;  %v5656_v57 = vcombine.low %v2850_v60, %v2854_v53  ;;  %v5663_v55 = vrot.slane %v5653_v19, %v8286_v7  ;;  %v5670_v47 = vrot.slane %v5654_v35, %v8286_v7 }
 0x254   : > { %v5847_v10 = vrot.slane %v5833_v3, %v8286_v7  ;;  %v5677_v58 = vrot.slane %v5655_v32, %v8286_v7  ;;  %v1962_v59 = vrot.slane %v8930_v22, %v8257_v34  ;;  %v1966_v9 = vrot.slane %v8930_v22, %v8263_v63 }
 0x255   : > { %v5684_v61 = vrot.slane %v5656_v57, %v8286_v7  ;;  %v5685_v48 = vcombine.low %v5663_v55, %v5670_v47  ;;  %v1970_v23 = vrot.slane %v8930_v22, %v8266_v46  ;;  %v1974_v31 = vrot.slane %v8930_v22, %v8269_v11 }
 0x256   : > { %v5848_v52 = vcombine.low %v5840_v42, %v5847_v10  ;;  %v1978_v62 = vrot.slane %v8930_v22, %v8272_v24  ;;  %v1982_v14 = vrot.slane %v8930_v22, %v8275_v56  ;;  %v1986_v39 = vrot.slane %v8930_v22, %v8278_v36 }
 0x257   : > { %v5686_v1 = vcombine.low %v5677_v58, %v5684_v61  ;;  %v5693_v38 = vrot.slane %v5685_v48, %v8286_v7  ;;  %v1990_v5 = vrot.slane %v8930_v22, %v8281_v43  ;;  %v4330_v37 = vcombine.low %v1962_v59, %v1966_v9  ;;  %v1092_v22 = vpop.xlane.xlu1 %1091 }
 0x258   : > { %6683 = vperm.xlu1 %7508, %v5848_v52   ;;  %v4331_v6 = vcombine.low %v1970_v23, %v1974_v31  ;;  %v4332_v51 = vcombine.low %v1978_v62, %v1982_v14  ;;  %v1866_v30 = vrot.slane %v8877_v33, %v8257_v34  ;;  %v1870_v21 = vrot.slane %v8877_v33, %v8263_v63 }
 0x259   : > { %v5700_v25 = vrot.slane %v5686_v1, %v8286_v7  ;;  %v4333_v0 = vcombine.low %v1986_v39, %v1990_v5  ;;  %v4340_v44 = vrot.slane %v4330_v37, %v8286_v7  ;;  %v1874_v45 = vrot.slane %v8877_v33, %v8266_v46 }
 0x25a   : > { %v4347_v49 = vrot.slane %v4331_v6, %v8286_v7  ;;  %v4354_v4 = vrot.slane %v4332_v51, %v8286_v7  ;;  %v1878_v15 = vrot.slane %v8877_v33, %v8269_v11  ;;  %v1882_v8 = vrot.slane %v8877_v33, %v8272_v24 }
 0x25b   : > { %v5701_v12 = vcombine.low %v5693_v38, %v5700_v25  ;;  %v4361_v2 = vrot.slane %v4333_v0, %v8286_v7  ;;  %v1886_v60 = vrot.slane %v8877_v33, %v8275_v56  ;;  %v1890_v50 = vrot.slane %v8877_v33, %v8278_v36 }
 0x25c   : > { %v4362_v53 = vcombine.low %v4340_v44, %v4347_v49  ;;  %v1894_v19 = vrot.slane %v8877_v33, %v8281_v43  ;;  %v4183_v35 = vcombine.low %v1866_v30, %v1870_v21  ;;  %v4184_v3 = vcombine.low %v1874_v45, %v1878_v15  ;;  %v1089_v49 = vpop.xlane.xlu0 %1088 }
 0x25d   : > { %v9127_v32 = vadd.f32 %v8260_v54, %v1179_v20  ;;  %6674 = vperm.xlu0 %7507, %v5701_v12   ;;  %v9130_v42 = vadd.f32 %v8260_v54, %v1092_v22  ;;  %v4363_v57 = vcombine.low %v4354_v4, %v4361_v2  ;;  %v4185_v55 = vcombine.low %v1882_v8, %v1886_v60 }
 0x25e   : > { %v4370_v47 = vrot.slane %v4362_v53, %v8286_v7  ;;  %v4186_v10 = vcombine.low %v1890_v50, %v1894_v19  ;;  %v4193_v58 = vrot.slane %v4183_v35, %v8286_v7  ;;  %v4200_v59 = vrot.slane %v4184_v3, %v8286_v7 }
 0x25f   : > { %v4377_v33 = vrot.slane %v4363_v57, %v8286_v7  ;;  %v4207_v9 = vrot.slane %v4185_v55, %v8286_v7  ;;  %v2986_v61 = vrot.slane %v8980_v26, %v8257_v34  ;;  %v2990_v48 = vrot.slane %v8980_v26, %v8263_v63 }
 0x260   : > { %v4214_v23 = vrot.slane %v4186_v10, %v8286_v7  ;;  %v4215_v31 = vcombine.low %v4193_v58, %v4200_v59  ;;  %v2994_v52 = vrot.slane %v8980_v26, %v8266_v46  ;;  %v2998_v62 = vrot.slane %v8980_v26, %v8269_v11 }
 0x261   : > { %v4378_v14 = vcombine.low %v4370_v47, %v4377_v33  ;;  %v3002_v39 = vrot.slane %v8980_v26, %v8272_v24  ;;  %v3006_v1 = vrot.slane %v8980_v26, %v8275_v56  ;;  %v3010_v38 = vrot.slane %v8980_v26, %v8278_v36 }
 0x262   : > { %v4216_v5 = vcombine.low %v4207_v9, %v4214_v23  ;;  %v4223_v37 = vrot.slane %v4215_v31, %v8286_v7  ;;  %v3014_v6 = vrot.slane %v8980_v26, %v8281_v43  ;;  %v5898_v51 = vcombine.low %v2986_v61, %v2990_v48  ;;  %v1188_v26 = vpop.xlane.xlu1 %1187 }
 0x263   : > { %6593 = vperm.xlu1 %7508, %v4378_v14   ;;  %v5899_v30 = vcombine.low %v2994_v52, %v2998_v62  ;;  %v5900_v21 = vcombine.low %v3002_v39, %v3006_v1  ;;  %v2890_v25 = vrot.slane %v8927_v13, %v8257_v34  ;;  %v2894_v0 = vrot.slane %v8927_v13, %v8263_v63 }
 0x264   : > { %v4230_v44 = vrot.slane %v4216_v5, %v8286_v7  ;;  %v5901_v45 = vcombine.low %v3010_v38, %v3014_v6  ;;  %v5908_v20 = vrot.slane %v5898_v51, %v8286_v7  ;;  %v2898_v22 = vrot.slane %v8927_v13, %v8266_v46 }
 0x265   : > { %v5915_v4 = vrot.slane %v5899_v30, %v8286_v7  ;;  %v5922_v15 = vrot.slane %v5900_v21, %v8286_v7  ;;  %v2902_v8 = vrot.slane %v8927_v13, %v8269_v11  ;;  %v2906_v12 = vrot.slane %v8927_v13, %v8272_v24 }
 0x266   : > { %v4231_v2 = vcombine.low %v4223_v37, %v4230_v44  ;;  %v5929_v60 = vrot.slane %v5901_v45, %v8286_v7  ;;  %v2910_v50 = vrot.slane %v8927_v13, %v8275_v56  ;;  %v2914_v53 = vrot.slane %v8927_v13, %v8278_v36 }
 0x267   : > { %v5930_v19 = vcombine.low %v5908_v20, %v5915_v4  ;;  %v2918_v35 = vrot.slane %v8927_v13, %v8281_v43  ;;  %v5751_v3 = vcombine.low %v2890_v25, %v2894_v0  ;;  %v5752_v57 = vcombine.low %v2898_v22, %v2902_v8  ;;  %v1185_v4 = vpop.xlane.xlu0 %1184 }
 0x268   : > { %v9177_v55 = vadd.f32 %v8260_v54, %v1089_v49  ;;  %6584 = vperm.xlu0 %7507, %v4231_v2   ;;  %v9180_v47 = vadd.f32 %v8260_v54, %v1188_v26  ;;  %v5931_v10 = vcombine.low %v5922_v15, %v5929_v60  ;;  %v5753_v58 = vcombine.low %v2906_v12, %v2910_v50 }
 0x269   : > { %v5938_v59 = vrot.slane %v5930_v19, %v8286_v7  ;;  %v5754_v33 = vcombine.low %v2914_v53, %v2918_v35  ;;  %v5761_v9 = vrot.slane %v5751_v3, %v8286_v7  ;;  %v5768_v61 = vrot.slane %v5752_v57, %v8286_v7 }
 0x26a   : > { %v5945_v13 = vrot.slane %v5931_v10, %v8286_v7  ;;  %v5775_v48 = vrot.slane %v5753_v58, %v8286_v7  ;;  %v2026_v23 = vrot.slane %v9030_v27, %v8257_v34  ;;  %v2030_v31 = vrot.slane %v9030_v27, %v8263_v63 }
 0x26b   : > { %v5782_v52 = vrot.slane %v5754_v33, %v8286_v7  ;;  %v5783_v62 = vcombine.low %v5761_v9, %v5768_v61  ;;  %v2034_v14 = vrot.slane %v9030_v27, %v8266_v46  ;;  %v2038_v39 = vrot.slane %v9030_v27, %v8269_v11 }
 0x26c   : > { %v5946_v1 = vcombine.low %v5938_v59, %v5945_v13  ;;  %v2042_v38 = vrot.slane %v9030_v27, %v8272_v24  ;;  %v2046_v5 = vrot.slane %v9030_v27, %v8275_v56  ;;  %v2050_v37 = vrot.slane %v9030_v27, %v8278_v36 }
 0x26d   : > { %v5784_v6 = vcombine.low %v5775_v48, %v5782_v52  ;;  %v5791_v51 = vrot.slane %v5783_v62, %v8286_v7  ;;  %v2054_v30 = vrot.slane %v9030_v27, %v8281_v43  ;;  %v4428_v21 = vcombine.low %v2026_v23, %v2030_v31  ;;  %v1098_v27 = vpop.xlane.xlu1 %1097 }
 0x26e   : > { %6689 = vperm.xlu1 %7508, %v5946_v1   ;;  %v4429_v25 = vcombine.low %v2034_v14, %v2038_v39  ;;  %v4430_v0 = vcombine.low %v2042_v38, %v2046_v5  ;;  %v1930_v44 = vrot.slane %v8977_v18, %v8257_v34  ;;  %v1934_v45 = vrot.slane %v8977_v18, %v8263_v63 }
 0x26f   : > { %v5798_v20 = vrot.slane %v5784_v6, %v8286_v7  ;;  %v4431_v22 = vcombine.low %v2050_v37, %v2054_v30  ;;  %v4438_v49 = vrot.slane %v4428_v21, %v8286_v7  ;;  %v1938_v26 = vrot.slane %v8977_v18, %v8266_v46 }
 0x270   : > { %v4445_v15 = vrot.slane %v4429_v25, %v8286_v7  ;;  %v4452_v8 = vrot.slane %v4430_v0, %v8286_v7  ;;  %v1942_v12 = vrot.slane %v8977_v18, %v8269_v11  ;;  %v1946_v2 = vrot.slane %v8977_v18, %v8272_v24 }
 0x271   : > { %v5799_v60 = vcombine.low %v5791_v51, %v5798_v20  ;;  %v4459_v50 = vrot.slane %v4431_v22, %v8286_v7  ;;  %v1950_v53 = vrot.slane %v8977_v18, %v8275_v56  ;;  %v1954_v19 = vrot.slane %v8977_v18, %v8278_v36 }
 0x272   : > { %v4460_v35 = vcombine.low %v4438_v49, %v4445_v15  ;;  %v1958_v3 = vrot.slane %v8977_v18, %v8281_v43  ;;  %v4281_v57 = vcombine.low %v1930_v44, %v1934_v45  ;;  %v4282_v10 = vcombine.low %v1938_v26, %v1942_v12  ;;  %v1095_v15 = vpop.xlane.xlu0 %1094 }
 0x273   : > { %v9227_v58 = vadd.f32 %v8260_v54, %v1185_v4  ;;  %6680 = vperm.xlu0 %7507, %v5799_v60   ;;  %v9230_v59 = vadd.f32 %v8260_v54, %v1098_v27  ;;  %v4461_v33 = vcombine.low %v4452_v8, %v4459_v50  ;;  %v4283_v9 = vcombine.low %v1946_v2, %v1950_v53 }
 0x274   : > { %v4468_v61 = vrot.slane %v4460_v35, %v8286_v7  ;;  %v4284_v13 = vcombine.low %v1954_v19, %v1958_v3  ;;  %v4291_v48 = vrot.slane %v4281_v57, %v8286_v7  ;;  %v4298_v23 = vrot.slane %v4282_v10, %v8286_v7 }
 0x275   : > { %v4475_v18 = vrot.slane %v4461_v33, %v8286_v7  ;;  %v4305_v31 = vrot.slane %v4283_v9, %v8286_v7  ;;  %v3050_v52 = vrot.slane %v9080_v29, %v8257_v34  ;;  %v3054_v62 = vrot.slane %v9080_v29, %v8263_v63 }
 0x276   : > { %v4312_v14 = vrot.slane %v4284_v13, %v8286_v7  ;;  %v4313_v39 = vcombine.low %v4291_v48, %v4298_v23  ;;  %v3058_v1 = vrot.slane %v9080_v29, %v8266_v46  ;;  %v3062_v38 = vrot.slane %v9080_v29, %v8269_v11 }
 0x277   : > { %v4476_v5 = vcombine.low %v4468_v61, %v4475_v18  ;;  %v3066_v37 = vrot.slane %v9080_v29, %v8272_v24  ;;  %v3070_v6 = vrot.slane %v9080_v29, %v8275_v56  ;;  %v3074_v51 = vrot.slane %v9080_v29, %v8278_v36 }
 0x278   : > { %v4314_v30 = vcombine.low %v4305_v31, %v4312_v14  ;;  %v4321_v21 = vrot.slane %v4313_v39, %v8286_v7  ;;  %v3078_v25 = vrot.slane %v9080_v29, %v8281_v43  ;;  %v5996_v0 = vcombine.low %v3050_v52, %v3054_v62  ;;  %v1194_v29 = vpop.xlane.xlu1 %1193 }
 0x279   : > { %6599 = vperm.xlu1 %7508, %v4476_v5   ;;  %v5997_v44 = vcombine.low %v3058_v1, %v3062_v38  ;;  %v5998_v45 = vcombine.low %v3066_v37, %v3070_v6  ;;  %v2954_v20 = vrot.slane %v9027_v16, %v8257_v34  ;;  %v2958_v22 = vrot.slane %v9027_v16, %v8263_v63 }
 0x27a   : > { %v4328_v49 = vrot.slane %v4314_v30, %v8286_v7  ;;  %v5999_v26 = vcombine.low %v3074_v51, %v3078_v25  ;;  %v6006_v4 = vrot.slane %v5996_v0, %v8286_v7  ;;  %v2962_v27 = vrot.slane %v9027_v16, %v8266_v46 }
 0x27b   : > { %v6013_v8 = vrot.slane %v5997_v44, %v8286_v7  ;;  %v6020_v12 = vrot.slane %v5998_v45, %v8286_v7  ;;  %v2966_v2 = vrot.slane %v9027_v16, %v8269_v11  ;;  %v2970_v60 = vrot.slane %v9027_v16, %v8272_v24 }
 0x27c   : > { %v4329_v50 = vcombine.low %v4321_v21, %v4328_v49  ;;  %v6027_v53 = vrot.slane %v5999_v26, %v8286_v7  ;;  %v2974_v19 = vrot.slane %v9027_v16, %v8275_v56  ;;  %v2978_v35 = vrot.slane %v9027_v16, %v8278_v36 }
 0x27d   : > { %v6028_v3 = vcombine.low %v6006_v4, %v6013_v8  ;;  %v2982_v57 = vrot.slane %v9027_v16, %v8281_v43  ;;  %v5849_v10 = vcombine.low %v2954_v20, %v2958_v22  ;;  %v5850_v33 = vcombine.low %v2962_v27, %v2966_v2  ;;  %v1191_v8 = vpop.xlane.xlu0 %1190 }
 0x27e   : > { %v9277_v9 = vadd.f32 %v8260_v54, %v1095_v15  ;;  %6590 = vperm.xlu0 %7507, %v4329_v50   ;;  %v9280_v61 = vadd.f32 %v8260_v54, %v1194_v29  ;;  %v6029_v13 = vcombine.low %v6020_v12, %v6027_v53  ;;  %v5851_v48 = vcombine.low %v2970_v60, %v2974_v19 }
 0x27f   : > { %v6036_v23 = vrot.slane %v6028_v3, %v8286_v7  ;;  %v5852_v18 = vcombine.low %v2978_v35, %v2982_v57  ;;  %v5859_v31 = vrot.slane %v5849_v10, %v8286_v7  ;;  %v5866_v52 = vrot.slane %v5850_v33, %v8286_v7 }
 0x280   : > { %v6043_v16 = vrot.slane %v6029_v13, %v8286_v7  ;;  %v5873_v62 = vrot.slane %v5851_v48, %v8286_v7  ;;  %v2090_v14 = vrot.slane %v9130_v42, %v8257_v34  ;;  %v2094_v39 = vrot.slane %v9130_v42, %v8263_v63 }
 0x281   : > { %v5880_v1 = vrot.slane %v5852_v18, %v8286_v7  ;;  %v5881_v38 = vcombine.low %v5859_v31, %v5866_v52  ;;  %v2098_v5 = vrot.slane %v9130_v42, %v8266_v46  ;;  %v2102_v37 = vrot.slane %v9130_v42, %v8269_v11 }
 0x282   : > { %v6044_v6 = vcombine.low %v6036_v23, %v6043_v16  ;;  %v2106_v51 = vrot.slane %v9130_v42, %v8272_v24  ;;  %v2110_v30 = vrot.slane %v9130_v42, %v8275_v56  ;;  %v2114_v21 = vrot.slane %v9130_v42, %v8278_v36 }
 0x283   : > { %v5882_v25 = vcombine.low %v5873_v62, %v5880_v1  ;;  %v5889_v0 = vrot.slane %v5881_v38, %v8286_v7  ;;  %v2118_v44 = vrot.slane %v9130_v42, %v8281_v43  ;;  %v4526_v45 = vcombine.low %v2090_v14, %v2094_v39  ;;  %v1104_v42 = vpop.xlane.xlu1 %1103 }
 0x284   : > { %6695 = vperm.xlu1 %7508, %v6044_v6   ;;  %v4527_v20 = vcombine.low %v2098_v5, %v2102_v37  ;;  %v4528_v22 = vcombine.low %v2106_v51, %v2110_v30  ;;  %v1994_v49 = vrot.slane %v9077_v28, %v8257_v34  ;;  %v1998_v26 = vrot.slane %v9077_v28, %v8263_v63 }
 0x285   : > { %v5896_v4 = vrot.slane %v5882_v25, %v8286_v7  ;;  %v4529_v27 = vcombine.low %v2114_v21, %v2118_v44  ;;  %v4536_v15 = vrot.slane %v4526_v45, %v8286_v7  ;;  %v2002_v29 = vrot.slane %v9077_v28, %v8266_v46 }
 0x286   : > { %v4543_v12 = vrot.slane %v4527_v20, %v8286_v7  ;;  %v4550_v2 = vrot.slane %v4528_v22, %v8286_v7  ;;  %v2006_v60 = vrot.slane %v9077_v28, %v8269_v11  ;;  %v2010_v50 = vrot.slane %v9077_v28, %v8272_v24 }
 0x287   : > { %v5897_v53 = vcombine.low %v5889_v0, %v5896_v4  ;;  %v4557_v19 = vrot.slane %v4529_v27, %v8286_v7  ;;  %v2014_v35 = vrot.slane %v9077_v28, %v8275_v56  ;;  %v2018_v3 = vrot.slane %v9077_v28, %v8278_v36 }
 0x288   : > { %v4558_v57 = vcombine.low %v4536_v15, %v4543_v12  ;;  %v2022_v10 = vrot.slane %v9077_v28, %v8281_v43  ;;  %v4379_v33 = vcombine.low %v1994_v49, %v1998_v26  ;;  %v4380_v13 = vcombine.low %v2002_v29, %v2006_v60  ;;  %v1101_v12 = vpop.xlane.xlu0 %1100 }
 0x289   : > { %v9327_v48 = vadd.f32 %v8260_v54, %v1191_v8  ;;  %6686 = vperm.xlu0 %7507, %v5897_v53   ;;  %v9330_v23 = vadd.f32 %v8260_v54, %v1104_v42  ;;  %v4559_v18 = vcombine.low %v4550_v2, %v4557_v19  ;;  %v4381_v31 = vcombine.low %v2010_v50, %v2014_v35 }
 0x28a   : > { %v4566_v52 = vrot.slane %v4558_v57, %v8286_v7  ;;  %v4382_v16 = vcombine.low %v2018_v3, %v2022_v10  ;;  %v4389_v62 = vrot.slane %v4379_v33, %v8286_v7  ;;  %v4396_v14 = vrot.slane %v4380_v13, %v8286_v7 }
 0x28b   : > { %v4573_v28 = vrot.slane %v4559_v18, %v8286_v7  ;;  %v4403_v39 = vrot.slane %v4381_v31, %v8286_v7  ;;  %v3114_v1 = vrot.slane %v9180_v47, %v8257_v34  ;;  %v3118_v38 = vrot.slane %v9180_v47, %v8263_v63 }
 0x28c   : > { %v4410_v5 = vrot.slane %v4382_v16, %v8286_v7  ;;  %v4411_v37 = vcombine.low %v4389_v62, %v4396_v14  ;;  %v3122_v6 = vrot.slane %v9180_v47, %v8266_v46  ;;  %v3126_v51 = vrot.slane %v9180_v47, %v8269_v11 }
 0x28d   : > { %v4574_v30 = vcombine.low %v4566_v52, %v4573_v28  ;;  %v3130_v21 = vrot.slane %v9180_v47, %v8272_v24  ;;  %v3134_v25 = vrot.slane %v9180_v47, %v8275_v56  ;;  %v3138_v0 = vrot.slane %v9180_v47, %v8278_v36 }
 0x28e   : > { %v4412_v44 = vcombine.low %v4403_v39, %v4410_v5  ;;  %v4419_v45 = vrot.slane %v4411_v37, %v8286_v7  ;;  %v3142_v20 = vrot.slane %v9180_v47, %v8281_v43  ;;  %v6094_v22 = vcombine.low %v3114_v1, %v3118_v38  ;;  %v1200_v47 = vpop.xlane.xlu1 %1199 }
 0x28f   : > { %6605 = vperm.xlu1 %7508, %v4574_v30   ;;  %v6095_v49 = vcombine.low %v3122_v6, %v3126_v51  ;;  %v6096_v26 = vcombine.low %v3130_v21, %v3134_v25  ;;  %v3018_v4 = vrot.slane %v9127_v32, %v8257_v34  ;;  %v3022_v27 = vrot.slane %v9127_v32, %v8263_v63 }
 0x290   : > { %v4426_v15 = vrot.slane %v4412_v44, %v8286_v7  ;;  %v6097_v29 = vcombine.low %v3138_v0, %v3142_v20  ;;  %v6104_v8 = vrot.slane %v6094_v22, %v8286_v7  ;;  %v3026_v42 = vrot.slane %v9127_v32, %v8266_v46 }
 0x291   : > { %v6111_v2 = vrot.slane %v6095_v49, %v8286_v7  ;;  %v6118_v60 = vrot.slane %v6096_v26, %v8286_v7  ;;  %v3030_v50 = vrot.slane %v9127_v32, %v8269_v11  ;;  %v3034_v53 = vrot.slane %v9127_v32, %v8272_v24 }
 0x292   : > { %v4427_v19 = vcombine.low %v4419_v45, %v4426_v15  ;;  %v6125_v35 = vrot.slane %v6097_v29, %v8286_v7  ;;  %v3038_v3 = vrot.slane %v9127_v32, %v8275_v56  ;;  %v3042_v57 = vrot.slane %v9127_v32, %v8278_v36 }
 0x293   : > { %v6126_v10 = vcombine.low %v6104_v8, %v6111_v2  ;;  %v3046_v33 = vrot.slane %v9127_v32, %v8281_v43  ;;  %v5947_v13 = vcombine.low %v3018_v4, %v3022_v27  ;;  %v5948_v18 = vcombine.low %v3026_v42, %v3030_v50  ;;  %v1197_v2 = vpop.xlane.xlu0 %1196 }
 0x294   : > { %v9377_v31 = vadd.f32 %v8260_v54, %v1101_v12  ;;  %6596 = vperm.xlu0 %7507, %v4427_v19   ;;  %v9380_v52 = vadd.f32 %v8260_v54, %v1200_v47  ;;  %v6127_v16 = vcombine.low %v6118_v60, %v6125_v35  ;;  %v5949_v62 = vcombine.low %v3034_v53, %v3038_v3 }
 0x295   : > { %v6134_v14 = vrot.slane %v6126_v10, %v8286_v7  ;;  %v5950_v28 = vcombine.low %v3042_v57, %v3046_v33  ;;  %v5957_v39 = vrot.slane %v5947_v13, %v8286_v7  ;;  %v5964_v1 = vrot.slane %v5948_v18, %v8286_v7 }
 0x296   : > { %v6141_v32 = vrot.slane %v6127_v16, %v8286_v7  ;;  %v5971_v38 = vrot.slane %v5949_v62, %v8286_v7  ;;  %v2154_v5 = vrot.slane %v9230_v59, %v8257_v34  ;;  %v2158_v37 = vrot.slane %v9230_v59, %v8263_v63 }
 0x297   : > { %v5978_v6 = vrot.slane %v5950_v28, %v8286_v7  ;;  %v5979_v51 = vcombine.low %v5957_v39, %v5964_v1  ;;  %v2162_v30 = vrot.slane %v9230_v59, %v8266_v46  ;;  %v2166_v21 = vrot.slane %v9230_v59, %v8269_v11 }
 0x298   : > { %v6142_v25 = vcombine.low %v6134_v14, %v6141_v32  ;;  %v2170_v0 = vrot.slane %v9230_v59, %v8272_v24  ;;  %v2174_v44 = vrot.slane %v9230_v59, %v8275_v56  ;;  %v2178_v45 = vrot.slane %v9230_v59, %v8278_v36 }
 0x299   : > { %v5980_v20 = vcombine.low %v5971_v38, %v5978_v6  ;;  %v5987_v22 = vrot.slane %v5979_v51, %v8286_v7  ;;  %v2182_v49 = vrot.slane %v9230_v59, %v8281_v43  ;;  %v4624_v26 = vcombine.low %v2154_v5, %v2158_v37  ;;  %v1110_v59 = vpop.xlane.xlu1 %1109 }
 0x29a   : > { %6701 = vperm.xlu1 %7508, %v6142_v25   ;;  %v4625_v4 = vcombine.low %v2162_v30, %v2166_v21  ;;  %v4626_v27 = vcombine.low %v2170_v0, %v2174_v44  ;;  %v2058_v15 = vrot.slane %v9177_v55, %v8257_v34  ;;  %v2062_v29 = vrot.slane %v9177_v55, %v8263_v63 }
 0x29b   : > { %v5994_v8 = vrot.slane %v5980_v20, %v8286_v7  ;;  %v4627_v42 = vcombine.low %v2178_v45, %v2182_v49  ;;  %v4634_v12 = vrot.slane %v4624_v26, %v8286_v7  ;;  %v2066_v47 = vrot.slane %v9177_v55, %v8266_v46 }
 0x29c   : > { %v4641_v60 = vrot.slane %v4625_v4, %v8286_v7  ;;  %v4648_v50 = vrot.slane %v4626_v27, %v8286_v7  ;;  %v2070_v53 = vrot.slane %v9177_v55, %v8269_v11  ;;  %v2074_v19 = vrot.slane %v9177_v55, %v8272_v24 }
 0x29d   : > { %v5995_v35 = vcombine.low %v5987_v22, %v5994_v8  ;;  %v4655_v3 = vrot.slane %v4627_v42, %v8286_v7  ;;  %v2078_v57 = vrot.slane %v9177_v55, %v8275_v56  ;;  %v2082_v10 = vrot.slane %v9177_v55, %v8278_v36 }
 0x29e   : > { %v4656_v33 = vcombine.low %v4634_v12, %v4641_v60  ;;  %v2086_v13 = vrot.slane %v9177_v55, %v8281_v43  ;;  %v4477_v18 = vcombine.low %v2058_v15, %v2062_v29  ;;  %v4478_v16 = vcombine.low %v2066_v47, %v2070_v53  ;;  %v1107_v12 = vpop.xlane.xlu0 %1106 }
 0x29f   : > { %v9427_v62 = vadd.f32 %v8260_v54, %v1197_v2  ;;  %6692 = vperm.xlu0 %7507, %v5995_v35   ;;  %v9430_v14 = vadd.f32 %v8260_v54, %v1110_v59  ;;  %v4657_v28 = vcombine.low %v4648_v50, %v4655_v3  ;;  %v4479_v39 = vcombine.low %v2074_v19, %v2078_v57 }
 0x2a0   : > { %v4664_v1 = vrot.slane %v4656_v33, %v8286_v7  ;;  %v4480_v32 = vcombine.low %v2082_v10, %v2086_v13  ;;  %v4487_v38 = vrot.slane %v4477_v18, %v8286_v7  ;;  %v4494_v5 = vrot.slane %v4478_v16, %v8286_v7 }
 0x2a1   : > { %v4671_v55 = vrot.slane %v4657_v28, %v8286_v7  ;;  %v4501_v37 = vrot.slane %v4479_v39, %v8286_v7  ;;  %v3178_v6 = vrot.slane %v9280_v61, %v8257_v34  ;;  %v3182_v51 = vrot.slane %v9280_v61, %v8263_v63 }
 0x2a2   : > { %v4508_v30 = vrot.slane %v4480_v32, %v8286_v7  ;;  %v4509_v21 = vcombine.low %v4487_v38, %v4494_v5  ;;  %v3186_v25 = vrot.slane %v9280_v61, %v8266_v46  ;;  %v3190_v0 = vrot.slane %v9280_v61, %v8269_v11 }
 0x2a3   : > { %v4672_v44 = vcombine.low %v4664_v1, %v4671_v55  ;;  %v3194_v45 = vrot.slane %v9280_v61, %v8272_v24  ;;  %v3198_v20 = vrot.slane %v9280_v61, %v8275_v56  ;;  %v3202_v22 = vrot.slane %v9280_v61, %v8278_v36 }
 0x2a4   : > { %v4510_v49 = vcombine.low %v4501_v37, %v4508_v30  ;;  %v4517_v26 = vrot.slane %v4509_v21, %v8286_v7  ;;  %v3206_v4 = vrot.slane %v9280_v61, %v8281_v43  ;;  %v6192_v27 = vcombine.low %v3178_v6, %v3182_v51  ;;  %v1206_v61 = vpop.xlane.xlu1 %1205  ;;  %v1203_v51 = vpop.xlane.xlu0 %1202 }
 0x2a5   : > { %6611 = vperm.xlu1 %7508, %v4672_v44   ;;  %v6193_v15 = vcombine.low %v3186_v25, %v3190_v0  ;;  %v6194_v29 = vcombine.low %v3194_v45, %v3198_v20  ;;  %v3082_v8 = vrot.slane %v9227_v58, %v8257_v34  ;;  %v3086_v42 = vrot.slane %v9227_v58, %v8263_v63 }
 0x2a6   : > { %v4524_v47 = vrot.slane %v4510_v49, %v8286_v7  ;;  %v6195_v2 = vcombine.low %v3202_v22, %v3206_v4  ;;  %v6202_v59 = vrot.slane %v6192_v27, %v8286_v7  ;;  %v3090_v60 = vrot.slane %v9227_v58, %v8266_v46 }
 0x2a7   : > { %v6209_v50 = vrot.slane %v6193_v15, %v8286_v7  ;;  %v6216_v53 = vrot.slane %v6194_v29, %v8286_v7  ;;  %v3094_v19 = vrot.slane %v9227_v58, %v8269_v11  ;;  %v3098_v35 = vrot.slane %v9227_v58, %v8272_v24 }
 0x2a8   : > { %v4525_v3 = vcombine.low %v4517_v26, %v4524_v47  ;;  %v6223_v57 = vrot.slane %v6195_v2, %v8286_v7  ;;  %v3102_v10 = vrot.slane %v9227_v58, %v8275_v56  ;;  %v3106_v33 = vrot.slane %v9227_v58, %v8278_v36  ;;  %v9492_v45 = vpop.xlane.xlu1 %1115 }
 0x2a9   : > { %v6224_v13 = vcombine.low %v6202_v59, %v6209_v50  ;;  %v3110_v18 = vrot.slane %v9227_v58, %v8281_v43  ;;  %v6045_v16 = vcombine.low %v3082_v8, %v3086_v42  ;;  %v6046_v28 = vcombine.low %v3090_v60, %v3094_v19  ;;  %v1113_v19 = vpop.xlane.xlu0 %1112 }
 0x2aa   : > { %v9477_v39 = vadd.f32 %v8260_v54, %v1107_v12  ;;  %6602 = vperm.xlu0 %7507, %v4525_v3   ;;  %v9480_v1 = vadd.f32 %v8260_v54, %v1206_v61  ;;  %v6225_v32 = vcombine.low %v6216_v53, %v6223_v57  ;;  %v6047_v38 = vcombine.low %v3098_v35, %v3102_v10 }
 0x2ab   : > { %v6232_v5 = vrot.slane %v6224_v13, %v8286_v7  ;;  %v6048_v55 = vcombine.low %v3106_v33, %v3110_v18  ;;  %v6055_v37 = vrot.slane %v6045_v16, %v8286_v7  ;;  %v6062_v6 = vrot.slane %v6046_v28, %v8286_v7 }
 0x2ac   : > { %v6239_v58 = vrot.slane %v6225_v32, %v8286_v7  ;;  %v6069_v30 = vrot.slane %v6047_v38, %v8286_v7  ;;  %v2218_v21 = vrot.slane %v9330_v23, %v8257_v34  ;;  %v2222_v25 = vrot.slane %v9330_v23, %v8263_v63  ;;  %v9526_v16 = vpop.xlane.xlu1 %1211 }
 0x2ad   : > { %v6076_v0 = vrot.slane %v6048_v55, %v8286_v7  ;;  %v6077_v44 = vcombine.low %v6055_v37, %v6062_v6  ;;  %v2226_v20 = vrot.slane %v9330_v23, %v8266_v46  ;;  %v2230_v22 = vrot.slane %v9330_v23, %v8269_v11 }
 0x2ae   : > { %v6240_v49 = vcombine.low %v6232_v5, %v6239_v58  ;;  %v2234_v26 = vrot.slane %v9330_v23, %v8272_v24  ;;  %v2238_v4 = vrot.slane %v9330_v23, %v8275_v56  ;;  %v2242_v27 = vrot.slane %v9330_v23, %v8278_v36 }
 0x2af   : > { %v6078_v15 = vcombine.low %v6069_v30, %v6076_v0  ;;  %v6085_v29 = vrot.slane %v6077_v44, %v8286_v7  ;;  %v2246_v8 = vrot.slane %v9330_v23, %v8281_v43  ;;  %v4722_v42 = vcombine.low %v2218_v21, %v2222_v25 }
 0x2b0   : > { %6707 = vperm.xlu1 %7508, %v6240_v49   ;;  %v4723_v12 = vcombine.low %v2226_v20, %v2230_v22  ;;  %v4724_v47 = vcombine.low %v2234_v26, %v2238_v4  ;;  %v2122_v2 = vrot.slane %v9277_v9, %v8257_v34  ;;  %v2126_v59 = vrot.slane %v9277_v9, %v8263_v63  ;;  %v9545_v22 = vpop.permute.xlu1 %6539 }
 0x2b1   : > { %v6092_v60 = vrot.slane %v6078_v15, %v8286_v7  ;;  %v4725_v61 = vcombine.low %v2242_v27, %v2246_v8  ;;  %v4732_v50 = vrot.slane %v4722_v42, %v8286_v7  ;;  %v2130_v53 = vrot.slane %v9277_v9, %v8266_v46 }
 0x2b2   : > { %v4739_v23 = vrot.slane %v4723_v12, %v8286_v7  ;;  %v4746_v35 = vrot.slane %v4724_v47, %v8286_v7  ;;  %v2134_v3 = vrot.slane %v9277_v9, %v8269_v11  ;;  %v2138_v57 = vrot.slane %v9277_v9, %v8272_v24 }
 0x2b3   : > { %v6093_v10 = vcombine.low %v6085_v29, %v6092_v60  ;;  %v4753_v33 = vrot.slane %v4725_v61, %v8286_v7  ;;  %v2142_v13 = vrot.slane %v9277_v9, %v8275_v56  ;;  %v2146_v18 = vrot.slane %v9277_v9, %v8278_v36 }
 0x2b4   : > { %v4754_v28 = vcombine.low %v4732_v50, %v4739_v23  ;;  %v2150_v32 = vrot.slane %v9277_v9, %v8281_v43  ;;  %v4575_v38 = vcombine.low %v2122_v2, %v2126_v59  ;;  %v4576_v5 = vcombine.low %v2130_v53, %v2134_v3 }
 0x2b5   : > { %v9531_v55 = vadd.f32 %v8260_v54, %v1203_v51  ;;  %6698 = vperm.xlu0 %7507, %v6093_v10   ;;  %v9534_v37 = vadd.f32 %v8260_v54, %v1113_v19  ;;  %v4755_v6 = vcombine.low %v4746_v35, %v4753_v33  ;;  %v4577_v58 = vcombine.low %v2138_v57, %v2142_v13  ;;  %v9575_v13 = vpop.permute.xlu1 %6635 }
 0x2b6   : > { %v4762_v30 = vrot.slane %v4754_v28, %v8286_v7  ;;  %v4578_v21 = vcombine.low %v2146_v18, %v2150_v32  ;;  %v4585_v25 = vrot.slane %v4575_v38, %v8286_v7  ;;  %v4592_v0 = vrot.slane %v4576_v5, %v8286_v7 }
 0x2b7   : > { %v4769_v9 = vrot.slane %v4755_v6, %v8286_v7  ;;  %v4599_v44 = vrot.slane %v4577_v58, %v8286_v7  ;;  %v3242_v51 = vrot.slane %v9380_v52, %v8257_v34  ;;  %v3246_v20 = vrot.slane %v9380_v52, %v8263_v63 }
 0x2b8   : > { %v4606_v49 = vrot.slane %v4578_v21, %v8286_v7  ;;  %v4607_v26 = vcombine.low %v4585_v25, %v4592_v0  ;;  %v3250_v4 = vrot.slane %v9380_v52, %v8266_v46  ;;  %v3254_v27 = vrot.slane %v9380_v52, %v8269_v11 }
 0x2b9   : > { %v4770_v15 = vcombine.low %v4762_v30, %v4769_v9  ;;  %v3258_v29 = vrot.slane %v9380_v52, %v8272_v24  ;;  %v3262_v8 = vrot.slane %v9380_v52, %v8275_v56  ;;  %v3266_v42 = vrot.slane %v9380_v52, %v8278_v36 }
 0x2ba   : > { %v4608_v12 = vcombine.low %v4599_v44, %v4606_v49  ;;  %v4615_v47 = vrot.slane %v4607_v26, %v8286_v7  ;;  %v3270_v2 = vrot.slane %v9380_v52, %v8281_v43  ;;  %v6290_v59 = vcombine.low %v3242_v51, %v3246_v20 }
 0x2bb   : > { %6617 = vperm.xlu1 %7508, %v4770_v15   ;;  %v6291_v60 = vcombine.low %v3250_v4, %v3254_v27  ;;  %v6292_v61 = vcombine.low %v3258_v29, %v3262_v8  ;;  %v3146_v50 = vrot.slane %v9327_v48, %v8257_v34  ;;  %v3150_v53 = vrot.slane %v9327_v48, %v8263_v63 }
 0x2bc   : > { %v4622_v19 = vrot.slane %v4608_v12, %v8286_v7  ;;  %v6293_v23 = vcombine.low %v3266_v42, %v3270_v2  ;;  %v6300_v35 = vrot.slane %v6290_v59, %v8286_v7  ;;  %v3154_v3 = vrot.slane %v9327_v48, %v8266_v46  ;;  %v9602_v12 = vpop.permute.xlu1 %6536 }
 0x2bd   : > { %v6307_v52 = vrot.slane %v6291_v60, %v8286_v7  ;;  %v6314_v57 = vrot.slane %v6292_v61, %v8286_v7  ;;  %v3158_v10 = vrot.slane %v9327_v48, %v8269_v11  ;;  %v3162_v33 = vrot.slane %v9327_v48, %v8272_v24 }
 0x2be   : > { %v4623_v18 = vcombine.low %v4615_v47, %v4622_v19  ;;  %v6321_v28 = vrot.slane %v6293_v23, %v8286_v7  ;;  %v3166_v32 = vrot.slane %v9327_v48, %v8275_v56  ;;  %v3170_v38 = vrot.slane %v9327_v48, %v8278_v36 }
 0x2bf   : > { %v6322_v5 = vcombine.low %v6300_v35, %v6307_v52  ;;  %v3174_v6 = vrot.slane %v9327_v48, %v8281_v43  ;;  %v6143_v58 = vcombine.low %v3146_v50, %v3150_v53  ;;  %v6144_v30 = vcombine.low %v3154_v3, %v3158_v10 }
 0x2c0   : > { %6608 = vperm.xlu0 %7507, %v4623_v18   ;;  %v6323_v21 = vcombine.low %v6314_v57, %v6321_v28  ;;  %v6145_v25 = vcombine.low %v3162_v33, %v3166_v32  ;;  %v2186_v0 = vrot.slane %v9377_v31, %v8257_v34  ;;  %v2190_v9 = vrot.slane %v9377_v31, %v8263_v63 }
 0x2c1   : > { %v6330_v44 = vrot.slane %v6322_v5, %v8286_v7  ;;  %v6146_v51 = vcombine.low %v3170_v38, %v3174_v6  ;;  %v6153_v20 = vrot.slane %v6143_v58, %v8286_v7  ;;  %v6160_v49 = vrot.slane %v6144_v30, %v8286_v7 }
 0x2c2   : > { %v6337_v48 = vrot.slane %v6323_v21, %v8286_v7  ;;  %v6167_v26 = vrot.slane %v6145_v25, %v8286_v7  ;;  %v2194_v4 = vrot.slane %v9377_v31, %v8266_v46  ;;  %v2198_v27 = vrot.slane %v9377_v31, %v8269_v11  ;;  %v9630_v21 = vpop.permute.xlu1 %6545 }
 0x2c3   : > { %v6174_v15 = vrot.slane %v6146_v51, %v8286_v7  ;;  %v6175_v29 = vcombine.low %v6153_v20, %v6160_v49  ;;  %v2202_v8 = vrot.slane %v9377_v31, %v8272_v24  ;;  %v2206_v42 = vrot.slane %v9377_v31, %v8275_v56 }
 0x2c4   : > { %v6338_v47 = vcombine.low %v6330_v44, %v6337_v48  ;;  %v2210_v2 = vrot.slane %v9377_v31, %v8278_v36  ;;  %v2214_v59 = vrot.slane %v9377_v31, %v8281_v43  ;;  %v4673_v60 = vcombine.low %v2186_v0, %v2190_v9 }
 0x2c5   : > { %v6176_v61 = vcombine.low %v6167_v26, %v6174_v15  ;;  %v6183_v50 = vrot.slane %v6175_v29, %v8286_v7  ;;  %v4674_v53 = vcombine.low %v2194_v4, %v2198_v27  ;;  %v4675_v19 = vcombine.low %v2202_v8, %v2206_v42 }
 0x2c6   : > { %6713 = vperm.xlu1 %7508, %v6338_v47   ;;  %v4676_v23 = vcombine.low %v2210_v2, %v2214_v59  ;;  %v4683_v35 = vrot.slane %v4673_v60, %v8286_v7  ;;  %v3210_v3 = vrot.slane %v9427_v62, %v8257_v34  ;;  %v3214_v52 = vrot.slane %v9427_v62, %v8263_v63 }
 0x2c7   : > { %v6190_v57 = vrot.slane %v6176_v61, %v8286_v7  ;;  %v4690_v31 = vrot.slane %v4674_v53, %v8286_v7  ;;  %v4697_v10 = vrot.slane %v4675_v19, %v8286_v7  ;;  %v3218_v33 = vrot.slane %v9427_v62, %v8266_v46 }
 0x2c8   : > { %v4704_v18 = vrot.slane %v4676_v23, %v8286_v7  ;;  %v3222_v28 = vrot.slane %v9427_v62, %v8269_v11  ;;  %v3226_v32 = vrot.slane %v9427_v62, %v8272_v24  ;;  %v3230_v38 = vrot.slane %v9427_v62, %v8275_v56  ;;  %v9654_v23 = vpop.permute.xlu1 %6641 }
 0x2c9   : > { %v6191_v5 = vcombine.low %v6183_v50, %v6190_v57  ;;  %v4705_v6 = vcombine.low %v4683_v35, %v4690_v31  ;;  %v3234_v58 = vrot.slane %v9427_v62, %v8278_v36  ;;  %v3238_v30 = vrot.slane %v9427_v62, %v8281_v43 }
 0x2ca   : > { %v4706_v25 = vcombine.low %v4697_v10, %v4704_v18  ;;  %v6241_v0 = vcombine.low %v3210_v3, %v3214_v52  ;;  %v6242_v9 = vcombine.low %v3218_v33, %v3222_v28  ;;  %v6243_v44 = vcombine.low %v3226_v32, %v3230_v38 }
 0x2cb   : > { %6704 = vperm.xlu0 %7507, %v6191_v5   ;;  %v4713_v51 = vrot.slane %v4705_v6, %v8286_v7  ;;  %v6244_v20 = vcombine.low %v3234_v58, %v3238_v30  ;;  %v2282_v49 = vrot.slane %v9430_v14, %v8257_v34  ;;  %v2286_v48 = vrot.slane %v9430_v14, %v8263_v63 }
 0x2cc   : > { %v4720_v26 = vrot.slane %v4706_v25, %v8286_v7  ;;  %v6251_v62 = vrot.slane %v6241_v0, %v8286_v7  ;;  %v6258_v4 = vrot.slane %v6242_v9, %v8286_v7  ;;  %v6265_v27 = vrot.slane %v6243_v44, %v8286_v7 }
 0x2cd   : > { %v6272_v15 = vrot.slane %v6244_v20, %v8286_v7  ;;  %v2290_v29 = vrot.slane %v9430_v14, %v8266_v46  ;;  %v2294_v8 = vrot.slane %v9430_v14, %v8269_v11  ;;  %v2298_v42 = vrot.slane %v9430_v14, %v8272_v24 }
 0x2ce   : > { %v4721_v47 = vcombine.low %v4713_v51, %v4720_v26  ;;  %v6273_v2 = vcombine.low %v6251_v62, %v6258_v4  ;;  %v2302_v59 = vrot.slane %v9430_v14, %v8275_v56  ;;  %v2306_v60 = vrot.slane %v9430_v14, %v8278_v36  ;;  %v9681_v26 = vpop.permute.xlu1 %6542 }
 0x2cf   : > { %v6274_v61 = vcombine.low %v6265_v27, %v6272_v15  ;;  %v2310_v50 = vrot.slane %v9430_v14, %v8281_v43  ;;  %v4820_v53 = vcombine.low %v2282_v49, %v2286_v48  ;;  %v4821_v19 = vcombine.low %v2290_v29, %v2294_v8 }
 0x2d0   : > { %6614 = vperm.xlu0 %7507, %v4721_v47   ;;  %v6281_v35 = vrot.slane %v6273_v2, %v8286_v7  ;;  %v4822_v3 = vcombine.low %v2298_v42, %v2302_v59  ;;  %v2250_v52 = vrot.slane %v9477_v39, %v8257_v34  ;;  %v2254_v57 = vrot.slane %v9477_v39, %v8263_v63 }
 0x2d1   : > { %v6288_v31 = vrot.slane %v6274_v61, %v8286_v7  ;;  %v4823_v10 = vcombine.low %v2306_v60, %v2310_v50  ;;  %v4830_v33 = vrot.slane %v4820_v53, %v8286_v7  ;;  %v4837_v14 = vrot.slane %v4821_v19, %v8286_v7 }
 0x2d2   : > { %v4844_v18 = vrot.slane %v4822_v3, %v8286_v7  ;;  %v2258_v28 = vrot.slane %v9477_v39, %v8266_v46  ;;  %v2262_v32 = vrot.slane %v9477_v39, %v8269_v11  ;;  %v2266_v38 = vrot.slane %v9477_v39, %v8272_v24 }
 0x2d3   : > { %v6289_v5 = vcombine.low %v6281_v35, %v6288_v31  ;;  %v4851_v6 = vrot.slane %v4823_v10, %v8286_v7  ;;  %v4852_v58 = vcombine.low %v4830_v33, %v4837_v14  ;;  %v2270_v30 = vrot.slane %v9477_v39, %v8275_v56 }
 0x2d4   : > { %v2274_v25 = vrot.slane %v9477_v39, %v8278_v36  ;;  %v2278_v0 = vrot.slane %v9477_v39, %v8281_v43  ;;  %v4771_v9 = vcombine.low %v2250_v52, %v2254_v57  ;;  %v4772_v44 = vcombine.low %v2258_v28, %v2262_v32 }
 0x2d5   : > { %6710 = vperm.xlu1 %7508, %v6289_v5   ;;  %v4853_v51 = vcombine.low %v4844_v18, %v4851_v6  ;;  %v4860_v20 = vrot.slane %v4852_v58, %v8286_v7  ;;  %v4773_v49 = vcombine.low %v2266_v38, %v2270_v30  ;;  %v3306_v48 = vrot.slane %v9480_v1, %v8257_v34  ;;  %v9708_v18 = vpop.permute.xlu1 %6551 }
 0x2d6   : > { %v4774_v62 = vcombine.low %v2274_v25, %v2278_v0  ;;  %v4781_v4 = vrot.slane %v4771_v9, %v8286_v7  ;;  %v4788_v27 = vrot.slane %v4772_v44, %v8286_v7  ;;  %v3310_v39 = vrot.slane %v9480_v1, %v8263_v63 }
 0x2d7   : > { %v4867_v15 = vrot.slane %v4853_v51, %v8286_v7  ;;  %v4795_v29 = vrot.slane %v4773_v49, %v8286_v7  ;;  %v3314_v8 = vrot.slane %v9480_v1, %v8266_v46  ;;  %v3318_v42 = vrot.slane %v9480_v1, %v8269_v11 }
 0x2d8   : > { %v4802_v47 = vrot.slane %v4774_v62, %v8286_v7  ;;  %v4803_v2 = vcombine.low %v4781_v4, %v4788_v27  ;;  %v3322_v59 = vrot.slane %v9480_v1, %v8272_v24  ;;  %v3326_v60 = vrot.slane %v9480_v1, %v8275_v56 }
 0x2d9   : > { %v4868_v61 = vcombine.low %v4860_v20, %v4867_v15  ;;  %v3330_v50 = vrot.slane %v9480_v1, %v8278_v36  ;;  %v3334_v53 = vrot.slane %v9480_v1, %v8281_v43  ;;  %v6388_v19 = vcombine.low %v3306_v48, %v3310_v39 }
 0x2da   : > { %v4804_v35 = vcombine.low %v4795_v29, %v4802_v47  ;;  %v4811_v3 = vrot.slane %v4803_v2, %v8286_v7  ;;  %v6389_v52 = vcombine.low %v3314_v8, %v3318_v42  ;;  %v6390_v57 = vcombine.low %v3322_v59, %v3326_v60 }
 0x2db   : > { %6623 = vperm.xlu1 %7508, %v4868_v61   ;;  %v6391_v31 = vcombine.low %v3330_v50, %v3334_v53  ;;  %v6398_v10 = vrot.slane %v6388_v19, %v8286_v7  ;;  %v2314_v33 = vrot.slane %v9534_v37, %v8257_v34  ;;  %v2318_v14 = vrot.slane %v9534_v37, %v8263_v63 }
 0x2dc   : > { %v4818_v1 = vrot.slane %v4804_v35, %v8286_v7  ;;  %v6405_v28 = vrot.slane %v6389_v52, %v8286_v7  ;;  %v6412_v32 = vrot.slane %v6390_v57, %v8286_v7  ;;  %v2322_v38 = vrot.slane %v9534_v37, %v8266_v46 }
 0x2dd   : > { %v6419_v5 = vrot.slane %v6391_v31, %v8286_v7  ;;  %v2326_v6 = vrot.slane %v9534_v37, %v8269_v11  ;;  %v2330_v58 = vrot.slane %v9534_v37, %v8272_v24  ;;  %v2334_v30 = vrot.slane %v9534_v37, %v8275_v56 }
 0x2de   : > { %v4819_v25 = vcombine.low %v4811_v3, %v4818_v1  ;;  %v6420_v0 = vcombine.low %v6398_v10, %v6405_v28  ;;  %v2338_v9 = vrot.slane %v9534_v37, %v8278_v36  ;;  %v2342_v44 = vrot.slane %v9534_v37, %v8281_v43  ;;  %v9733_v37 = vpop.permute.xlu1 %6647  ;;  %v1209_v3 = vpop.xlane.xlu0 %1208 }
 0x2df   : > { %v6421_v51 = vcombine.low %v6412_v32, %v6419_v5  ;;  %v4869_v20 = vcombine.low %v2314_v33, %v2318_v14  ;;  %v4870_v49 = vcombine.low %v2322_v38, %v2326_v6  ;;  %v4871_v48 = vcombine.low %v2330_v58, %v2334_v30 }
 0x2e0   : > { %6620 = vperm.xlu0 %7507, %v4819_v25   ;;  %v6428_v62 = vrot.slane %v6420_v0, %v8286_v7  ;;  %v4872_v4 = vcombine.low %v2338_v9, %v2342_v44  ;;  %v3274_v27 = vrot.slane %v9531_v55, %v8257_v34  ;;  %v1270_v42 = vadd.f32 %v8260_v54, %v8783_v41 }
 0x2e1   : > { %v6435_v39 = vrot.slane %v6421_v51, %v8286_v7  ;;  %v4879_v15 = vrot.slane %v4869_v20, %v8286_v7  ;;  %v4886_v29 = vrot.slane %v4870_v49, %v8286_v7  ;;  %v4893_v8 = vrot.slane %v4871_v48, %v8286_v7 }
 0x2e2   : > { %v4900_v47 = vrot.slane %v4872_v4, %v8286_v7  ;;  %v3278_v2 = vrot.slane %v9531_v55, %v8263_v63  ;;  %v3282_v59 = vrot.slane %v9531_v55, %v8266_v46  ;;  %v3286_v50 = vrot.slane %v9531_v55, %v8269_v11  ;;  %v9760_v58 = vpop.permute.xlu1 %6548  ;;  %v9768_v20 = vpop.permute.xlu0 %6632 }
 0x2e3   : > { %v6436_v60 = vcombine.low %v6428_v62, %v6435_v39  ;;  %v4901_v61 = vcombine.low %v4879_v15, %v4886_v29  ;;  %v3290_v53 = vrot.slane %v9531_v55, %v8272_v24  ;;  %v3294_v41 = vrot.slane %v9531_v55, %v8275_v56 }
 0x2e4   : > { %v4902_v19 = vcombine.low %v4893_v8, %v4900_v47  ;;  %v3298_v35 = vrot.slane %v9531_v55, %v8278_v36  ;;  %v3302_v57 = vrot.slane %v9531_v55, %v8281_v43  ;;  %v6339_v31 = vcombine.low %v3274_v27, %v3278_v2 }
 0x2e5   : > { %6719 = vperm.xlu1 %7508, %v6436_v60   ;;  %v4909_v52 = vrot.slane %v4901_v61, %v8286_v7  ;;  %v6340_v10 = vcombine.low %v3282_v59, %v3286_v50  ;;  %v1254_v33 = vadd.f32 %v8260_v54, %v9492_v45  ;;  %v6341_v1 = vcombine.low %v3290_v53, %v3294_v41 }
 0x2e6   : > { %v4916_v14 = vrot.slane %v4902_v19, %v8286_v7  ;;  %v2858_v28 = vrot.slane %v1270_v42, %v8257_v34  ;;  %v6342_v32 = vcombine.low %v3298_v35, %v3302_v57  ;;  %v6349_v38 = vrot.slane %v6339_v31, %v8286_v7  ;;  %v9781_v53 = vpop.permute.xlu1 %6557 }
 0x2e7   : > { %v6356_v5 = vrot.slane %v6340_v10, %v8286_v7  ;;  %v2862_v6 = vrot.slane %v1270_v42, %v8263_v63  ;;  %v6363_v30 = vrot.slane %v6341_v1, %v8286_v7  ;;  %v2866_v25 = vrot.slane %v1270_v42, %v8266_v46 }
 0x2e8   : > { %v4917_v55 = vcombine.low %v4909_v52, %v4916_v14  ;;  %v2870_v45 = vrot.slane %v1270_v42, %v8269_v11  ;;  %v6370_v0 = vrot.slane %v6342_v32, %v8286_v7  ;;  %v2874_v44 = vrot.slane %v1270_v42, %v8272_v24  ;;  %v9789_v14 = vpop.permute.xlu0 %6638 }
 0x2e9   : > { %v6371_v9 = vcombine.low %v6349_v38, %v6356_v5  ;;  %v2878_v51 = vrot.slane %v1270_v42, %v8275_v56  ;;  %v2882_v49 = vrot.slane %v1270_v42, %v8278_v36  ;;  %v2886_v48 = vrot.slane %v1270_v42, %v8281_v43 }
 0x2ea   : > { %6626 = vperm.xlu0 %7507, %v4917_v55   ;;  %v5702_v62 = vcombine.low %v2858_v28, %v2862_v6  ;;  %v5703_v4 = vcombine.low %v2866_v25, %v2870_v45  ;;  %v1285_v27 = vadd.f32 %v8260_v54, %v1209_v3  ;;  %v6372_v39 = vcombine.low %v6363_v30, %v6370_v0 }
 0x2eb   : > { %v6379_v15 = vrot.slane %v6371_v9, %v8286_v7  ;;  %v5704_v29 = vcombine.low %v2874_v44, %v2878_v51  ;;  %v5705_v8 = vcombine.low %v2882_v49, %v2886_v48  ;;  %v2346_v59 = vrot.slane %v1254_v33, %v8257_v34  ;;  %v9800_v44 = vpop.permute.xlu1 %6653 }
 0x2ec   : > { %v5712_v47 = vrot.slane %v5702_v62, %v8286_v7  ;;  %v5719_v2 = vrot.slane %v5703_v4, %v8286_v7  ;;  %v6386_v60 = vrot.slane %v6372_v39, %v8286_v7  ;;  %v2350_v42 = vrot.slane %v1254_v33, %v8263_v63  ;;  %v9798_v9 = vpop.permute.xlu0 %6644 }
 0x2ed   : > { %v5726_v61 = vrot.slane %v5704_v29, %v8286_v7  ;;  %v2354_v50 = vrot.slane %v1254_v33, %v8266_v46  ;;  %v5733_v19 = vrot.slane %v5705_v8, %v8286_v7  ;;  %v2358_v35 = vrot.slane %v1254_v33, %v8269_v11 }
 0x2ee   : > { %v5734_v41 = vcombine.low %v5712_v47, %v5719_v2  ;;  %v2362_v3 = vrot.slane %v1254_v33, %v8272_v24  ;;  %v6387_v52 = vcombine.low %v6379_v15, %v6386_v60  ;;  %v2366_v57 = vrot.slane %v1254_v33, %v8275_v56 }
 0x2ef   : > { %v2370_v31 = vrot.slane %v1254_v33, %v8278_v36  ;;  %v2374_v10 = vrot.slane %v1254_v33, %v8281_v43  ;;  %v5735_v1 = vcombine.low %v5726_v61, %v5733_v19  ;;  %v4918_v32 = vcombine.low %v2346_v59, %v2350_v42 }
 0x2f0   : > { %v5742_v28 = vrot.slane %v5734_v41, %v8286_v7  ;;  %v4919_v38 = vcombine.low %v2354_v50, %v2358_v35  ;;  %6716 = vperm.xlu1 %7508, %v6387_v52   ;;  %v4920_v5 = vcombine.low %v2362_v3, %v2366_v57  ;;  %v3338_v0 = vrot.slane %v1285_v27, %v8257_v34  ;;  %v9813_v50 = vpop.permute.xlu0 %6650  ;;  %v9817_v3 = vpop.permute.xlu1 %6554 }
 0x2f1   : > { %v4921_v6 = vcombine.low %v2370_v31, %v2374_v10  ;;  %v5749_v55 = vrot.slane %v5735_v1, %v8286_v7  ;;  %v4928_v30 = vrot.slane %v4918_v32, %v8286_v7  ;;  %v3342_v48 = vrot.slane %v1285_v27, %v8263_v63 }
 0x2f2   : > { %v4935_v25 = vrot.slane %v4919_v38, %v8286_v7  ;;  %v4942_v45 = vrot.slane %v4920_v5, %v8286_v7  ;;  %v3346_v62 = vrot.slane %v1285_v27, %v8266_v46  ;;  %v1286_v4 = vadd.f32 %v8260_v54, %v9526_v16 }
 0x2f3   : > { %v4949_v33 = vrot.slane %v4921_v6, %v8286_v7  ;;  %v5750_v51 = vcombine.low %v5742_v28, %v5749_v55  ;;  %v3350_v15 = vrot.slane %v1285_v27, %v8269_v11  ;;  %v3354_v8 = vrot.slane %v1285_v27, %v8272_v24 }
 0x2f4   : > { %v4950_v49 = vcombine.low %v4928_v30, %v4935_v25  ;;  %v3358_v47 = vrot.slane %v1285_v27, %v8275_v56  ;;  %v3362_v2 = vrot.slane %v1285_v27, %v8278_v36  ;;  %v3366_v60 = vrot.slane %v1285_v27, %v8281_v43 }
 0x2f5   : > { %v4951_v39 = vcombine.low %v4942_v45, %v4949_v33  ;;  %6677 = vperm.xlu0 %7507, %v5750_v51   ;;  %v6437_v61 = vcombine.low %v3338_v0, %v3342_v48  ;;  %v6438_v42 = vcombine.low %v3346_v62, %v3350_v15  ;;  %v3370_v57 = vrot.slane %v1286_v4, %v8257_v34  ;;  %v9829_v34 = vpop.permute.xlu0 %6560  ;;  %v9833_v33 = vpop.permute.xlu1 %6563 }
 0x2f6   : > { %v4958_v29 = vrot.slane %v4950_v49, %v8286_v7  ;;  %v6439_v54 = vcombine.low %v3354_v8, %v3358_v47  ;;  %v6440_v19 = vcombine.low %v3362_v2, %v3366_v60  ;;  %v3374_v10 = vrot.slane %v1286_v4, %v8263_v63 }
 0x2f7   : > { %v4965_v59 = vrot.slane %v4951_v39, %v8286_v7  ;;  %v6447_v41 = vrot.slane %v6437_v61, %v8286_v7  ;;  %v6454_v35 = vrot.slane %v6438_v42, %v8286_v7  ;;  %v3378_v1 = vrot.slane %v1286_v4, %v8266_v46 }
 0x2f8   : > { %v6461_v52 = vrot.slane %v6439_v54, %v8286_v7  ;;  %v6468_v27 = vrot.slane %v6440_v19, %v8286_v7  ;;  %v3382_v28 = vrot.slane %v1286_v4, %v8269_v11  ;;  %v3386_v32 = vrot.slane %v1286_v4, %v8272_v24 }
 0x2f9   : > { %v4966_v16 = vcombine.low %v4958_v29, %v4965_v59  ;;  %v6469_v31 = vcombine.low %v6447_v41, %v6454_v35  ;;  %v3390_v6 = vrot.slane %v1286_v4, %v8275_v56  ;;  %v3394_v55 = vrot.slane %v1286_v4, %v8278_v36 }
 0x2fa   : > { %v6470_v38 = vcombine.low %v6461_v52, %v6468_v27  ;;  %v3398_v30 = vrot.slane %v1286_v4, %v8281_v43  ;;  %v6486_v25 = vcombine.low %v3370_v57, %v3374_v10  ;;  %v6487_v45 = vcombine.low %v3378_v1, %v3382_v28  ;;  %v9839_v43 = vpop.permute.xlu0 %6656  ;;  %v9842_v4 = vpop.permute.xlu1 %6659 }
 0x2fb   : > { %6629 = vperm.xlu1 %7508, %v4966_v16   ;;  %v6477_v5 = vrot.slane %v6469_v31, %v8286_v7  ;;  %v6488_v46 = vcombine.low %v3386_v32, %v3390_v6 }
 0x2fc   : > { %v6484_v63 = vrot.slane %v6470_v38, %v8286_v7  ;;  %v6489_v11 = vcombine.low %v3394_v55, %v3398_v30  ;;  %v6496_v24 = vrot.slane %v6486_v25, %v8286_v7  ;;  %v6503_v0 = vrot.slane %v6487_v45, %v8286_v7 }
 0x2fd   : > { %v6510_v56 = vrot.slane %v6488_v46, %v8286_v7  ;;  %v9898_v25 = vand.u32 127, %v10197_v40 }
 0x2fe   : > { %v6485_v51 = vcombine.low %v6477_v5, %v6484_v63  ;;  %v6517_v36 = vrot.slane %v6489_v11, %v8286_v7  ;;  %v6518_v49 = vcombine.low %v6496_v24, %v6503_v0  ;;  %v9845_v15 = vpop.permute.xlu0 %6665  ;;  %v9847_v8 = vpop.permute.xlu1 %6569 }
 0x2ff   : > { %v6733_v63 = vadd.s32 4294967288, %v9898_v25  ;;  %v9907_v11 = vsub.s32 %v9898_v25, %v8254_v17  ;;  %v6740_v24 = vadd.s32 4294967280, %v9898_v25 }
 0x300   : > { %6722 = vperm.xlu1 %7508, %v6485_v51   ;;  %v6519_v48 = vcombine.low %v6510_v56, %v6517_v36  ;;  %v6526_v62 = vrot.slane %v6518_v49, %v8286_v7  ;;  %v6754_v56 = vadd.s32 4294967264, %v9898_v25  ;;  %v6747_v36 = vadd.s32 4294967272, %v9898_v25 }
 0x301   : > { %v9913_v51 = vsub.s32 %v6733_v63, %v8254_v17  ;;  %v6732_v49 = vrot.slane %v9602_v12, %v9907_v11 }
 0x302   : > { %v6533_v39 = vrot.slane %v6519_v48, %v8286_v7  ;;  %v9849_v47 = vpop.permute.xlu0 %6566  ;;  %v9851_v2 = vpop.permute.xlu1 %6575  ;;  %v9920_v48 = vsub.s32 %v6740_v24, %v8254_v17  ;;  %v9930_v40 = vsub.s32 %v6754_v56, %v8254_v17  ;;  %v6768_v7 = vadd.s32 4294967248, %v9898_v25 }
 0x303   : > { %v6737_v63 = vrot.slane %v9545_v22, %v9913_v51  ;;  %v6924_v24 = vrot.slane %v9575_v13, %v9913_v51 }
 0x304   : > { %v6534_v29 = vcombine.low %v6526_v62, %v6533_v39  ;;  %v6920_v39 = vrot.slane %v9768_v20, %v9907_v11  ;;  %v6744_v20 = vrot.slane %v9681_v26, %v9920_v48  ;;  %v6929_v22 = vrot.slane %v9789_v14, %v9920_v48 }
 0x305   : > { %v6939_v13 = vrot.slane %v9798_v9, %v9930_v40  ;;  %v9954_v26 = vsub.s32 %v6768_v7, %v8254_v17  ;;  %v6775_v7 = vadd.s32 4294967240, %v9898_v25 }
 0x306   : > { %6725 = vperm.xlu1 %7508, %v6534_v29   ;;  %v9853_v59 = vpop.permute.xlu0 %6662  ;;  %v9855_v60 = vpop.permute.xlu1 %6581  ;;  %v6761_v29 = vadd.s32 4294967256, %v9898_v25  ;;  %v6925_v56 = vsel %vm6738_vm2, %v6924_v24, %v6920_v39  ;;  %v6758_v39 = vrot.slane %v9760_v58, %v9930_v40 }
 0x307   : > { %10203 = vst [vmem:[#allocation7_spill] sm:$0xff] %v9855_v60  ;;  %v9938_v60 = vsub.s32 %v6747_v36, %v8254_v17  ;;  %v6782_v36 = vadd.s32 4294967232, %v9898_v25  ;;  %v6930_v9 = vsel %vm6745_vm3, %v6929_v22, %v6925_v56  ;;  %v6772_v56 = vrot.slane %v9817_v3, %v9954_v26 }
 0x30a   : > { %v9857_v61 = vpop.permute.xlu0 %6671  ;;  %v9859_v42 = vpop.permute.xlu1 %6587 }
 0x30b   : > { %10204 = vst [vmem:[#allocation8_spill] sm:$0xff] %v9857_v61  ;;  %v6934_v61 = vrot.slane %v9654_v23, %v9938_v60  ;;  %v6845_v3 = vrot.slane %v9859_v42, %v9913_v51 }
 0x30d   : > { %v6935_v24 = vsel %vm6752_vm4, %v6934_v61, %v6930_v9 }
 0x30e   : > { %v9861_v54 = vpop.permute.xlu0 %6572  ;;  %v9863_v16 = vpop.permute.xlu1 %6683 }
 0x312   : > { %v9865_v19 = vpop.permute.xlu0 %6668  ;;  %v9867_v41 = vpop.permute.xlu1 %6593 }
 0x316   : > { %v9869_v35 = vpop.permute.xlu0 %6578  ;;  %v9871_v52 = vpop.permute.xlu1 %6689 }
 0x31a   : > { %v9873_v57 = vpop.permute.xlu0 %6674  ;;  %v9875_v27 = vpop.permute.xlu1 %6599 }
 0x31b   : > { %10205 = vst [vmem:[#allocation9_spill] sm:$0xff] %v9873_v57  ;;  %v6739_v57 = vsel %vm6738_vm2, %v6737_v63, %v6732_v49 }
 0x31c   : > { %v6746_v14 = vsel %vm6745_vm3, %v6744_v20, %v6739_v57  ;;  %v6940_v57 = vsel %vm6759_vm5, %v6939_v13, %v6935_v24  ;;  %v9976_v20 = vsub.s32 %v6782_v36, %v8254_v17 }
 0x31e   : > { %v9877_v31 = vpop.permute.xlu0 %6584  ;;  %v9879_v10 = vpop.permute.xlu1 %6695 }
 0x31f   : > { %v6841_v61 = vrot.slane %v9877_v31, %v9907_v11  ;;  %v6786_v31 = vrot.slane %v9829_v34, %v9976_v20 }
 0x321   : > { %v6846_v24 = vsel %vm6738_vm2, %v6845_v3, %v6841_v61  ;;  %v7013_v3 = vrot.slane %v9871_v52, %v9938_v60 }
 0x322   : > { %v9881_v1 = vpop.permute.xlu0 %6680  ;;  %v9883_v28 = vpop.permute.xlu1 %6605 }
 0x323   : > { %v6999_v42 = vrot.slane %v9881_v1, %v9907_v11  ;;  %v7003_v1 = vrot.slane %v9863_v16, %v9913_v51 }
 0x326   : > { %v9885_v32 = vpop.permute.xlu0 %6590  ;;  %v9887_v38 = vpop.permute.xlu1 %6701 }
 0x327   : > { %v6850_v36 = vrot.slane %v9885_v32, %v9920_v48 }
 0x329   : > { %v6851_v34 = vsel %vm6745_vm3, %v6850_v36, %v6846_v24  ;;  %v6817_v24 = vadd.s32 4294967192, %v9898_v25 }
 0x32a   : > { %v9889_v5 = vpop.permute.xlu0 %6686  ;;  %v9891_v6 = vpop.permute.xlu1 %6611 }
 0x32e   : > { %v9893_v55 = vpop.permute.xlu0 %6596 }
 0x32f   : > { %v9895_v30 = vpop.permute.xlu1 %6707 }
 0x332   : > { %v9900_v45 = vpop.permute.xlu0 %6692 }
 0x336   : > { %v9910_v0 = vpop.permute.xlu0 %6602 }
 0x337   : > { %v6870_v61 = vrot.slane %v9910_v0, %v9954_v26 }
 0x33a   : > { %v9903_v46 = vpop.permute.xlu1 %6617  ;;  %v9933_v12 = vpop.permute.xlu0 %6698 }
 0x33f   : > { %v9968_v63 = vpop.permute.xlu0 %6608 }
 0x345   : > { %v9922_v62 = vpop.permute.xlu1 %6713 }
 0x346   : > { %10206 = vst [vmem:[#allocation10_spill] sm:$0xff] %v9922_v62  ;;  %v9949_v62 = vsub.s32 %v6761_v29, %v8254_v17  ;;  %v6751_v29 = vrot.slane %v9630_v21, %v9938_v60 }
 0x348   : > { %v6944_v23 = vrot.slane %v9733_v37, %v9949_v62  ;;  %v6949_v37 = vrot.slane %v9813_v50, %v9954_v26  ;;  %v6753_v58 = vsel %vm6752_vm4, %v6751_v29, %v6746_v14  ;;  %v6765_v13 = vrot.slane %v9708_v18, %v9949_v62 }
 0x349   : > { %v6760_v22 = vsel %vm6759_vm5, %v6758_v39, %v6753_v58  ;;  %v9987_v50 = vsub.s32 %v6775_v7, %v8254_v17  ;;  %v6789_v29 = vadd.s32 4294967224, %v9898_v25  ;;  %v6860_v58 = vrot.slane %v9893_v55, %v9930_v40 }
 0x34a   : > { %v6945_v21 = vsel %vm6766_vm6, %v6944_v23, %v6940_v57  ;;  %v6803_v23 = vadd.s32 4294967208, %v9898_v25  ;;  %v6767_v18 = vsel %vm6766_vm6, %v6765_v13, %v6760_v22  ;;  %v10001_v9 = vpop.permute.xlu0 %6704  ;;  %v6796_v55 = vadd.s32 4294967216, %v9898_v25 }
 0x34b   : > { %v6950_v39 = vsel %vm6773_vm7, %v6949_v37, %v6945_v21  ;;  %v6954_v32 = vrot.slane %v9800_v44, %v9987_v50  ;;  %v6774_v7 = vsel %vm6773_vm7, %v6772_v56, %v6767_v18  ;;  %v6779_v57 = vrot.slane %v9781_v53, %v9987_v50 }
 0x34c   : > { %v7008_v37 = vrot.slane %v9889_v5, %v9920_v48  ;;  %v6959_v44 = vrot.slane %v9839_v43, %v9976_v20  ;;  %v10019_v21 = vsub.s32 %v6803_v23, %v8254_v17  ;;  %v6855_v53 = vrot.slane %v9867_v41, %v9938_v60 }
 0x34d   : > { %v6781_v11 = vsel %vm6780_vm8, %v6779_v57, %v6774_v7  ;;  %v10027_v5 = vsub.s32 %v6789_v29, %v8254_v17  ;;  %v6955_v43 = vsel %vm6780_vm8, %v6954_v32, %v6950_v39  ;;  %v7004_v22 = vsel %vm6738_vm2, %v7003_v1, %v6999_v42 }
 0x34e   : > { %v6856_v16 = vsel %vm6752_vm4, %v6855_v53, %v6851_v34  ;;  %v7009_v51 = vsel %vm6745_vm3, %v7008_v37, %v7004_v22  ;;  %v7018_v56 = vrot.slane %v9900_v45, %v9930_v40  ;;  %v6974_v36 = vrot.slane %v9845_v15, %v10019_v21 }
 0x34f   : > { %v6861_v41 = vsel %vm6759_vm5, %v6860_v58, %v6856_v16  ;;  %v6615_v13 = vpop.permute.xlu0 %6614  ;;  %v6788_v23 = vsel %vm6787_vm9, %v6786_v31, %v6781_v11  ;;  %v6865_v39 = vrot.slane %v9875_v27, %v9949_v62  ;;  %v6793_v18 = vrot.slane %v9833_v33, %v10027_v5 }
 0x350   : > { %v6799_v40 = vsub.s32 %v6796_v55, %v8254_v17  ;;  %v6810_v45 = vadd.s32 4294967200, %v9898_v25  ;;  %v6960_v0 = vsel %vm6787_vm9, %v6959_v44, %v6955_v43  ;;  %v6964_v29 = vrot.slane %v9842_v4, %v10027_v5 }
 0x351   : > { %v7014_v31 = vsel %vm6752_vm4, %v7013_v3, %v7009_v51  ;;  %v6866_v60 = vsel %vm6766_vm6, %v6865_v39, %v6861_v41  ;;  %v7028_v33 = vrot.slane %v9933_v12, %v9954_v26  ;;  %v6880_v32 = vrot.slane %v9968_v63, %v9976_v20 }
 0x352   : > { %v7019_v52 = vsel %vm6759_vm5, %v7018_v56, %v7014_v31  ;;  %v6871_v27 = vsel %vm6773_vm7, %v6870_v61, %v6866_v60  ;;  %v6807_v4 = vrot.slane %v9847_v8, %v10019_v21  ;;  %v7023_v42 = vrot.slane %v9879_v10, %v9949_v62  ;;  %v10208_v31 = vld [vmem:[#allocation8_spill] sm:$0xff] }
 0x353   : > { %v6875_v57 = vrot.slane %v9883_v28, %v9987_v50  ;;  %v6795_v34 = vsel %vm6794_vm10, %v6793_v18, %v6788_v23  ;;  %v6800_v12 = vrot.slane %v9849_v47, %v6799_v40  ;;  %v6969_v26 = vrot.slane %v9853_v59, %v6799_v40 }
 0x354   : > { %v9957_v49 = vpop.permute.xlu1 %6710  ;;  %v6813_v63 = vsub.s32 %v6810_v45, %v8254_v17  ;;  %v6965_v58 = vsel %vm6794_vm10, %v6964_v29, %v6960_v0  ;;  %v6824_v8 = vadd.s32 4294967184, %v9898_v25  ;;  %v7024_v44 = vsel %vm6766_vm6, %v7023_v42, %v7019_v52 }
 0x355   : > { %v6876_v10 = vsel %vm6780_vm8, %v6875_v57, %v6871_v27  ;;  %v7029_v62 = vsel %vm6773_vm7, %v7028_v33, %v7024_v44  ;;  %v7038_v47 = vrot.slane %v10001_v9, %v9976_v20  ;;  %v6890_v1 = vrot.slane %v6615_v13, %v6799_v40  ;;  %v10210_v57 = vld [vmem:[#allocation7_spill] sm:$0xff] }
 0x356   : > { %v6881_v28 = vsel %vm6787_vm9, %v6880_v32, %v6876_v10  ;;  %v6820_v59 = vsub.s32 %v6817_v24, %v8254_v17  ;;  %v7033_v53 = vrot.slane %v9887_v38, %v9987_v50  ;;  %v6885_v11 = vrot.slane %v9891_v6, %v10027_v5 }
 0x357   : > { %v6802_v55 = vsel %vm6801_vm11, %v6800_v12, %v6795_v34  ;;  %v6814_v43 = vrot.slane %v9861_v54, %v6813_v63  ;;  %v6831_v22 = vadd.s32 4294967176, %v9898_v25  ;;  %v6970_v20 = vsel %vm6801_vm11, %v6969_v26, %v6965_v58 }
 0x358   : > { %v6827_v9 = vsub.s32 %v6824_v8, %v8254_v17  ;;  %v7034_v51 = vsel %vm6780_vm8, %v7033_v53, %v7029_v62  ;;  %v6886_v41 = vsel %vm6794_vm10, %v6885_v11, %v6881_v28  ;;  %v7048_v6 = vrot.slane %v9957_v49, %v6799_v40  ;;  %v10211_v53 = vld [vmem:[#allocation6_spill] sm:$0xff] }
 0x359   : > { %v7039_v38 = vsel %vm6787_vm9, %v7038_v47, %v7034_v51  ;;  %v6891_v50 = vsel %vm6801_vm11, %v6890_v1, %v6886_v41  ;;  %v6809_v25 = vsel %vm6808_vm12, %v6807_v4, %v6802_v55  ;;  %v6821_v61 = vrot.slane %v9851_v2, %v6820_v59 }
 0x35a   : > { %v9991_v14 = vpop.permute.xlu1 %6623  ;;  %v7043_v13 = vrot.slane %v9895_v30, %v10027_v5  ;;  %v6895_v23 = vrot.slane %v9903_v46, %v10019_v21  ;;  %v6816_v3 = vsel %vm6815_vm13, %v6814_v43, %v6809_v25  ;;  %v6834_v39 = vsub.s32 %v6831_v22, %v8254_v17 }
 0x35b   : > { %v6979_v49 = vrot.slane %v9865_v19, %v6813_v63  ;;  %v6828_v18 = vrot.slane %v9869_v35, %v6827_v9  ;;  %v6905_v45 = vrot.slane %v9991_v14, %v6820_v59  ;;  %v6975_v17 = vsel %vm6808_vm12, %v6974_v36, %v6970_v20  ;;  %v10207_v19 = vld [vmem:[#allocation10_spill] sm:$0xff] }
 0x35c   : > { %v7044_v40 = vsel %vm6794_vm10, %v7043_v13, %v7039_v38  ;;  %v6896_v2 = vsel %vm6808_vm12, %v6895_v23, %v6891_v50  ;;  %v7053_v35 = vrot.slane %v10207_v19, %v10019_v21  ;;  %v6984_v60 = vrot.slane %v10208_v31, %v6820_v59 }
 0x35d   : > { %v7049_v30 = vsel %vm6801_vm11, %v7048_v6, %v7044_v40  ;;  %v6980_v52 = vsel %vm6815_vm13, %v6979_v49, %v6975_v17  ;;  %v6823_v27 = vsel %vm6822_vm14, %v6821_v61, %v6816_v3  ;;  %v6835_v34 = vrot.slane %v10210_v57, %v6834_v39 }
 0x35e   : > { %v6830_v32 = vsel %vm6829_vm15, %v6828_v18, %v6823_v27  ;;  %v7054_v24 = vsel %vm6808_vm12, %v7053_v35, %v7049_v30  ;;  %v6985_v58 = vsel %vm6822_vm14, %v6984_v60, %v6980_v52  ;;  %v10212_v22 = vlaneseq }
 0x35f   : > { %v6621_v37 = vpop.permute.xlu0 %6620  ;;  %v6837_v8 = vsel %vm6836_vm0, %v6835_v34, %v6830_v32 }
 0x360   : > { %v6900_v56 = vrot.slane %v6621_v37, %v6813_v63  ;;  %vm7102_vm1 = vcmp.lt.s32.totalorder %v10212_v22, 512 }
 0x362   : > { %v6901_v5 = vsel %vm6815_vm13, %v6900_v56, %v6896_v2 }
 0x363   : > { %v6906_v15 = vsel %vm6822_vm14, %v6905_v45, %v6901_v5 }
 0x364   : > { %v10030_v48 = vpop.permute.xlu1 %6719 }
 0x365   : > { %v7063_v12 = vrot.slane %v10030_v48, %v6820_v59 }
 0x369   : > { %v6627_v54 = vpop.permute.xlu0 %6626 }
 0x36a   : > { %v6910_v46 = vrot.slane %v6627_v54, %v6827_v9 }
 0x36c   : > { %v6911_v36 = vsel %vm6829_vm15, %v6910_v46, %v6906_v15 }
 0x36f   : > { %v10063_v7 = vpop.permute.xlu1 %6716 }
 0x370   : > { %v7058_v0 = vrot.slane %v10063_v7, %v6813_v63  ;;  %v10209_v7 = vld [vmem:[#allocation9_spill] sm:$0xff] }
 0x371   : > { %v6989_v4 = vrot.slane %v10209_v7, %v6827_v9 }
 0x372   : > { %v7059_v21 = vsel %vm6815_vm13, %v7058_v0, %v7054_v24 }
 0x373   : > { %v7064_v44 = vsel %vm6822_vm14, %v7063_v12, %v7059_v21  ;;  %v6990_v62 = vsel %vm6829_vm15, %v6989_v4, %v6985_v58 }
 0x374   : > { %v6678_v33 = vpop.permute.xlu0 %6677 }
 0x375   : > { %v6994_v26 = vrot.slane %v6678_v33, %v6834_v39 }
 0x377   : > { %v6995_v48 = vsel %vm6836_vm0, %v6994_v26, %v6990_v62 }
 0x37a   : > { %v6630_v16 = vpop.permute.xlu1 %6629 }
 0x37b   : > { %v6915_v14 = vrot.slane %v6630_v16, %v6834_v39 }
 0x37d   : > { %v6916_v63 = vsel %vm6836_vm0, %v6915_v14, %v6911_v36 }
 0x37e   : > { %v7075_v28 = vcombine.low %v6837_v8, %v6916_v63 }
 0x37f   : > { %v6723_v29 = vpop.permute.xlu1 %6722 }
 0x380   : > { %v7068_v42 = vrot.slane %v6723_v29, %v6827_v9  ;;  %v7083_v11 = vrot.slane %v7075_v28, %v10211_v53 }
 0x382   : > { %v7069_v47 = vsel %vm6829_vm15, %v7068_v42, %v7064_v44 }
 0x385   : > { %v6726_v37 = vpop.permute.xlu1 %6725 }
 0x386   : > { %v7073_v10 = vrot.slane %v6726_v37, %v6834_v39 }
 0x388   : > { %v7074_v1 = vsel %vm6836_vm0, %v7073_v10, %v7069_v47 }
 0x389   : > { %v7076_v59 = vcombine.low %v6995_v48, %v7074_v1 }
 0x38b   : > { %v7090_v55 = vrot.slane %v7076_v59, %v10211_v53 }
 0x38d   : > { %v7091_v43 = vcombine.low %v7083_v11, %v7090_v55 }
 0x38f   : > { %v7098_v16 = vrot.slane %v7091_v43, %v10211_v53 }
 0x391   : > { %7104 = vst.msk [vmem:[%s220_s17] sm:$0xf] %vm7102_vm1, %v7098_v16 }
 0x392   : > { %7650 = shalt.err (!%p7647_p3)
}
 0x393   : > { %s7651_s12 = scalar_lea.hbm %s10149_s24, 64  ;;  %s7655_s11 = scalar_lea.hbm %s10196_s5, 128 }
 0x394   : > { %p7652_p4 = scmp.ne.s32.totalorder %s10149_s24, %s7651_s12  ;;  %p7656_p9 = scmp.lt.u32.totalorder %s10149_s24, %s10196_s5 }
 0x395   : > { %p7657_p10 = scmp.lt.u32.totalorder %s7655_s11, %s7651_s12  ;;  %p7659_p12 = scmp.lt.u32.totalorder %s7651_s12, %s10149_s24 }
 0x396   : > { %p7653_p7 = pnand %p7652_p4, %p7772_p5 }
 0x397   : > { %p7658_p11 = por %p7657_p10, %p7656_p9 }
 0x398   : > { %p7654_p8 = pneg %p7653_p7 }
 0x399   : > { %p7660_p13 = por %p7659_p12, %p7658_p11 }
 0x39b   : > { %p7661_p0 = pnand %p7660_p13, %p7654_p8 }
 0x39d   : > { %7664 = shalt.err (!%p7661_p0)
}
 0x39e   : > { %7466 = dma.vmem_to_hbm [thread:$0]  (%p7772_p5), %s10151_s18, 64, %s10149_s24, %s7106_s26  }
 0x39f PF: > { %p7472_p1 = scmp.ge.s32.totalorder %s7699_s23, 2  ;;  %s7132_s15 = sand.u32 1, %s7687_s20  }
 0x3a0   : > { %s7133_s16 = scalar_lea.sflag [#allocation4], %s7132_s15 }
 0x3a1   : > { %p7469_p2 = pnand %p7472_p1, %p7776_p6 }
 0x3a3   : > { %7682 = dma.done.wait (!%p7469_p2), %s7133_s16, 64  }
 0x3a4   : > { %7684 = vsyncadd (!%p7469_p2), %s7133_s16, 4294967232  ;;  %p17_p3 = scmp.ge.s32.totalorder %s7760_s25, 4   ;;  %s10213_s20 = smov %s7691_s21 }
 0x3a5   : > { %s10214_s21 = smov %s7695_s22  ;;  %s10215_s22 = smov %s7770_s28 }
 0x3a6   : > { %s10216_s23 = smov %s7760_s25  ;;  %19 = sbr.rel (!%p17_p3) target bundleno = 6 (0x6), region = 75 }
 0x3ad   :  { %7138 = vsyncpa [#allocation4], 1 }
 0x3ae   :  { %7140 = vsyncpa [#allocation4 + $0x1], 1 }

</bundles_post_ra>
